<compile_context>
chip_gen: v5e
topology: v5e:2x2
jax: 0.10.0
libtpu: 0.0.40
codegen_flags: <defaults>
</compile_context>

<pallas_src>
import jax
import jax.numpy as jnp
from jax import lax
from jax.experimental import pallas as pl
from jax.experimental.pallas import tpu as pltpu


def viterbi_kernel(feats_ref, mask_ref, lastpos_ref, trans_t_ref, stop_ref,
                   score_ref, path_ref, bp_hist_ref):
    T, C, Bt = feats_ref.shape

    tt = trans_t_ref[...]                                  # (C, C)  tt[j, i] = trans[i, j]
    # hoist per-source-tag transition columns (each (C, 1)) out of the time loop
    tt_cols = [tt[:, i:i + 1] for i in range(C)]
    zeros_cb = jnp.zeros((C, Bt), jnp.int32)
    zeros_1b = jnp.zeros((1, Bt), jnp.int32)

    # ---- init: partition_0[j, b] = feats[0, j, b] + trans[START_TAG, j] ----
    part0 = feats_ref[0] + tt_cols[C - 2]                  # (C, Bt)

    fwd_unroll = True if (T - 1) <= 64 else 8
    bwd_unroll = True if (T - 1) <= 64 else 8

    def max_argmax_prev(p):
        # best over previous tag i of (trans[i, j] + p[i, b]).
        # The feature f[j, b] does not depend on i, so it is added once after
        # the max (argmax unaffected); saves one (C,Bt) add per source tag.
        best_v = tt_cols[0] + p[0:1, :]
        best_i = zeros_cb
        for i in range(1, C):
            v = tt_cols[i] + p[i:i + 1, :]
            take = v > best_v
            best_v = jnp.where(take, v, best_v)
            best_i = jnp.where(take, jnp.int32(i), best_i)
        return best_v, best_i

    def fwd_body(t, p):
        best_v, bp = max_argmax_prev(p)
        m_t = mask_ref[t]                                  # (1, Bt)
        bp = jnp.where(m_t == 0, 0, bp)                    # masked_fill_(pad, 0)
        bp_hist_ref[t - 1] = bp
        p_new = best_v + feats_ref[t]                      # add feature once per step
        # freeze partition on padded steps: with contiguous masks this equals
        # "gather partition_history at last valid position" (single carry).
        return jnp.where(m_t != 0, p_new, p)

    lp = lax.fori_loop(1, T, fwd_body, part0, unroll=fwd_unroll)
    bp_hist_ref[T - 1] = zeros_cb                          # pad_zero row

    # ---- final transition into STOP tag ----
    fin = lp + stop_ref[...]                               # (C, Bt)
    best = fin[0:1, :]
    ptr0 = zeros_1b
    for i in range(1, C):
        v = fin[i:i + 1, :]
        take = v > best
        best = jnp.where(take, v, best)
        ptr0 = jnp.where(take, jnp.int32(i), ptr0)
    score_ref[...] = best                                  # best_score (1, Bt)

    lastpos = lastpos_ref[...]                             # (1, Bt) = length - 1

    # ---- backtrack: write each resolved tag column straight to path_ref ----
    path_ref[T - 1] = ptr0 * mask_ref[T - 1]

    def bwd_body(r, ptr):
        idx = T - 2 - r
        row = bp_hist_ref[idx]                             # (C, Bt)
        g = zeros_1b
        for i in range(C):                                 # gather row[ptr] via selects
            g = jnp.where(ptr == i, row[i:i + 1, :], g)
        g = jnp.where(idx == lastpos, ptr0, g)             # ending tag at last valid pos
        path_ref[idx] = g * mask_ref[idx]
        return g

    lax.fori_loop(0, T - 1, bwd_body, ptr0, unroll=bwd_unroll)


def crf_viterbi_forward(feats, mask, transitions):
    """feats: (B, T, C) f32, mask: (B, T) 0/1, transitions: (C, C) f32."""
    B, T, C = feats.shape
    feats_tcb = jnp.transpose(feats, (1, 2, 0)).astype(jnp.float32)   # (T, C, B)
    mask_i = mask.astype(jnp.int32)
    mask_t1b = jnp.transpose(mask_i, (1, 0))[:, None, :]              # (T, 1, B)
    lastpos = (jnp.sum(mask_i, axis=1) - 1)[None, :]                  # (1, B)
    trans = transitions.astype(jnp.float32)
    trans_t = trans.T                                                 # (C, C)
    stop_col = trans[:, C - 1:C]                                      # (C, 1) trans[:, STOP]

    bt = B if B <= 128 else 128                                       # batch tile (lanes)
    grid = (pl.cdiv(B, bt),)

    # TODO(synk): bp_hist could be int8/int16 to shrink scratch further and a
    # time-tiled (arbitrary) grid axis would bound VMEM for very long T; kept
    # int32 / whole-T tiles for robust lowering at these sizes.
    score, path = pl.pallas_call(
        viterbi_kernel,
        out_shape=(jax.ShapeDtypeStruct((1, B), jnp.float32),
                   jax.ShapeDtypeStruct((T, 1, B), jnp.int32)),
        grid_spec=pltpu.PrefetchScalarGridSpec(
            num_scalar_prefetch=0,
            grid=grid,
            in_specs=[
                pl.BlockSpec((T, C, bt), lambda b: (0, 0, b)),   # feats
                pl.BlockSpec((T, 1, bt), lambda b: (0, 0, b)),   # mask
                pl.BlockSpec((1, bt), lambda b: (0, b)),         # last_pos
                pl.BlockSpec((C, C), lambda b: (0, 0)),          # trans_t
                pl.BlockSpec((C, 1), lambda b: (0, 0)),          # stop column
            ],
            out_specs=(
                pl.BlockSpec((1, bt), lambda b: (0, b)),         # best_score
                pl.BlockSpec((T, 1, bt), lambda b: (0, 0, b)),   # best_path (time-major)
            ),
            scratch_shapes=[pltpu.VMEM((T, C, bt), jnp.int32)],  # back-pointer history
        ),
        compiler_params=pltpu.CompilerParams(
            dimension_semantics=("parallel",)),
    )(feats_tcb, mask_t1b, lastpos, trans_t, stop_col)

    return score[0], jnp.transpose(path[:, 0, :], (1, 0))


def viterbi_reference(feats, mask, transitions):
    """Pure-JAX mirror of _viterbi_decode_v2 for verification."""
    B, T, C = feats.shape
    trans = transitions
    trans_t = transitions.T
    m = mask.astype(jnp.int32)
    part = feats[:, 0, :] + trans[C - 2:C - 1, :]
    part_hist = [part]
    bps = []
    for t in range(1, T):
        cur = feats[:, t, :][:, :, None] + trans_t[None, :, :] + part[:, None, :]
        part = jnp.max(cur, axis=-1)
        bp = jnp.argmax(cur, axis=-1).astype(jnp.int32)
        bp = jnp.where(m[:, t:t + 1] == 0, 0, bp)
        part_hist.append(part)
        bps.append(bp)
    part_hist = jnp.stack(part_hist, axis=1)                  # (B, T, C)
    length = jnp.sum(m, axis=1)
    last_pos = length - 1
    lp = jnp.take_along_axis(part_hist, last_pos[:, None, None], axis=1)[:, 0, :]
    final = trans_t[None, :, :] + lp[:, None, :]
    part_f = jnp.max(final, axis=-1)
    bp_f = jnp.argmax(final, axis=-1).astype(jnp.int32)
    best_score = part_f[:, C - 1]
    pointer0 = bp_f[:, C - 1]
    bps.append(jnp.zeros((B, C), jnp.int32))
    bph = jnp.stack(bps, axis=0)                              # (T, B, C)
    t_iota = jnp.arange(T)[:, None, None]
    bph = jnp.where(t_iota == last_pos[None, :, None], pointer0[None, :, None], bph)
    path = [None] * T
    path[T - 1] = pointer0
    ptr = pointer0
    for idx in range(T - 2, -1, -1):
        ptr = jnp.take_along_axis(bph[idx], ptr[:, None], axis=1)[:, 0]
        path[idx] = ptr
    path = jnp.stack(path, axis=1) * m
    return best_score, path


if __name__ == "__main__":
    key = jax.random.PRNGKey(0)
    B, T, tagset_size = 2, 8, 8
    C = tagset_size + 2                       # tag_size = tagset_size + 2
    kf, kt = jax.random.split(key)

    feats = jax.random.normal(kf, (B, T, C), dtype=jnp.float32)
    lengths = jnp.array([T, 5], dtype=jnp.int32)
    mask = (jnp.arange(T)[None, :] < lengths[:, None]).astype(jnp.int32)

    # transitions: deterministic init following CRF.__init__ (zeros + -10000
    # forbidden rows/cols); small noise stands in for learned values.
    big_neg = jnp.float32(-10000.0)
    transitions = 0.1 * jax.random.normal(kt, (C, C), dtype=jnp.float32)
    transitions = transitions.at[:, C - 2].set(big_neg)   # [:, START_TAG]
    transitions = transitions.at[C - 1, :].set(big_neg)   # [STOP_TAG, :]
    transitions = transitions.at[:, 0].set(big_neg)
    transitions = transitions.at[0, :].set(big_neg)

    score, path = crf_viterbi_forward(feats, mask, transitions)
    jax.block_until_ready((score, path))

    ref_score, ref_path = viterbi_reference(feats, mask, transitions)
    assert jnp.allclose(score, ref_score, rtol=1e-5, atol=1e-5), (score, ref_score)
    assert bool((path == ref_path).all()), (path, ref_path)
    print("KERNEL_OK")
</pallas_src>

<mosaic_0001>
module attributes {stable_mosaic.version = 11 : i64} {
  func.func @viterbi_kernel(%arg0: i32, %arg1: memref<8x10x2xf32, #tpu.memory_space<vmem>>, %arg2: memref<8x1x2xi32, #tpu.memory_space<vmem>>, %arg3: memref<1x2xi32, #tpu.memory_space<vmem>>, %arg4: memref<10x10xf32, #tpu.memory_space<vmem>>, %arg5: memref<10x1xf32, #tpu.memory_space<vmem>>, %arg6: memref<1x2xf32, #tpu.memory_space<vmem>>, %arg7: memref<8x1x2xi32, #tpu.memory_space<vmem>>, %arg8: memref<8x10x2xi32, #tpu.memory_space<vmem>>) attributes {dimension_semantics = [#tpu.dimension_semantics<parallel>], iteration_bounds = array<i64: 1>, scalar_prefetch = 0 : i64, scratch_operands = 1 : i64, tpu.core_type = #tpu.core_type<tc>, window_params = [{transform_indices = @transform_0, window_bounds = array<i64: 8, 10, 2>}, {transform_indices = @transform_1, window_bounds = array<i64: 8, 1, 2>}, {transform_indices = @transform_2, window_bounds = array<i64: 1, 2>}, {pipeline_mode = #tpu.pipeline_mode<synchronous>, transform_indices = @transform_3, window_bounds = array<i64: 10, 10>}, {pipeline_mode = #tpu.pipeline_mode<synchronous>, transform_indices = @transform_4, window_bounds = array<i64: 10, 1>}, {transform_indices = @transform_5, window_bounds = array<i64: 1, 2>}, {transform_indices = @transform_6, window_bounds = array<i64: 8, 1, 2>}]} {
    %c0 = arith.constant 0 : index
    %c0_0 = arith.constant 0 : index
    %0 = vector.load %arg4[%c0, %c0_0] : memref<10x10xf32, #tpu.memory_space<vmem>>, vector<10x10xf32>
    %1 = vector.extract_strided_slice %0 {offsets = [0, 0], sizes = [10, 1], strides = [1, 1]} : vector<10x10xf32> to vector<10x1xf32>
    %2 = vector.extract_strided_slice %0 {offsets = [0, 1], sizes = [10, 1], strides = [1, 1]} : vector<10x10xf32> to vector<10x1xf32>
    %3 = vector.extract_strided_slice %0 {offsets = [0, 2], sizes = [10, 1], strides = [1, 1]} : vector<10x10xf32> to vector<10x1xf32>
    %4 = vector.extract_strided_slice %0 {offsets = [0, 3], sizes = [10, 1], strides = [1, 1]} : vector<10x10xf32> to vector<10x1xf32>
    %5 = vector.extract_strided_slice %0 {offsets = [0, 4], sizes = [10, 1], strides = [1, 1]} : vector<10x10xf32> to vector<10x1xf32>
    %6 = vector.extract_strided_slice %0 {offsets = [0, 5], sizes = [10, 1], strides = [1, 1]} : vector<10x10xf32> to vector<10x1xf32>
    %7 = vector.extract_strided_slice %0 {offsets = [0, 6], sizes = [10, 1], strides = [1, 1]} : vector<10x10xf32> to vector<10x1xf32>
    %8 = vector.extract_strided_slice %0 {offsets = [0, 7], sizes = [10, 1], strides = [1, 1]} : vector<10x10xf32> to vector<10x1xf32>
    %9 = vector.extract_strided_slice %0 {offsets = [0, 8], sizes = [10, 1], strides = [1, 1]} : vector<10x10xf32> to vector<10x1xf32>
    %10 = vector.extract_strided_slice %0 {offsets = [0, 9], sizes = [10, 1], strides = [1, 1]} : vector<10x10xf32> to vector<10x1xf32>
    %c0_i32 = arith.constant 0 : i32
    %11 = vector.broadcast %c0_i32 : i32 to vector<10x2xi32>
    %c0_i32_1 = arith.constant 0 : i32
    %12 = vector.broadcast %c0_i32_1 : i32 to vector<1x2xi32>
    %c0_2 = arith.constant 0 : index
    %c0_3 = arith.constant 0 : index
    %c0_4 = arith.constant 0 : index
    %13 = vector.load %arg1[%c0_2, %c0_3, %c0_4] : memref<8x10x2xf32, #tpu.memory_space<vmem>>, vector<1x10x2xf32>
    %14 = vector.shape_cast %13 : vector<1x10x2xf32> to vector<10x2xf32>
    %15 = vector.broadcast %9 : vector<10x1xf32> to vector<10x2xf32>
    %16 = arith.addf %14, %15 : vector<10x2xf32>
    %c1_i32 = arith.constant 1 : i32
    %17 = vector.extract_strided_slice %16 {offsets = [0, 0], sizes = [1, 2], strides = [1, 1]} : vector<10x2xf32> to vector<1x2xf32>
    %18 = vector.broadcast %1 : vector<10x1xf32> to vector<10x2xf32>
    %19 = vector.broadcast %17 : vector<1x2xf32> to vector<10x2xf32>
    %20 = arith.addf %18, %19 : vector<10x2xf32>
    %21 = vector.extract_strided_slice %16 {offsets = [1, 0], sizes = [1, 2], strides = [1, 1]} : vector<10x2xf32> to vector<1x2xf32>
    %22 = vector.broadcast %2 : vector<10x1xf32> to vector<10x2xf32>
    %23 = vector.broadcast %21 : vector<1x2xf32> to vector<10x2xf32>
    %24 = arith.addf %22, %23 : vector<10x2xf32>
    %25 = arith.cmpf ogt, %24, %20 : vector<10x2xf32>
    %26 = arith.select %25, %24, %20 : vector<10x2xi1>, vector<10x2xf32>
    %c1_i32_5 = arith.constant 1 : i32
    %27 = vector.broadcast %c1_i32_5 : i32 to vector<10x2xi32>
    %28 = arith.select %25, %27, %11 : vector<10x2xi1>, vector<10x2xi32>
    %29 = vector.extract_strided_slice %16 {offsets = [2, 0], sizes = [1, 2], strides = [1, 1]} : vector<10x2xf32> to vector<1x2xf32>
    %30 = vector.broadcast %3 : vector<10x1xf32> to vector<10x2xf32>
    %31 = vector.broadcast %29 : vector<1x2xf32> to vector<10x2xf32>
    %32 = arith.addf %30, %31 : vector<10x2xf32>
    %33 = arith.cmpf ogt, %32, %26 : vector<10x2xf32>
    %34 = arith.select %33, %32, %26 : vector<10x2xi1>, vector<10x2xf32>
    %c2_i32 = arith.constant 2 : i32
    %35 = vector.broadcast %c2_i32 : i32 to vector<10x2xi32>
    %36 = arith.select %33, %35, %28 : vector<10x2xi1>, vector<10x2xi32>
    %37 = vector.extract_strided_slice %16 {offsets = [3, 0], sizes = [1, 2], strides = [1, 1]} : vector<10x2xf32> to vector<1x2xf32>
    %38 = vector.broadcast %4 : vector<10x1xf32> to vector<10x2xf32>
    %39 = vector.broadcast %37 : vector<1x2xf32> to vector<10x2xf32>
    %40 = arith.addf %38, %39 : vector<10x2xf32>
    %41 = arith.cmpf ogt, %40, %34 : vector<10x2xf32>
    %42 = arith.select %41, %40, %34 : vector<10x2xi1>, vector<10x2xf32>
    %c3_i32 = arith.constant 3 : i32
    %43 = vector.broadcast %c3_i32 : i32 to vector<10x2xi32>
    %44 = arith.select %41, %43, %36 : vector<10x2xi1>, vector<10x2xi32>
    %45 = vector.extract_strided_slice %16 {offsets = [4, 0], sizes = [1, 2], strides = [1, 1]} : vector<10x2xf32> to vector<1x2xf32>
    %46 = vector.broadcast %5 : vector<10x1xf32> to vector<10x2xf32>
    %47 = vector.broadcast %45 : vector<1x2xf32> to vector<10x2xf32>
    %48 = arith.addf %46, %47 : vector<10x2xf32>
    %49 = arith.cmpf ogt, %48, %42 : vector<10x2xf32>
    %50 = arith.select %49, %48, %42 : vector<10x2xi1>, vector<10x2xf32>
    %c4_i32 = arith.constant 4 : i32
    %51 = vector.broadcast %c4_i32 : i32 to vector<10x2xi32>
    %52 = arith.select %49, %51, %44 : vector<10x2xi1>, vector<10x2xi32>
    %53 = vector.extract_strided_slice %16 {offsets = [5, 0], sizes = [1, 2], strides = [1, 1]} : vector<10x2xf32> to vector<1x2xf32>
    %54 = vector.broadcast %6 : vector<10x1xf32> to vector<10x2xf32>
    %55 = vector.broadcast %53 : vector<1x2xf32> to vector<10x2xf32>
    %56 = arith.addf %54, %55 : vector<10x2xf32>
    %57 = arith.cmpf ogt, %56, %50 : vector<10x2xf32>
    %58 = arith.select %57, %56, %50 : vector<10x2xi1>, vector<10x2xf32>
    %c5_i32 = arith.constant 5 : i32
    %59 = vector.broadcast %c5_i32 : i32 to vector<10x2xi32>
    %60 = arith.select %57, %59, %52 : vector<10x2xi1>, vector<10x2xi32>
    %61 = vector.extract_strided_slice %16 {offsets = [6, 0], sizes = [1, 2], strides = [1, 1]} : vector<10x2xf32> to vector<1x2xf32>
    %62 = vector.broadcast %7 : vector<10x1xf32> to vector<10x2xf32>
    %63 = vector.broadcast %61 : vector<1x2xf32> to vector<10x2xf32>
    %64 = arith.addf %62, %63 : vector<10x2xf32>
    %65 = arith.cmpf ogt, %64, %58 : vector<10x2xf32>
    %66 = arith.select %65, %64, %58 : vector<10x2xi1>, vector<10x2xf32>
    %c6_i32 = arith.constant 6 : i32
    %67 = vector.broadcast %c6_i32 : i32 to vector<10x2xi32>
    %68 = arith.select %65, %67, %60 : vector<10x2xi1>, vector<10x2xi32>
    %69 = vector.extract_strided_slice %16 {offsets = [7, 0], sizes = [1, 2], strides = [1, 1]} : vector<10x2xf32> to vector<1x2xf32>
    %70 = vector.broadcast %8 : vector<10x1xf32> to vector<10x2xf32>
    %71 = vector.broadcast %69 : vector<1x2xf32> to vector<10x2xf32>
    %72 = arith.addf %70, %71 : vector<10x2xf32>
    %73 = arith.cmpf ogt, %72, %66 : vector<10x2xf32>
    %74 = arith.select %73, %72, %66 : vector<10x2xi1>, vector<10x2xf32>
    %c7_i32 = arith.constant 7 : i32
    %75 = vector.broadcast %c7_i32 : i32 to vector<10x2xi32>
    %76 = arith.select %73, %75, %68 : vector<10x2xi1>, vector<10x2xi32>
    %77 = vector.extract_strided_slice %16 {offsets = [8, 0], sizes = [1, 2], strides = [1, 1]} : vector<10x2xf32> to vector<1x2xf32>
    %78 = vector.broadcast %9 : vector<10x1xf32> to vector<10x2xf32>
    %79 = vector.broadcast %77 : vector<1x2xf32> to vector<10x2xf32>
    %80 = arith.addf %78, %79 : vector<10x2xf32>
    %81 = arith.cmpf ogt, %80, %74 : vector<10x2xf32>
    %82 = arith.select %81, %80, %74 : vector<10x2xi1>, vector<10x2xf32>
    %c8_i32 = arith.constant 8 : i32
    %83 = vector.broadcast %c8_i32 : i32 to vector<10x2xi32>
    %84 = arith.select %81, %83, %76 : vector<10x2xi1>, vector<10x2xi32>
    %85 = vector.extract_strided_slice %16 {offsets = [9, 0], sizes = [1, 2], strides = [1, 1]} : vector<10x2xf32> to vector<1x2xf32>
    %86 = vector.broadcast %10 : vector<10x1xf32> to vector<10x2xf32>
    %87 = vector.broadcast %85 : vector<1x2xf32> to vector<10x2xf32>
    %88 = arith.addf %86, %87 : vector<10x2xf32>
    %89 = arith.cmpf ogt, %88, %82 : vector<10x2xf32>
    %90 = arith.select %89, %88, %82 : vector<10x2xi1>, vector<10x2xf32>
    %c9_i32 = arith.constant 9 : i32
    %91 = vector.broadcast %c9_i32 : i32 to vector<10x2xi32>
    %92 = arith.select %89, %91, %84 : vector<10x2xi1>, vector<10x2xi32>
    %93 = arith.index_cast %c1_i32 : i32 to index
    %c0_6 = arith.constant 0 : index
    %c0_7 = arith.constant 0 : index
    %94 = vector.load %arg2[%93, %c0_6, %c0_7] : memref<8x1x2xi32, #tpu.memory_space<vmem>>, vector<1x1x2xi32>
    %95 = vector.shape_cast %94 : vector<1x1x2xi32> to vector<1x2xi32>
    %c0_i32_8 = arith.constant 0 : i32
    %96 = vector.broadcast %c0_i32_8 : i32 to vector<1x2xi32>
    %97 = arith.cmpi eq, %95, %96 : vector<1x2xi32>
    %c0_i32_9 = arith.constant 0 : i32
    %98 = vector.shape_cast %97 : vector<1x2xi1> to vector<1x2xi1>
    %99 = vector.broadcast %98 : vector<1x2xi1> to vector<10x2xi1>
    %100 = vector.broadcast %c0_i32_9 : i32 to vector<10x2xi32>
    %101 = arith.select %99, %100, %92 : vector<10x2xi1>, vector<10x2xi32>
    %c1_i32_10 = arith.constant 1 : i32
    %102 = arith.subi %c1_i32, %c1_i32_10 : i32
    %103 = arith.index_cast %102 : i32 to index
    %c0_11 = arith.constant 0 : index
    %c0_12 = arith.constant 0 : index
    %104 = vector.load %arg8[%103, %c0_11, %c0_12] : memref<8x10x2xi32, #tpu.memory_space<vmem>>, vector<1x10x2xi32>
    %105 = vector.shape_cast %104 : vector<1x10x2xi32> to vector<10x2xi32>
    %106 = vector.shape_cast %101 : vector<10x2xi32> to vector<1x10x2xi32>
    tpu.vector_store %arg8[%103, %c0_11, %c0_12], %106 {strides = array<i32>} : memref<8x10x2xi32, #tpu.memory_space<vmem>>, vector<1x10x2xi32>,
    %107 = arith.index_cast %c1_i32 : i32 to index
    %c0_13 = arith.constant 0 : index
    %c0_14 = arith.constant 0 : index
    %108 = vector.load %arg1[%107, %c0_13, %c0_14] : memref<8x10x2xf32, #tpu.memory_space<vmem>>, vector<1x10x2xf32>
    %109 = vector.shape_cast %108 : vector<1x10x2xf32> to vector<10x2xf32>
    %110 = arith.addf %90, %109 : vector<10x2xf32>
    %c0_i32_15 = arith.constant 0 : i32
    %111 = vector.broadcast %c0_i32_15 : i32 to vector<1x2xi32>
    %112 = arith.cmpi ne, %95, %111 : vector<1x2xi32>
    %113 = vector.shape_cast %112 : vector<1x2xi1> to vector<1x2xi1>
    %114 = vector.broadcast %113 : vector<1x2xi1> to vector<10x2xi1>
    %115 = arith.select %114, %110, %16 : vector<10x2xi1>, vector<10x2xf32>
    %c2_i32_16 = arith.constant 2 : i32
    %116 = vector.extract_strided_slice %115 {offsets = [0, 0], sizes = [1, 2], strides = [1, 1]} : vector<10x2xf32> to vector<1x2xf32>
    %117 = vector.broadcast %1 : vector<10x1xf32> to vector<10x2xf32>
    %118 = vector.broadcast %116 : vector<1x2xf32> to vector<10x2xf32>
    %119 = arith.addf %117, %118 : vector<10x2xf32>
    %120 = vector.extract_strided_slice %115 {offsets = [1, 0], sizes = [1, 2], strides = [1, 1]} : vector<10x2xf32> to vector<1x2xf32>
    %121 = vector.broadcast %2 : vector<10x1xf32> to vector<10x2xf32>
    %122 = vector.broadcast %120 : vector<1x2xf32> to vector<10x2xf32>
    %123 = arith.addf %121, %122 : vector<10x2xf32>
    %124 = arith.cmpf ogt, %123, %119 : vector<10x2xf32>
    %125 = arith.select %124, %123, %119 : vector<10x2xi1>, vector<10x2xf32>
    %c1_i32_17 = arith.constant 1 : i32
    %126 = vector.broadcast %c1_i32_17 : i32 to vector<10x2xi32>
    %127 = arith.select %124, %126, %11 : vector<10x2xi1>, vector<10x2xi32>
    %128 = vector.extract_strided_slice %115 {offsets = [2, 0], sizes = [1, 2], strides = [1, 1]} : vector<10x2xf32> to vector<1x2xf32>
    %129 = vector.broadcast %3 : vector<10x1xf32> to vector<10x2xf32>
    %130 = vector.broadcast %128 : vector<1x2xf32> to vector<10x2xf32>
    %131 = arith.addf %129, %130 : vector<10x2xf32>
    %132 = arith.cmpf ogt, %131, %125 : vector<10x2xf32>
    %133 = arith.select %132, %131, %125 : vector<10x2xi1>, vector<10x2xf32>
    %c2_i32_18 = arith.constant 2 : i32
    %134 = vector.broadcast %c2_i32_18 : i32 to vector<10x2xi32>
    %135 = arith.select %132, %134, %127 : vector<10x2xi1>, vector<10x2xi32>
    %136 = vector.extract_strided_slice %115 {offsets = [3, 0], sizes = [1, 2], strides = [1, 1]} : vector<10x2xf32> to vector<1x2xf32>
    %137 = vector.broadcast %4 : vector<10x1xf32> to vector<10x2xf32>
    %138 = vector.broadcast %136 : vector<1x2xf32> to vector<10x2xf32>
    %139 = arith.addf %137, %138 : vector<10x2xf32>
    %140 = arith.cmpf ogt, %139, %133 : vector<10x2xf32>
    %141 = arith.select %140, %139, %133 : vector<10x2xi1>, vector<10x2xf32>
    %c3_i32_19 = arith.constant 3 : i32
    %142 = vector.broadcast %c3_i32_19 : i32 to vector<10x2xi32>
    %143 = arith.select %140, %142, %135 : vector<10x2xi1>, vector<10x2xi32>
    %144 = vector.extract_strided_slice %115 {offsets = [4, 0], sizes = [1, 2], strides = [1, 1]} : vector<10x2xf32> to vector<1x2xf32>
    %145 = vector.broadcast %5 : vector<10x1xf32> to vector<10x2xf32>
    %146 = vector.broadcast %144 : vector<1x2xf32> to vector<10x2xf32>
    %147 = arith.addf %145, %146 : vector<10x2xf32>
    %148 = arith.cmpf ogt, %147, %141 : vector<10x2xf32>
    %149 = arith.select %148, %147, %141 : vector<10x2xi1>, vector<10x2xf32>
    %c4_i32_20 = arith.constant 4 : i32
    %150 = vector.broadcast %c4_i32_20 : i32 to vector<10x2xi32>
    %151 = arith.select %148, %150, %143 : vector<10x2xi1>, vector<10x2xi32>
    %152 = vector.extract_strided_slice %115 {offsets = [5, 0], sizes = [1, 2], strides = [1, 1]} : vector<10x2xf32> to vector<1x2xf32>
    %153 = vector.broadcast %6 : vector<10x1xf32> to vector<10x2xf32>
    %154 = vector.broadcast %152 : vector<1x2xf32> to vector<10x2xf32>
    %155 = arith.addf %153, %154 : vector<10x2xf32>
    %156 = arith.cmpf ogt, %155, %149 : vector<10x2xf32>
    %157 = arith.select %156, %155, %149 : vector<10x2xi1>, vector<10x2xf32>
    %c5_i32_21 = arith.constant 5 : i32
    %158 = vector.broadcast %c5_i32_21 : i32 to vector<10x2xi32>
    %159 = arith.select %156, %158, %151 : vector<10x2xi1>, vector<10x2xi32>
    %160 = vector.extract_strided_slice %115 {offsets = [6, 0], sizes = [1, 2], strides = [1, 1]} : vector<10x2xf32> to vector<1x2xf32>
    %161 = vector.broadcast %7 : vector<10x1xf32> to vector<10x2xf32>
    %162 = vector.broadcast %160 : vector<1x2xf32> to vector<10x2xf32>
    %163 = arith.addf %161, %162 : vector<10x2xf32>
    %164 = arith.cmpf ogt, %163, %157 : vector<10x2xf32>
    %165 = arith.select %164, %163, %157 : vector<10x2xi1>, vector<10x2xf32>
    %c6_i32_22 = arith.constant 6 : i32
    %166 = vector.broadcast %c6_i32_22 : i32 to vector<10x2xi32>
    %167 = arith.select %164, %166, %159 : vector<10x2xi1>, vector<10x2xi32>
    %168 = vector.extract_strided_slice %115 {offsets = [7, 0], sizes = [1, 2], strides = [1, 1]} : vector<10x2xf32> to vector<1x2xf32>
    %169 = vector.broadcast %8 : vector<10x1xf32> to vector<10x2xf32>
    %170 = vector.broadcast %168 : vector<1x2xf32> to vector<10x2xf32>
    %171 = arith.addf %169, %170 : vector<10x2xf32>
    %172 = arith.cmpf ogt, %171, %165 : vector<10x2xf32>
    %173 = arith.select %172, %171, %165 : vector<10x2xi1>, vector<10x2xf32>
    %c7_i32_23 = arith.constant 7 : i32
    %174 = vector.broadcast %c7_i32_23 : i32 to vector<10x2xi32>
    %175 = arith.select %172, %174, %167 : vector<10x2xi1>, vector<10x2xi32>
    %176 = vector.extract_strided_slice %115 {offsets = [8, 0], sizes = [1, 2], strides = [1, 1]} : vector<10x2xf32> to vector<1x2xf32>
    %177 = vector.broadcast %9 : vector<10x1xf32> to vector<10x2xf32>
    %178 = vector.broadcast %176 : vector<1x2xf32> to vector<10x2xf32>
    %179 = arith.addf %177, %178 : vector<10x2xf32>
    %180 = arith.cmpf ogt, %179, %173 : vector<10x2xf32>
    %181 = arith.select %180, %179, %173 : vector<10x2xi1>, vector<10x2xf32>
    %c8_i32_24 = arith.constant 8 : i32
    %182 = vector.broadcast %c8_i32_24 : i32 to vector<10x2xi32>
    %183 = arith.select %180, %182, %175 : vector<10x2xi1>, vector<10x2xi32>
    %184 = vector.extract_strided_slice %115 {offsets = [9, 0], sizes = [1, 2], strides = [1, 1]} : vector<10x2xf32> to vector<1x2xf32>
    %185 = vector.broadcast %10 : vector<10x1xf32> to vector<10x2xf32>
    %186 = vector.broadcast %184 : vector<1x2xf32> to vector<10x2xf32>
    %187 = arith.addf %185, %186 : vector<10x2xf32>
    %188 = arith.cmpf ogt, %187, %181 : vector<10x2xf32>
    %189 = arith.select %188, %187, %181 : vector<10x2xi1>, vector<10x2xf32>
    %c9_i32_25 = arith.constant 9 : i32
    %190 = vector.broadcast %c9_i32_25 : i32 to vector<10x2xi32>
    %191 = arith.select %188, %190, %183 : vector<10x2xi1>, vector<10x2xi32>
    %192 = arith.index_cast %c2_i32_16 : i32 to index
    %c0_26 = arith.constant 0 : index
    %c0_27 = arith.constant 0 : index
    %193 = vector.load %arg2[%192, %c0_26, %c0_27] : memref<8x1x2xi32, #tpu.memory_space<vmem>>, vector<1x1x2xi32>
    %194 = vector.shape_cast %193 : vector<1x1x2xi32> to vector<1x2xi32>
    %c0_i32_28 = arith.constant 0 : i32
    %195 = vector.broadcast %c0_i32_28 : i32 to vector<1x2xi32>
    %196 = arith.cmpi eq, %194, %195 : vector<1x2xi32>
    %c0_i32_29 = arith.constant 0 : i32
    %197 = vector.shape_cast %196 : vector<1x2xi1> to vector<1x2xi1>
    %198 = vector.broadcast %197 : vector<1x2xi1> to vector<10x2xi1>
    %199 = vector.broadcast %c0_i32_29 : i32 to vector<10x2xi32>
    %200 = arith.select %198, %199, %191 : vector<10x2xi1>, vector<10x2xi32>
    %c1_i32_30 = arith.constant 1 : i32
    %201 = arith.subi %c2_i32_16, %c1_i32_30 : i32
    %202 = arith.index_cast %201 : i32 to index
    %c0_31 = arith.constant 0 : index
    %c0_32 = arith.constant 0 : index
    %203 = vector.load %arg8[%202, %c0_31, %c0_32] : memref<8x10x2xi32, #tpu.memory_space<vmem>>, vector<1x10x2xi32>
    %204 = vector.shape_cast %203 : vector<1x10x2xi32> to vector<10x2xi32>
    %205 = vector.shape_cast %200 : vector<10x2xi32> to vector<1x10x2xi32>
    tpu.vector_store %arg8[%202, %c0_31, %c0_32], %205 {strides = array<i32>} : memref<8x10x2xi32, #tpu.memory_space<vmem>>, vector<1x10x2xi32>,
    %206 = arith.index_cast %c2_i32_16 : i32 to index
    %c0_33 = arith.constant 0 : index
    %c0_34 = arith.constant 0 : index
    %207 = vector.load %arg1[%206, %c0_33, %c0_34] : memref<8x10x2xf32, #tpu.memory_space<vmem>>, vector<1x10x2xf32>
    %208 = vector.shape_cast %207 : vector<1x10x2xf32> to vector<10x2xf32>
    %209 = arith.addf %189, %208 : vector<10x2xf32>
    %c0_i32_35 = arith.constant 0 : i32
    %210 = vector.broadcast %c0_i32_35 : i32 to vector<1x2xi32>
    %211 = arith.cmpi ne, %194, %210 : vector<1x2xi32>
    %212 = vector.shape_cast %211 : vector<1x2xi1> to vector<1x2xi1>
    %213 = vector.broadcast %212 : vector<1x2xi1> to vector<10x2xi1>
    %214 = arith.select %213, %209, %115 : vector<10x2xi1>, vector<10x2xf32>
    %c3_i32_36 = arith.constant 3 : i32
    %215 = vector.extract_strided_slice %214 {offsets = [0, 0], sizes = [1, 2], strides = [1, 1]} : vector<10x2xf32> to vector<1x2xf32>
    %216 = vector.broadcast %1 : vector<10x1xf32> to vector<10x2xf32>
    %217 = vector.broadcast %215 : vector<1x2xf32> to vector<10x2xf32>
    %218 = arith.addf %216, %217 : vector<10x2xf32>
    %219 = vector.extract_strided_slice %214 {offsets = [1, 0], sizes = [1, 2], strides = [1, 1]} : vector<10x2xf32> to vector<1x2xf32>
    %220 = vector.broadcast %2 : vector<10x1xf32> to vector<10x2xf32>
    %221 = vector.broadcast %219 : vector<1x2xf32> to vector<10x2xf32>
    %222 = arith.addf %220, %221 : vector<10x2xf32>
    %223 = arith.cmpf ogt, %222, %218 : vector<10x2xf32>
    %224 = arith.select %223, %222, %218 : vector<10x2xi1>, vector<10x2xf32>
    %c1_i32_37 = arith.constant 1 : i32
    %225 = vector.broadcast %c1_i32_37 : i32 to vector<10x2xi32>
    %226 = arith.select %223, %225, %11 : vector<10x2xi1>, vector<10x2xi32>
    %227 = vector.extract_strided_slice %214 {offsets = [2, 0], sizes = [1, 2], strides = [1, 1]} : vector<10x2xf32> to vector<1x2xf32>
    %228 = vector.broadcast %3 : vector<10x1xf32> to vector<10x2xf32>
    %229 = vector.broadcast %227 : vector<1x2xf32> to vector<10x2xf32>
    %230 = arith.addf %228, %229 : vector<10x2xf32>
    %231 = arith.cmpf ogt, %230, %224 : vector<10x2xf32>
    %232 = arith.select %231, %230, %224 : vector<10x2xi1>, vector<10x2xf32>
    %c2_i32_38 = arith.constant 2 : i32
    %233 = vector.broadcast %c2_i32_38 : i32 to vector<10x2xi32>
    %234 = arith.select %231, %233, %226 : vector<10x2xi1>, vector<10x2xi32>
    %235 = vector.extract_strided_slice %214 {offsets = [3, 0], sizes = [1, 2], strides = [1, 1]} : vector<10x2xf32> to vector<1x2xf32>
    %236 = vector.broadcast %4 : vector<10x1xf32> to vector<10x2xf32>
    %237 = vector.broadcast %235 : vector<1x2xf32> to vector<10x2xf32>
    %238 = arith.addf %236, %237 : vector<10x2xf32>
    %239 = arith.cmpf ogt, %238, %232 : vector<10x2xf32>
    %240 = arith.select %239, %238, %232 : vector<10x2xi1>, vector<10x2xf32>
    %c3_i32_39 = arith.constant 3 : i32
    %241 = vector.broadcast %c3_i32_39 : i32 to vector<10x2xi32>
    %242 = arith.select %239, %241, %234 : vector<10x2xi1>, vector<10x2xi32>
    %243 = vector.extract_strided_slice %214 {offsets = [4, 0], sizes = [1, 2], strides = [1, 1]} : vector<10x2xf32> to vector<1x2xf32>
    %244 = vector.broadcast %5 : vector<10x1xf32> to vector<10x2xf32>
    %245 = vector.broadcast %243 : vector<1x2xf32> to vector<10x2xf32>
    %246 = arith.addf %244, %245 : vector<10x2xf32>
    %247 = arith.cmpf ogt, %246, %240 : vector<10x2xf32>
    %248 = arith.select %247, %246, %240 : vector<10x2xi1>, vector<10x2xf32>
    %c4_i32_40 = arith.constant 4 : i32
    %249 = vector.broadcast %c4_i32_40 : i32 to vector<10x2xi32>
    %250 = arith.select %247, %249, %242 : vector<10x2xi1>, vector<10x2xi32>
    %251 = vector.extract_strided_slice %214 {offsets = [5, 0], sizes = [1, 2], strides = [1, 1]} : vector<10x2xf32> to vector<1x2xf32>
    %252 = vector.broadcast %6 : vector<10x1xf32> to vector<10x2xf32>
    %253 = vector.broadcast %251 : vector<1x2xf32> to vector<10x2xf32>
    %254 = arith.addf %252, %253 : vector<10x2xf32>
    %255 = arith.cmpf ogt, %254, %248 : vector<10x2xf32>
    %256 = arith.select %255, %254, %248 : vector<10x2xi1>, vector<10x2xf32>
    %c5_i32_41 = arith.constant 5 : i32
    %257 = vector.broadcast %c5_i32_41 : i32 to vector<10x2xi32>
    %258 = arith.select %255, %257, %250 : vector<10x2xi1>, vector<10x2xi32>
    %259 = vector.extract_strided_slice %214 {offsets = [6, 0], sizes = [1, 2], strides = [1, 1]} : vector<10x2xf32> to vector<1x2xf32>
    %260 = vector.broadcast %7 : vector<10x1xf32> to vector<10x2xf32>
    %261 = vector.broadcast %259 : vector<1x2xf32> to vector<10x2xf32>
    %262 = arith.addf %260, %261 : vector<10x2xf32>
    %263 = arith.cmpf ogt, %262, %256 : vector<10x2xf32>
    %264 = arith.select %263, %262, %256 : vector<10x2xi1>, vector<10x2xf32>
    %c6_i32_42 = arith.constant 6 : i32
    %265 = vector.broadcast %c6_i32_42 : i32 to vector<10x2xi32>
    %266 = arith.select %263, %265, %258 : vector<10x2xi1>, vector<10x2xi32>
    %267 = vector.extract_strided_slice %214 {offsets = [7, 0], sizes = [1, 2], strides = [1, 1]} : vector<10x2xf32> to vector<1x2xf32>
    %268 = vector.broadcast %8 : vector<10x1xf32> to vector<10x2xf32>
    %269 = vector.broadcast %267 : vector<1x2xf32> to vector<10x2xf32>
    %270 = arith.addf %268, %269 : vector<10x2xf32>
    %271 = arith.cmpf ogt, %270, %264 : vector<10x2xf32>
    %272 = arith.select %271, %270, %264 : vector<10x2xi1>, vector<10x2xf32>
    %c7_i32_43 = arith.constant 7 : i32
    %273 = vector.broadcast %c7_i32_43 : i32 to vector<10x2xi32>
    %274 = arith.select %271, %273, %266 : vector<10x2xi1>, vector<10x2xi32>
    %275 = vector.extract_strided_slice %214 {offsets = [8, 0], sizes = [1, 2], strides = [1, 1]} : vector<10x2xf32> to vector<1x2xf32>
    %276 = vector.broadcast %9 : vector<10x1xf32> to vector<10x2xf32>
    %277 = vector.broadcast %275 : vector<1x2xf32> to vector<10x2xf32>
    %278 = arith.addf %276, %277 : vector<10x2xf32>
    %279 = arith.cmpf ogt, %278, %272 : vector<10x2xf32>
    %280 = arith.select %279, %278, %272 : vector<10x2xi1>, vector<10x2xf32>
    %c8_i32_44 = arith.constant 8 : i32
    %281 = vector.broadcast %c8_i32_44 : i32 to vector<10x2xi32>
    %282 = arith.select %279, %281, %274 : vector<10x2xi1>, vector<10x2xi32>
    %283 = vector.extract_strided_slice %214 {offsets = [9, 0], sizes = [1, 2], strides = [1, 1]} : vector<10x2xf32> to vector<1x2xf32>
    %284 = vector.broadcast %10 : vector<10x1xf32> to vector<10x2xf32>
    %285 = vector.broadcast %283 : vector<1x2xf32> to vector<10x2xf32>
    %286 = arith.addf %284, %285 : vector<10x2xf32>
    %287 = arith.cmpf ogt, %286, %280 : vector<10x2xf32>
    %288 = arith.select %287, %286, %280 : vector<10x2xi1>, vector<10x2xf32>
    %c9_i32_45 = arith.constant 9 : i32
    %289 = vector.broadcast %c9_i32_45 : i32 to vector<10x2xi32>
    %290 = arith.select %287, %289, %282 : vector<10x2xi1>, vector<10x2xi32>
    %291 = arith.index_cast %c3_i32_36 : i32 to index
    %c0_46 = arith.constant 0 : index
    %c0_47 = arith.constant 0 : index
    %292 = vector.load %arg2[%291, %c0_46, %c0_47] : memref<8x1x2xi32, #tpu.memory_space<vmem>>, vector<1x1x2xi32>
    %293 = vector.shape_cast %292 : vector<1x1x2xi32> to vector<1x2xi32>
    %c0_i32_48 = arith.constant 0 : i32
    %294 = vector.broadcast %c0_i32_48 : i32 to vector<1x2xi32>
    %295 = arith.cmpi eq, %293, %294 : vector<1x2xi32>
    %c0_i32_49 = arith.constant 0 : i32
    %296 = vector.shape_cast %295 : vector<1x2xi1> to vector<1x2xi1>
    %297 = vector.broadcast %296 : vector<1x2xi1> to vector<10x2xi1>
    %298 = vector.broadcast %c0_i32_49 : i32 to vector<10x2xi32>
    %299 = arith.select %297, %298, %290 : vector<10x2xi1>, vector<10x2xi32>
    %c1_i32_50 = arith.constant 1 : i32
    %300 = arith.subi %c3_i32_36, %c1_i32_50 : i32
    %301 = arith.index_cast %300 : i32 to index
    %c0_51 = arith.constant 0 : index
    %c0_52 = arith.constant 0 : index
    %302 = vector.load %arg8[%301, %c0_51, %c0_52] : memref<8x10x2xi32, #tpu.memory_space<vmem>>, vector<1x10x2xi32>
    %303 = vector.shape_cast %302 : vector<1x10x2xi32> to vector<10x2xi32>
    %304 = vector.shape_cast %299 : vector<10x2xi32> to vector<1x10x2xi32>
    tpu.vector_store %arg8[%301, %c0_51, %c0_52], %304 {strides = array<i32>} : memref<8x10x2xi32, #tpu.memory_space<vmem>>, vector<1x10x2xi32>,
    %305 = arith.index_cast %c3_i32_36 : i32 to index
    %c0_53 = arith.constant 0 : index
    %c0_54 = arith.constant 0 : index
    %306 = vector.load %arg1[%305, %c0_53, %c0_54] : memref<8x10x2xf32, #tpu.memory_space<vmem>>, vector<1x10x2xf32>
    %307 = vector.shape_cast %306 : vector<1x10x2xf32> to vector<10x2xf32>
    %308 = arith.addf %288, %307 : vector<10x2xf32>
    %c0_i32_55 = arith.constant 0 : i32
    %309 = vector.broadcast %c0_i32_55 : i32 to vector<1x2xi32>
    %310 = arith.cmpi ne, %293, %309 : vector<1x2xi32>
    %311 = vector.shape_cast %310 : vector<1x2xi1> to vector<1x2xi1>
    %312 = vector.broadcast %311 : vector<1x2xi1> to vector<10x2xi1>
    %313 = arith.select %312, %308, %214 : vector<10x2xi1>, vector<10x2xf32>
    %c4_i32_56 = arith.constant 4 : i32
    %314 = vector.extract_strided_slice %313 {offsets = [0, 0], sizes = [1, 2], strides = [1, 1]} : vector<10x2xf32> to vector<1x2xf32>
    %315 = vector.broadcast %1 : vector<10x1xf32> to vector<10x2xf32>
    %316 = vector.broadcast %314 : vector<1x2xf32> to vector<10x2xf32>
    %317 = arith.addf %315, %316 : vector<10x2xf32>
    %318 = vector.extract_strided_slice %313 {offsets = [1, 0], sizes = [1, 2], strides = [1, 1]} : vector<10x2xf32> to vector<1x2xf32>
    %319 = vector.broadcast %2 : vector<10x1xf32> to vector<10x2xf32>
    %320 = vector.broadcast %318 : vector<1x2xf32> to vector<10x2xf32>
    %321 = arith.addf %319, %320 : vector<10x2xf32>
    %322 = arith.cmpf ogt, %321, %317 : vector<10x2xf32>
    %323 = arith.select %322, %321, %317 : vector<10x2xi1>, vector<10x2xf32>
    %c1_i32_57 = arith.constant 1 : i32
    %324 = vector.broadcast %c1_i32_57 : i32 to vector<10x2xi32>
    %325 = arith.select %322, %324, %11 : vector<10x2xi1>, vector<10x2xi32>
    %326 = vector.extract_strided_slice %313 {offsets = [2, 0], sizes = [1, 2], strides = [1, 1]} : vector<10x2xf32> to vector<1x2xf32>
    %327 = vector.broadcast %3 : vector<10x1xf32> to vector<10x2xf32>
    %328 = vector.broadcast %326 : vector<1x2xf32> to vector<10x2xf32>
    %329 = arith.addf %327, %328 : vector<10x2xf32>
    %330 = arith.cmpf ogt, %329, %323 : vector<10x2xf32>
    %331 = arith.select %330, %329, %323 : vector<10x2xi1>, vector<10x2xf32>
    %c2_i32_58 = arith.constant 2 : i32
    %332 = vector.broadcast %c2_i32_58 : i32 to vector<10x2xi32>
    %333 = arith.select %330, %332, %325 : vector<10x2xi1>, vector<10x2xi32>
    %334 = vector.extract_strided_slice %313 {offsets = [3, 0], sizes = [1, 2], strides = [1, 1]} : vector<10x2xf32> to vector<1x2xf32>
    %335 = vector.broadcast %4 : vector<10x1xf32> to vector<10x2xf32>
    %336 = vector.broadcast %334 : vector<1x2xf32> to vector<10x2xf32>
    %337 = arith.addf %335, %336 : vector<10x2xf32>
    %338 = arith.cmpf ogt, %337, %331 : vector<10x2xf32>
    %339 = arith.select %338, %337, %331 : vector<10x2xi1>, vector<10x2xf32>
    %c3_i32_59 = arith.constant 3 : i32
    %340 = vector.broadcast %c3_i32_59 : i32 to vector<10x2xi32>
    %341 = arith.select %338, %340, %333 : vector<10x2xi1>, vector<10x2xi32>
    %342 = vector.extract_strided_slice %313 {offsets = [4, 0], sizes = [1, 2], strides = [1, 1]} : vector<10x2xf32> to vector<1x2xf32>
    %343 = vector.broadcast %5 : vector<10x1xf32> to vector<10x2xf32>
    %344 = vector.broadcast %342 : vector<1x2xf32> to vector<10x2xf32>
    %345 = arith.addf %343, %344 : vector<10x2xf32>
    %346 = arith.cmpf ogt, %345, %339 : vector<10x2xf32>
    %347 = arith.select %346, %345, %339 : vector<10x2xi1>, vector<10x2xf32>
    %c4_i32_60 = arith.constant 4 : i32
    %348 = vector.broadcast %c4_i32_60 : i32 to vector<10x2xi32>
    %349 = arith.select %346, %348, %341 : vector<10x2xi1>, vector<10x2xi32>
    %350 = vector.extract_strided_slice %313 {offsets = [5, 0], sizes = [1, 2], strides = [1, 1]} : vector<10x2xf32> to vector<1x2xf32>
    %351 = vector.broadcast %6 : vector<10x1xf32> to vector<10x2xf32>
    %352 = vector.broadcast %350 : vector<1x2xf32> to vector<10x2xf32>
    %353 = arith.addf %351, %352 : vector<10x2xf32>
    %354 = arith.cmpf ogt, %353, %347 : vector<10x2xf32>
    %355 = arith.select %354, %353, %347 : vector<10x2xi1>, vector<10x2xf32>
    %c5_i32_61 = arith.constant 5 : i32
    %356 = vector.broadcast %c5_i32_61 : i32 to vector<10x2xi32>
    %357 = arith.select %354, %356, %349 : vector<10x2xi1>, vector<10x2xi32>
    %358 = vector.extract_strided_slice %313 {offsets = [6, 0], sizes = [1, 2], strides = [1, 1]} : vector<10x2xf32> to vector<1x2xf32>
    %359 = vector.broadcast %7 : vector<10x1xf32> to vector<10x2xf32>
    %360 = vector.broadcast %358 : vector<1x2xf32> to vector<10x2xf32>
    %361 = arith.addf %359, %360 : vector<10x2xf32>
    %362 = arith.cmpf ogt, %361, %355 : vector<10x2xf32>
    %363 = arith.select %362, %361, %355 : vector<10x2xi1>, vector<10x2xf32>
    %c6_i32_62 = arith.constant 6 : i32
    %364 = vector.broadcast %c6_i32_62 : i32 to vector<10x2xi32>
    %365 = arith.select %362, %364, %357 : vector<10x2xi1>, vector<10x2xi32>
    %366 = vector.extract_strided_slice %313 {offsets = [7, 0], sizes = [1, 2], strides = [1, 1]} : vector<10x2xf32> to vector<1x2xf32>
    %367 = vector.broadcast %8 : vector<10x1xf32> to vector<10x2xf32>
    %368 = vector.broadcast %366 : vector<1x2xf32> to vector<10x2xf32>
    %369 = arith.addf %367, %368 : vector<10x2xf32>
    %370 = arith.cmpf ogt, %369, %363 : vector<10x2xf32>
    %371 = arith.select %370, %369, %363 : vector<10x2xi1>, vector<10x2xf32>
    %c7_i32_63 = arith.constant 7 : i32
    %372 = vector.broadcast %c7_i32_63 : i32 to vector<10x2xi32>
    %373 = arith.select %370, %372, %365 : vector<10x2xi1>, vector<10x2xi32>
    %374 = vector.extract_strided_slice %313 {offsets = [8, 0], sizes = [1, 2], strides = [1, 1]} : vector<10x2xf32> to vector<1x2xf32>
    %375 = vector.broadcast %9 : vector<10x1xf32> to vector<10x2xf32>
    %376 = vector.broadcast %374 : vector<1x2xf32> to vector<10x2xf32>
    %377 = arith.addf %375, %376 : vector<10x2xf32>
    %378 = arith.cmpf ogt, %377, %371 : vector<10x2xf32>
    %379 = arith.select %378, %377, %371 : vector<10x2xi1>, vector<10x2xf32>
    %c8_i32_64 = arith.constant 8 : i32
    %380 = vector.broadcast %c8_i32_64 : i32 to vector<10x2xi32>
    %381 = arith.select %378, %380, %373 : vector<10x2xi1>, vector<10x2xi32>
    %382 = vector.extract_strided_slice %313 {offsets = [9, 0], sizes = [1, 2], strides = [1, 1]} : vector<10x2xf32> to vector<1x2xf32>
    %383 = vector.broadcast %10 : vector<10x1xf32> to vector<10x2xf32>
    %384 = vector.broadcast %382 : vector<1x2xf32> to vector<10x2xf32>
    %385 = arith.addf %383, %384 : vector<10x2xf32>
    %386 = arith.cmpf ogt, %385, %379 : vector<10x2xf32>
    %387 = arith.select %386, %385, %379 : vector<10x2xi1>, vector<10x2xf32>
    %c9_i32_65 = arith.constant 9 : i32
    %388 = vector.broadcast %c9_i32_65 : i32 to vector<10x2xi32>
    %389 = arith.select %386, %388, %381 : vector<10x2xi1>, vector<10x2xi32>
    %390 = arith.index_cast %c4_i32_56 : i32 to index
    %c0_66 = arith.constant 0 : index
    %c0_67 = arith.constant 0 : index
    %391 = vector.load %arg2[%390, %c0_66, %c0_67] : memref<8x1x2xi32, #tpu.memory_space<vmem>>, vector<1x1x2xi32>
    %392 = vector.shape_cast %391 : vector<1x1x2xi32> to vector<1x2xi32>
    %c0_i32_68 = arith.constant 0 : i32
    %393 = vector.broadcast %c0_i32_68 : i32 to vector<1x2xi32>
    %394 = arith.cmpi eq, %392, %393 : vector<1x2xi32>
    %c0_i32_69 = arith.constant 0 : i32
    %395 = vector.shape_cast %394 : vector<1x2xi1> to vector<1x2xi1>
    %396 = vector.broadcast %395 : vector<1x2xi1> to vector<10x2xi1>
    %397 = vector.broadcast %c0_i32_69 : i32 to vector<10x2xi32>
    %398 = arith.select %396, %397, %389 : vector<10x2xi1>, vector<10x2xi32>
    %c1_i32_70 = arith.constant 1 : i32
    %399 = arith.subi %c4_i32_56, %c1_i32_70 : i32
    %400 = arith.index_cast %399 : i32 to index
    %c0_71 = arith.constant 0 : index
    %c0_72 = arith.constant 0 : index
    %401 = vector.load %arg8[%400, %c0_71, %c0_72] : memref<8x10x2xi32, #tpu.memory_space<vmem>>, vector<1x10x2xi32>
    %402 = vector.shape_cast %401 : vector<1x10x2xi32> to vector<10x2xi32>
    %403 = vector.shape_cast %398 : vector<10x2xi32> to vector<1x10x2xi32>
    tpu.vector_store %arg8[%400, %c0_71, %c0_72], %403 {strides = array<i32>} : memref<8x10x2xi32, #tpu.memory_space<vmem>>, vector<1x10x2xi32>,
    %404 = arith.index_cast %c4_i32_56 : i32 to index
    %c0_73 = arith.constant 0 : index
    %c0_74 = arith.constant 0 : index
    %405 = vector.load %arg1[%404, %c0_73, %c0_74] : memref<8x10x2xf32, #tpu.memory_space<vmem>>, vector<1x10x2xf32>
    %406 = vector.shape_cast %405 : vector<1x10x2xf32> to vector<10x2xf32>
    %407 = arith.addf %387, %406 : vector<10x2xf32>
    %c0_i32_75 = arith.constant 0 : i32
    %408 = vector.broadcast %c0_i32_75 : i32 to vector<1x2xi32>
    %409 = arith.cmpi ne, %392, %408 : vector<1x2xi32>
    %410 = vector.shape_cast %409 : vector<1x2xi1> to vector<1x2xi1>
    %411 = vector.broadcast %410 : vector<1x2xi1> to vector<10x2xi1>
    %412 = arith.select %411, %407, %313 : vector<10x2xi1>, vector<10x2xf32>
    %c5_i32_76 = arith.constant 5 : i32
    %413 = vector.extract_strided_slice %412 {offsets = [0, 0], sizes = [1, 2], strides = [1, 1]} : vector<10x2xf32> to vector<1x2xf32>
    %414 = vector.broadcast %1 : vector<10x1xf32> to vector<10x2xf32>
    %415 = vector.broadcast %413 : vector<1x2xf32> to vector<10x2xf32>
    %416 = arith.addf %414, %415 : vector<10x2xf32>
    %417 = vector.extract_strided_slice %412 {offsets = [1, 0], sizes = [1, 2], strides = [1, 1]} : vector<10x2xf32> to vector<1x2xf32>
    %418 = vector.broadcast %2 : vector<10x1xf32> to vector<10x2xf32>
    %419 = vector.broadcast %417 : vector<1x2xf32> to vector<10x2xf32>
    %420 = arith.addf %418, %419 : vector<10x2xf32>
    %421 = arith.cmpf ogt, %420, %416 : vector<10x2xf32>
    %422 = arith.select %421, %420, %416 : vector<10x2xi1>, vector<10x2xf32>
    %c1_i32_77 = arith.constant 1 : i32
    %423 = vector.broadcast %c1_i32_77 : i32 to vector<10x2xi32>
    %424 = arith.select %421, %423, %11 : vector<10x2xi1>, vector<10x2xi32>
    %425 = vector.extract_strided_slice %412 {offsets = [2, 0], sizes = [1, 2], strides = [1, 1]} : vector<10x2xf32> to vector<1x2xf32>
    %426 = vector.broadcast %3 : vector<10x1xf32> to vector<10x2xf32>
    %427 = vector.broadcast %425 : vector<1x2xf32> to vector<10x2xf32>
    %428 = arith.addf %426, %427 : vector<10x2xf32>
    %429 = arith.cmpf ogt, %428, %422 : vector<10x2xf32>
    %430 = arith.select %429, %428, %422 : vector<10x2xi1>, vector<10x2xf32>
    %c2_i32_78 = arith.constant 2 : i32
    %431 = vector.broadcast %c2_i32_78 : i32 to vector<10x2xi32>
    %432 = arith.select %429, %431, %424 : vector<10x2xi1>, vector<10x2xi32>
    %433 = vector.extract_strided_slice %412 {offsets = [3, 0], sizes = [1, 2], strides = [1, 1]} : vector<10x2xf32> to vector<1x2xf32>
    %434 = vector.broadcast %4 : vector<10x1xf32> to vector<10x2xf32>
    %435 = vector.broadcast %433 : vector<1x2xf32> to vector<10x2xf32>
    %436 = arith.addf %434, %435 : vector<10x2xf32>
    %437 = arith.cmpf ogt, %436, %430 : vector<10x2xf32>
    %438 = arith.select %437, %436, %430 : vector<10x2xi1>, vector<10x2xf32>
    %c3_i32_79 = arith.constant 3 : i32
    %439 = vector.broadcast %c3_i32_79 : i32 to vector<10x2xi32>
    %440 = arith.select %437, %439, %432 : vector<10x2xi1>, vector<10x2xi32>
    %441 = vector.extract_strided_slice %412 {offsets = [4, 0], sizes = [1, 2], strides = [1, 1]} : vector<10x2xf32> to vector<1x2xf32>
    %442 = vector.broadcast %5 : vector<10x1xf32> to vector<10x2xf32>
    %443 = vector.broadcast %441 : vector<1x2xf32> to vector<10x2xf32>
    %444 = arith.addf %442, %443 : vector<10x2xf32>
    %445 = arith.cmpf ogt, %444, %438 : vector<10x2xf32>
    %446 = arith.select %445, %444, %438 : vector<10x2xi1>, vector<10x2xf32>
    %c4_i32_80 = arith.constant 4 : i32
    %447 = vector.broadcast %c4_i32_80 : i32 to vector<10x2xi32>
    %448 = arith.select %445, %447, %440 : vector<10x2xi1>, vector<10x2xi32>
    %449 = vector.extract_strided_slice %412 {offsets = [5, 0], sizes = [1, 2], strides = [1, 1]} : vector<10x2xf32> to vector<1x2xf32>
    %450 = vector.broadcast %6 : vector<10x1xf32> to vector<10x2xf32>
    %451 = vector.broadcast %449 : vector<1x2xf32> to vector<10x2xf32>
    %452 = arith.addf %450, %451 : vector<10x2xf32>
    %453 = arith.cmpf ogt, %452, %446 : vector<10x2xf32>
    %454 = arith.select %453, %452, %446 : vector<10x2xi1>, vector<10x2xf32>
    %c5_i32_81 = arith.constant 5 : i32
    %455 = vector.broadcast %c5_i32_81 : i32 to vector<10x2xi32>
    %456 = arith.select %453, %455, %448 : vector<10x2xi1>, vector<10x2xi32>
    %457 = vector.extract_strided_slice %412 {offsets = [6, 0], sizes = [1, 2], strides = [1, 1]} : vector<10x2xf32> to vector<1x2xf32>
    %458 = vector.broadcast %7 : vector<10x1xf32> to vector<10x2xf32>
    %459 = vector.broadcast %457 : vector<1x2xf32> to vector<10x2xf32>
    %460 = arith.addf %458, %459 : vector<10x2xf32>
    %461 = arith.cmpf ogt, %460, %454 : vector<10x2xf32>
    %462 = arith.select %461, %460, %454 : vector<10x2xi1>, vector<10x2xf32>
    %c6_i32_82 = arith.constant 6 : i32
    %463 = vector.broadcast %c6_i32_82 : i32 to vector<10x2xi32>
    %464 = arith.select %461, %463, %456 : vector<10x2xi1>, vector<10x2xi32>
    %465 = vector.extract_strided_slice %412 {offsets = [7, 0], sizes = [1, 2], strides = [1, 1]} : vector<10x2xf32> to vector<1x2xf32>
    %466 = vector.broadcast %8 : vector<10x1xf32> to vector<10x2xf32>
    %467 = vector.broadcast %465 : vector<1x2xf32> to vector<10x2xf32>
    %468 = arith.addf %466, %467 : vector<10x2xf32>
    %469 = arith.cmpf ogt, %468, %462 : vector<10x2xf32>
    %470 = arith.select %469, %468, %462 : vector<10x2xi1>, vector<10x2xf32>
    %c7_i32_83 = arith.constant 7 : i32
    %471 = vector.broadcast %c7_i32_83 : i32 to vector<10x2xi32>
    %472 = arith.select %469, %471, %464 : vector<10x2xi1>, vector<10x2xi32>
    %473 = vector.extract_strided_slice %412 {offsets = [8, 0], sizes = [1, 2], strides = [1, 1]} : vector<10x2xf32> to vector<1x2xf32>
    %474 = vector.broadcast %9 : vector<10x1xf32> to vector<10x2xf32>
    %475 = vector.broadcast %473 : vector<1x2xf32> to vector<10x2xf32>
    %476 = arith.addf %474, %475 : vector<10x2xf32>
    %477 = arith.cmpf ogt, %476, %470 : vector<10x2xf32>
    %478 = arith.select %477, %476, %470 : vector<10x2xi1>, vector<10x2xf32>
    %c8_i32_84 = arith.constant 8 : i32
    %479 = vector.broadcast %c8_i32_84 : i32 to vector<10x2xi32>
    %480 = arith.select %477, %479, %472 : vector<10x2xi1>, vector<10x2xi32>
    %481 = vector.extract_strided_slice %412 {offsets = [9, 0], sizes = [1, 2], strides = [1, 1]} : vector<10x2xf32> to vector<1x2xf32>
    %482 = vector.broadcast %10 : vector<10x1xf32> to vector<10x2xf32>
    %483 = vector.broadcast %481 : vector<1x2xf32> to vector<10x2xf32>
    %484 = arith.addf %482, %483 : vector<10x2xf32>
    %485 = arith.cmpf ogt, %484, %478 : vector<10x2xf32>
    %486 = arith.select %485, %484, %478 : vector<10x2xi1>, vector<10x2xf32>
    %c9_i32_85 = arith.constant 9 : i32
    %487 = vector.broadcast %c9_i32_85 : i32 to vector<10x2xi32>
    %488 = arith.select %485, %487, %480 : vector<10x2xi1>, vector<10x2xi32>
    %489 = arith.index_cast %c5_i32_76 : i32 to index
    %c0_86 = arith.constant 0 : index
    %c0_87 = arith.constant 0 : index
    %490 = vector.load %arg2[%489, %c0_86, %c0_87] : memref<8x1x2xi32, #tpu.memory_space<vmem>>, vector<1x1x2xi32>
    %491 = vector.shape_cast %490 : vector<1x1x2xi32> to vector<1x2xi32>
    %c0_i32_88 = arith.constant 0 : i32
    %492 = vector.broadcast %c0_i32_88 : i32 to vector<1x2xi32>
    %493 = arith.cmpi eq, %491, %492 : vector<1x2xi32>
    %c0_i32_89 = arith.constant 0 : i32
    %494 = vector.shape_cast %493 : vector<1x2xi1> to vector<1x2xi1>
    %495 = vector.broadcast %494 : vector<1x2xi1> to vector<10x2xi1>
    %496 = vector.broadcast %c0_i32_89 : i32 to vector<10x2xi32>
    %497 = arith.select %495, %496, %488 : vector<10x2xi1>, vector<10x2xi32>
    %c1_i32_90 = arith.constant 1 : i32
    %498 = arith.subi %c5_i32_76, %c1_i32_90 : i32
    %499 = arith.index_cast %498 : i32 to index
    %c0_91 = arith.constant 0 : index
    %c0_92 = arith.constant 0 : index
    %500 = vector.load %arg8[%499, %c0_91, %c0_92] : memref<8x10x2xi32, #tpu.memory_space<vmem>>, vector<1x10x2xi32>
    %501 = vector.shape_cast %500 : vector<1x10x2xi32> to vector<10x2xi32>
    %502 = vector.shape_cast %497 : vector<10x2xi32> to vector<1x10x2xi32>
    tpu.vector_store %arg8[%499, %c0_91, %c0_92], %502 {strides = array<i32>} : memref<8x10x2xi32, #tpu.memory_space<vmem>>, vector<1x10x2xi32>,
    %503 = arith.index_cast %c5_i32_76 : i32 to index
    %c0_93 = arith.constant 0 : index
    %c0_94 = arith.constant 0 : index
    %504 = vector.load %arg1[%503, %c0_93, %c0_94] : memref<8x10x2xf32, #tpu.memory_space<vmem>>, vector<1x10x2xf32>
    %505 = vector.shape_cast %504 : vector<1x10x2xf32> to vector<10x2xf32>
    %506 = arith.addf %486, %505 : vector<10x2xf32>
    %c0_i32_95 = arith.constant 0 : i32
    %507 = vector.broadcast %c0_i32_95 : i32 to vector<1x2xi32>
    %508 = arith.cmpi ne, %491, %507 : vector<1x2xi32>
    %509 = vector.shape_cast %508 : vector<1x2xi1> to vector<1x2xi1>
    %510 = vector.broadcast %509 : vector<1x2xi1> to vector<10x2xi1>
    %511 = arith.select %510, %506, %412 : vector<10x2xi1>, vector<10x2xf32>
    %c6_i32_96 = arith.constant 6 : i32
    %512 = vector.extract_strided_slice %511 {offsets = [0, 0], sizes = [1, 2], strides = [1, 1]} : vector<10x2xf32> to vector<1x2xf32>
    %513 = vector.broadcast %1 : vector<10x1xf32> to vector<10x2xf32>
    %514 = vector.broadcast %512 : vector<1x2xf32> to vector<10x2xf32>
    %515 = arith.addf %513, %514 : vector<10x2xf32>
    %516 = vector.extract_strided_slice %511 {offsets = [1, 0], sizes = [1, 2], strides = [1, 1]} : vector<10x2xf32> to vector<1x2xf32>
    %517 = vector.broadcast %2 : vector<10x1xf32> to vector<10x2xf32>
    %518 = vector.broadcast %516 : vector<1x2xf32> to vector<10x2xf32>
    %519 = arith.addf %517, %518 : vector<10x2xf32>
    %520 = arith.cmpf ogt, %519, %515 : vector<10x2xf32>
    %521 = arith.select %520, %519, %515 : vector<10x2xi1>, vector<10x2xf32>
    %c1_i32_97 = arith.constant 1 : i32
    %522 = vector.broadcast %c1_i32_97 : i32 to vector<10x2xi32>
    %523 = arith.select %520, %522, %11 : vector<10x2xi1>, vector<10x2xi32>
    %524 = vector.extract_strided_slice %511 {offsets = [2, 0], sizes = [1, 2], strides = [1, 1]} : vector<10x2xf32> to vector<1x2xf32>
    %525 = vector.broadcast %3 : vector<10x1xf32> to vector<10x2xf32>
    %526 = vector.broadcast %524 : vector<1x2xf32> to vector<10x2xf32>
    %527 = arith.addf %525, %526 : vector<10x2xf32>
    %528 = arith.cmpf ogt, %527, %521 : vector<10x2xf32>
    %529 = arith.select %528, %527, %521 : vector<10x2xi1>, vector<10x2xf32>
    %c2_i32_98 = arith.constant 2 : i32
    %530 = vector.broadcast %c2_i32_98 : i32 to vector<10x2xi32>
    %531 = arith.select %528, %530, %523 : vector<10x2xi1>, vector<10x2xi32>
    %532 = vector.extract_strided_slice %511 {offsets = [3, 0], sizes = [1, 2], strides = [1, 1]} : vector<10x2xf32> to vector<1x2xf32>
    %533 = vector.broadcast %4 : vector<10x1xf32> to vector<10x2xf32>
    %534 = vector.broadcast %532 : vector<1x2xf32> to vector<10x2xf32>
    %535 = arith.addf %533, %534 : vector<10x2xf32>
    %536 = arith.cmpf ogt, %535, %529 : vector<10x2xf32>
    %537 = arith.select %536, %535, %529 : vector<10x2xi1>, vector<10x2xf32>
    %c3_i32_99 = arith.constant 3 : i32
    %538 = vector.broadcast %c3_i32_99 : i32 to vector<10x2xi32>
    %539 = arith.select %536, %538, %531 : vector<10x2xi1>, vector<10x2xi32>
    %540 = vector.extract_strided_slice %511 {offsets = [4, 0], sizes = [1, 2], strides = [1, 1]} : vector<10x2xf32> to vector<1x2xf32>
    %541 = vector.broadcast %5 : vector<10x1xf32> to vector<10x2xf32>
    %542 = vector.broadcast %540 : vector<1x2xf32> to vector<10x2xf32>
    %543 = arith.addf %541, %542 : vector<10x2xf32>
    %544 = arith.cmpf ogt, %543, %537 : vector<10x2xf32>
    %545 = arith.select %544, %543, %537 : vector<10x2xi1>, vector<10x2xf32>
    %c4_i32_100 = arith.constant 4 : i32
    %546 = vector.broadcast %c4_i32_100 : i32 to vector<10x2xi32>
    %547 = arith.select %544, %546, %539 : vector<10x2xi1>, vector<10x2xi32>
    %548 = vector.extract_strided_slice %511 {offsets = [5, 0], sizes = [1, 2], strides = [1, 1]} : vector<10x2xf32> to vector<1x2xf32>
    %549 = vector.broadcast %6 : vector<10x1xf32> to vector<10x2xf32>
    %550 = vector.broadcast %548 : vector<1x2xf32> to vector<10x2xf32>
    %551 = arith.addf %549, %550 : vector<10x2xf32>
    %552 = arith.cmpf ogt, %551, %545 : vector<10x2xf32>
    %553 = arith.select %552, %551, %545 : vector<10x2xi1>, vector<10x2xf32>
    %c5_i32_101 = arith.constant 5 : i32
    %554 = vector.broadcast %c5_i32_101 : i32 to vector<10x2xi32>
    %555 = arith.select %552, %554, %547 : vector<10x2xi1>, vector<10x2xi32>
    %556 = vector.extract_strided_slice %511 {offsets = [6, 0], sizes = [1, 2], strides = [1, 1]} : vector<10x2xf32> to vector<1x2xf32>
    %557 = vector.broadcast %7 : vector<10x1xf32> to vector<10x2xf32>
    %558 = vector.broadcast %556 : vector<1x2xf32> to vector<10x2xf32>
    %559 = arith.addf %557, %558 : vector<10x2xf32>
    %560 = arith.cmpf ogt, %559, %553 : vector<10x2xf32>
    %561 = arith.select %560, %559, %553 : vector<10x2xi1>, vector<10x2xf32>
    %c6_i32_102 = arith.constant 6 : i32
    %562 = vector.broadcast %c6_i32_102 : i32 to vector<10x2xi32>
    %563 = arith.select %560, %562, %555 : vector<10x2xi1>, vector<10x2xi32>
    %564 = vector.extract_strided_slice %511 {offsets = [7, 0], sizes = [1, 2], strides = [1, 1]} : vector<10x2xf32> to vector<1x2xf32>
    %565 = vector.broadcast %8 : vector<10x1xf32> to vector<10x2xf32>
    %566 = vector.broadcast %564 : vector<1x2xf32> to vector<10x2xf32>
    %567 = arith.addf %565, %566 : vector<10x2xf32>
    %568 = arith.cmpf ogt, %567, %561 : vector<10x2xf32>
    %569 = arith.select %568, %567, %561 : vector<10x2xi1>, vector<10x2xf32>
    %c7_i32_103 = arith.constant 7 : i32
    %570 = vector.broadcast %c7_i32_103 : i32 to vector<10x2xi32>
    %571 = arith.select %568, %570, %563 : vector<10x2xi1>, vector<10x2xi32>
    %572 = vector.extract_strided_slice %511 {offsets = [8, 0], sizes = [1, 2], strides = [1, 1]} : vector<10x2xf32> to vector<1x2xf32>
    %573 = vector.broadcast %9 : vector<10x1xf32> to vector<10x2xf32>
    %574 = vector.broadcast %572 : vector<1x2xf32> to vector<10x2xf32>
    %575 = arith.addf %573, %574 : vector<10x2xf32>
    %576 = arith.cmpf ogt, %575, %569 : vector<10x2xf32>
    %577 = arith.select %576, %575, %569 : vector<10x2xi1>, vector<10x2xf32>
    %c8_i32_104 = arith.constant 8 : i32
    %578 = vector.broadcast %c8_i32_104 : i32 to vector<10x2xi32>
    %579 = arith.select %576, %578, %571 : vector<10x2xi1>, vector<10x2xi32>
    %580 = vector.extract_strided_slice %511 {offsets = [9, 0], sizes = [1, 2], strides = [1, 1]} : vector<10x2xf32> to vector<1x2xf32>
    %581 = vector.broadcast %10 : vector<10x1xf32> to vector<10x2xf32>
    %582 = vector.broadcast %580 : vector<1x2xf32> to vector<10x2xf32>
    %583 = arith.addf %581, %582 : vector<10x2xf32>
    %584 = arith.cmpf ogt, %583, %577 : vector<10x2xf32>
    %585 = arith.select %584, %583, %577 : vector<10x2xi1>, vector<10x2xf32>
    %c9_i32_105 = arith.constant 9 : i32
    %586 = vector.broadcast %c9_i32_105 : i32 to vector<10x2xi32>
    %587 = arith.select %584, %586, %579 : vector<10x2xi1>, vector<10x2xi32>
    %588 = arith.index_cast %c6_i32_96 : i32 to index
    %c0_106 = arith.constant 0 : index
    %c0_107 = arith.constant 0 : index
    %589 = vector.load %arg2[%588, %c0_106, %c0_107] : memref<8x1x2xi32, #tpu.memory_space<vmem>>, vector<1x1x2xi32>
    %590 = vector.shape_cast %589 : vector<1x1x2xi32> to vector<1x2xi32>
    %c0_i32_108 = arith.constant 0 : i32
    %591 = vector.broadcast %c0_i32_108 : i32 to vector<1x2xi32>
    %592 = arith.cmpi eq, %590, %591 : vector<1x2xi32>
    %c0_i32_109 = arith.constant 0 : i32
    %593 = vector.shape_cast %592 : vector<1x2xi1> to vector<1x2xi1>
    %594 = vector.broadcast %593 : vector<1x2xi1> to vector<10x2xi1>
    %595 = vector.broadcast %c0_i32_109 : i32 to vector<10x2xi32>
    %596 = arith.select %594, %595, %587 : vector<10x2xi1>, vector<10x2xi32>
    %c1_i32_110 = arith.constant 1 : i32
    %597 = arith.subi %c6_i32_96, %c1_i32_110 : i32
    %598 = arith.index_cast %597 : i32 to index
    %c0_111 = arith.constant 0 : index
    %c0_112 = arith.constant 0 : index
    %599 = vector.load %arg8[%598, %c0_111, %c0_112] : memref<8x10x2xi32, #tpu.memory_space<vmem>>, vector<1x10x2xi32>
    %600 = vector.shape_cast %599 : vector<1x10x2xi32> to vector<10x2xi32>
    %601 = vector.shape_cast %596 : vector<10x2xi32> to vector<1x10x2xi32>
    tpu.vector_store %arg8[%598, %c0_111, %c0_112], %601 {strides = array<i32>} : memref<8x10x2xi32, #tpu.memory_space<vmem>>, vector<1x10x2xi32>,
    %602 = arith.index_cast %c6_i32_96 : i32 to index
    %c0_113 = arith.constant 0 : index
    %c0_114 = arith.constant 0 : index
    %603 = vector.load %arg1[%602, %c0_113, %c0_114] : memref<8x10x2xf32, #tpu.memory_space<vmem>>, vector<1x10x2xf32>
    %604 = vector.shape_cast %603 : vector<1x10x2xf32> to vector<10x2xf32>
    %605 = arith.addf %585, %604 : vector<10x2xf32>
    %c0_i32_115 = arith.constant 0 : i32
    %606 = vector.broadcast %c0_i32_115 : i32 to vector<1x2xi32>
    %607 = arith.cmpi ne, %590, %606 : vector<1x2xi32>
    %608 = vector.shape_cast %607 : vector<1x2xi1> to vector<1x2xi1>
    %609 = vector.broadcast %608 : vector<1x2xi1> to vector<10x2xi1>
    %610 = arith.select %609, %605, %511 : vector<10x2xi1>, vector<10x2xf32>
    %c7_i32_116 = arith.constant 7 : i32
    %611 = vector.extract_strided_slice %610 {offsets = [0, 0], sizes = [1, 2], strides = [1, 1]} : vector<10x2xf32> to vector<1x2xf32>
    %612 = vector.broadcast %1 : vector<10x1xf32> to vector<10x2xf32>
    %613 = vector.broadcast %611 : vector<1x2xf32> to vector<10x2xf32>
    %614 = arith.addf %612, %613 : vector<10x2xf32>
    %615 = vector.extract_strided_slice %610 {offsets = [1, 0], sizes = [1, 2], strides = [1, 1]} : vector<10x2xf32> to vector<1x2xf32>
    %616 = vector.broadcast %2 : vector<10x1xf32> to vector<10x2xf32>
    %617 = vector.broadcast %615 : vector<1x2xf32> to vector<10x2xf32>
    %618 = arith.addf %616, %617 : vector<10x2xf32>
    %619 = arith.cmpf ogt, %618, %614 : vector<10x2xf32>
    %620 = arith.select %619, %618, %614 : vector<10x2xi1>, vector<10x2xf32>
    %c1_i32_117 = arith.constant 1 : i32
    %621 = vector.broadcast %c1_i32_117 : i32 to vector<10x2xi32>
    %622 = arith.select %619, %621, %11 : vector<10x2xi1>, vector<10x2xi32>
    %623 = vector.extract_strided_slice %610 {offsets = [2, 0], sizes = [1, 2], strides = [1, 1]} : vector<10x2xf32> to vector<1x2xf32>
    %624 = vector.broadcast %3 : vector<10x1xf32> to vector<10x2xf32>
    %625 = vector.broadcast %623 : vector<1x2xf32> to vector<10x2xf32>
    %626 = arith.addf %624, %625 : vector<10x2xf32>
    %627 = arith.cmpf ogt, %626, %620 : vector<10x2xf32>
    %628 = arith.select %627, %626, %620 : vector<10x2xi1>, vector<10x2xf32>
    %c2_i32_118 = arith.constant 2 : i32
    %629 = vector.broadcast %c2_i32_118 : i32 to vector<10x2xi32>
    %630 = arith.select %627, %629, %622 : vector<10x2xi1>, vector<10x2xi32>
    %631 = vector.extract_strided_slice %610 {offsets = [3, 0], sizes = [1, 2], strides = [1, 1]} : vector<10x2xf32> to vector<1x2xf32>
    %632 = vector.broadcast %4 : vector<10x1xf32> to vector<10x2xf32>
    %633 = vector.broadcast %631 : vector<1x2xf32> to vector<10x2xf32>
    %634 = arith.addf %632, %633 : vector<10x2xf32>
    %635 = arith.cmpf ogt, %634, %628 : vector<10x2xf32>
    %636 = arith.select %635, %634, %628 : vector<10x2xi1>, vector<10x2xf32>
    %c3_i32_119 = arith.constant 3 : i32
    %637 = vector.broadcast %c3_i32_119 : i32 to vector<10x2xi32>
    %638 = arith.select %635, %637, %630 : vector<10x2xi1>, vector<10x2xi32>
    %639 = vector.extract_strided_slice %610 {offsets = [4, 0], sizes = [1, 2], strides = [1, 1]} : vector<10x2xf32> to vector<1x2xf32>
    %640 = vector.broadcast %5 : vector<10x1xf32> to vector<10x2xf32>
    %641 = vector.broadcast %639 : vector<1x2xf32> to vector<10x2xf32>
    %642 = arith.addf %640, %641 : vector<10x2xf32>
    %643 = arith.cmpf ogt, %642, %636 : vector<10x2xf32>
    %644 = arith.select %643, %642, %636 : vector<10x2xi1>, vector<10x2xf32>
    %c4_i32_120 = arith.constant 4 : i32
    %645 = vector.broadcast %c4_i32_120 : i32 to vector<10x2xi32>
    %646 = arith.select %643, %645, %638 : vector<10x2xi1>, vector<10x2xi32>
    %647 = vector.extract_strided_slice %610 {offsets = [5, 0], sizes = [1, 2], strides = [1, 1]} : vector<10x2xf32> to vector<1x2xf32>
    %648 = vector.broadcast %6 : vector<10x1xf32> to vector<10x2xf32>
    %649 = vector.broadcast %647 : vector<1x2xf32> to vector<10x2xf32>
    %650 = arith.addf %648, %649 : vector<10x2xf32>
    %651 = arith.cmpf ogt, %650, %644 : vector<10x2xf32>
    %652 = arith.select %651, %650, %644 : vector<10x2xi1>, vector<10x2xf32>
    %c5_i32_121 = arith.constant 5 : i32
    %653 = vector.broadcast %c5_i32_121 : i32 to vector<10x2xi32>
    %654 = arith.select %651, %653, %646 : vector<10x2xi1>, vector<10x2xi32>
    %655 = vector.extract_strided_slice %610 {offsets = [6, 0], sizes = [1, 2], strides = [1, 1]} : vector<10x2xf32> to vector<1x2xf32>
    %656 = vector.broadcast %7 : vector<10x1xf32> to vector<10x2xf32>
    %657 = vector.broadcast %655 : vector<1x2xf32> to vector<10x2xf32>
    %658 = arith.addf %656, %657 : vector<10x2xf32>
    %659 = arith.cmpf ogt, %658, %652 : vector<10x2xf32>
    %660 = arith.select %659, %658, %652 : vector<10x2xi1>, vector<10x2xf32>
    %c6_i32_122 = arith.constant 6 : i32
    %661 = vector.broadcast %c6_i32_122 : i32 to vector<10x2xi32>
    %662 = arith.select %659, %661, %654 : vector<10x2xi1>, vector<10x2xi32>
    %663 = vector.extract_strided_slice %610 {offsets = [7, 0], sizes = [1, 2], strides = [1, 1]} : vector<10x2xf32> to vector<1x2xf32>
    %664 = vector.broadcast %8 : vector<10x1xf32> to vector<10x2xf32>
    %665 = vector.broadcast %663 : vector<1x2xf32> to vector<10x2xf32>
    %666 = arith.addf %664, %665 : vector<10x2xf32>
    %667 = arith.cmpf ogt, %666, %660 : vector<10x2xf32>
    %668 = arith.select %667, %666, %660 : vector<10x2xi1>, vector<10x2xf32>
    %c7_i32_123 = arith.constant 7 : i32
    %669 = vector.broadcast %c7_i32_123 : i32 to vector<10x2xi32>
    %670 = arith.select %667, %669, %662 : vector<10x2xi1>, vector<10x2xi32>
    %671 = vector.extract_strided_slice %610 {offsets = [8, 0], sizes = [1, 2], strides = [1, 1]} : vector<10x2xf32> to vector<1x2xf32>
    %672 = vector.broadcast %9 : vector<10x1xf32> to vector<10x2xf32>
    %673 = vector.broadcast %671 : vector<1x2xf32> to vector<10x2xf32>
    %674 = arith.addf %672, %673 : vector<10x2xf32>
    %675 = arith.cmpf ogt, %674, %668 : vector<10x2xf32>
    %676 = arith.select %675, %674, %668 : vector<10x2xi1>, vector<10x2xf32>
    %c8_i32_124 = arith.constant 8 : i32
    %677 = vector.broadcast %c8_i32_124 : i32 to vector<10x2xi32>
    %678 = arith.select %675, %677, %670 : vector<10x2xi1>, vector<10x2xi32>
    %679 = vector.extract_strided_slice %610 {offsets = [9, 0], sizes = [1, 2], strides = [1, 1]} : vector<10x2xf32> to vector<1x2xf32>
    %680 = vector.broadcast %10 : vector<10x1xf32> to vector<10x2xf32>
    %681 = vector.broadcast %679 : vector<1x2xf32> to vector<10x2xf32>
    %682 = arith.addf %680, %681 : vector<10x2xf32>
    %683 = arith.cmpf ogt, %682, %676 : vector<10x2xf32>
    %684 = arith.select %683, %682, %676 : vector<10x2xi1>, vector<10x2xf32>
    %c9_i32_125 = arith.constant 9 : i32
    %685 = vector.broadcast %c9_i32_125 : i32 to vector<10x2xi32>
    %686 = arith.select %683, %685, %678 : vector<10x2xi1>, vector<10x2xi32>
    %687 = arith.index_cast %c7_i32_116 : i32 to index
    %c0_126 = arith.constant 0 : index
    %c0_127 = arith.constant 0 : index
    %688 = vector.load %arg2[%687, %c0_126, %c0_127] : memref<8x1x2xi32, #tpu.memory_space<vmem>>, vector<1x1x2xi32>
    %689 = vector.shape_cast %688 : vector<1x1x2xi32> to vector<1x2xi32>
    %c0_i32_128 = arith.constant 0 : i32
    %690 = vector.broadcast %c0_i32_128 : i32 to vector<1x2xi32>
    %691 = arith.cmpi eq, %689, %690 : vector<1x2xi32>
    %c0_i32_129 = arith.constant 0 : i32
    %692 = vector.shape_cast %691 : vector<1x2xi1> to vector<1x2xi1>
    %693 = vector.broadcast %692 : vector<1x2xi1> to vector<10x2xi1>
    %694 = vector.broadcast %c0_i32_129 : i32 to vector<10x2xi32>
    %695 = arith.select %693, %694, %686 : vector<10x2xi1>, vector<10x2xi32>
    %c1_i32_130 = arith.constant 1 : i32
    %696 = arith.subi %c7_i32_116, %c1_i32_130 : i32
    %697 = arith.index_cast %696 : i32 to index
    %c0_131 = arith.constant 0 : index
    %c0_132 = arith.constant 0 : index
    %698 = vector.load %arg8[%697, %c0_131, %c0_132] : memref<8x10x2xi32, #tpu.memory_space<vmem>>, vector<1x10x2xi32>
    %699 = vector.shape_cast %698 : vector<1x10x2xi32> to vector<10x2xi32>
    %700 = vector.shape_cast %695 : vector<10x2xi32> to vector<1x10x2xi32>
    tpu.vector_store %arg8[%697, %c0_131, %c0_132], %700 {strides = array<i32>} : memref<8x10x2xi32, #tpu.memory_space<vmem>>, vector<1x10x2xi32>,
    %701 = arith.index_cast %c7_i32_116 : i32 to index
    %c0_133 = arith.constant 0 : index
    %c0_134 = arith.constant 0 : index
    %702 = vector.load %arg1[%701, %c0_133, %c0_134] : memref<8x10x2xf32, #tpu.memory_space<vmem>>, vector<1x10x2xf32>
    %703 = vector.shape_cast %702 : vector<1x10x2xf32> to vector<10x2xf32>
    %704 = arith.addf %684, %703 : vector<10x2xf32>
    %c0_i32_135 = arith.constant 0 : i32
    %705 = vector.broadcast %c0_i32_135 : i32 to vector<1x2xi32>
    %706 = arith.cmpi ne, %689, %705 : vector<1x2xi32>
    %707 = vector.shape_cast %706 : vector<1x2xi1> to vector<1x2xi1>
    %708 = vector.broadcast %707 : vector<1x2xi1> to vector<10x2xi1>
    %709 = arith.select %708, %704, %610 : vector<10x2xi1>, vector<10x2xf32>
    %c7_i32_136 = arith.constant 7 : i32
    %c7 = arith.constant 7 : index
    %c0_137 = arith.constant 0 : index
    %c0_138 = arith.constant 0 : index
    %710 = vector.load %arg8[%c7, %c0_137, %c0_138] : memref<8x10x2xi32, #tpu.memory_space<vmem>>, vector<1x10x2xi32>
    %711 = vector.shape_cast %710 : vector<1x10x2xi32> to vector<10x2xi32>
    %712 = vector.shape_cast %11 : vector<10x2xi32> to vector<1x10x2xi32>
    tpu.vector_store %arg8[%c7, %c0_137, %c0_138], %712 {strides = array<i32>} : memref<8x10x2xi32, #tpu.memory_space<vmem>>, vector<1x10x2xi32>,
    %c0_139 = arith.constant 0 : index
    %c0_140 = arith.constant 0 : index
    %713 = vector.load %arg5[%c0_139, %c0_140] : memref<10x1xf32, #tpu.memory_space<vmem>>, vector<10x1xf32>
    %714 = vector.broadcast %713 : vector<10x1xf32> to vector<10x2xf32>
    %715 = arith.addf %709, %714 : vector<10x2xf32>
    %716 = vector.extract_strided_slice %715 {offsets = [0, 0], sizes = [1, 2], strides = [1, 1]} : vector<10x2xf32> to vector<1x2xf32>
    %717 = vector.extract_strided_slice %715 {offsets = [1, 0], sizes = [1, 2], strides = [1, 1]} : vector<10x2xf32> to vector<1x2xf32>
    %718 = arith.cmpf ogt, %717, %716 : vector<1x2xf32>
    %719 = arith.select %718, %717, %716 : vector<1x2xi1>, vector<1x2xf32>
    %c1_i32_141 = arith.constant 1 : i32
    %720 = vector.broadcast %c1_i32_141 : i32 to vector<1x2xi32>
    %721 = arith.select %718, %720, %12 : vector<1x2xi1>, vector<1x2xi32>
    %722 = vector.extract_strided_slice %715 {offsets = [2, 0], sizes = [1, 2], strides = [1, 1]} : vector<10x2xf32> to vector<1x2xf32>
    %723 = arith.cmpf ogt, %722, %719 : vector<1x2xf32>
    %724 = arith.select %723, %722, %719 : vector<1x2xi1>, vector<1x2xf32>
    %c2_i32_142 = arith.constant 2 : i32
    %725 = vector.broadcast %c2_i32_142 : i32 to vector<1x2xi32>
    %726 = arith.select %723, %725, %721 : vector<1x2xi1>, vector<1x2xi32>
    %727 = vector.extract_strided_slice %715 {offsets = [3, 0], sizes = [1, 2], strides = [1, 1]} : vector<10x2xf32> to vector<1x2xf32>
    %728 = arith.cmpf ogt, %727, %724 : vector<1x2xf32>
    %729 = arith.select %728, %727, %724 : vector<1x2xi1>, vector<1x2xf32>
    %c3_i32_143 = arith.constant 3 : i32
    %730 = vector.broadcast %c3_i32_143 : i32 to vector<1x2xi32>
    %731 = arith.select %728, %730, %726 : vector<1x2xi1>, vector<1x2xi32>
    %732 = vector.extract_strided_slice %715 {offsets = [4, 0], sizes = [1, 2], strides = [1, 1]} : vector<10x2xf32> to vector<1x2xf32>
    %733 = arith.cmpf ogt, %732, %729 : vector<1x2xf32>
    %734 = arith.select %733, %732, %729 : vector<1x2xi1>, vector<1x2xf32>
    %c4_i32_144 = arith.constant 4 : i32
    %735 = vector.broadcast %c4_i32_144 : i32 to vector<1x2xi32>
    %736 = arith.select %733, %735, %731 : vector<1x2xi1>, vector<1x2xi32>
    %737 = vector.extract_strided_slice %715 {offsets = [5, 0], sizes = [1, 2], strides = [1, 1]} : vector<10x2xf32> to vector<1x2xf32>
    %738 = arith.cmpf ogt, %737, %734 : vector<1x2xf32>
    %739 = arith.select %738, %737, %734 : vector<1x2xi1>, vector<1x2xf32>
    %c5_i32_145 = arith.constant 5 : i32
    %740 = vector.broadcast %c5_i32_145 : i32 to vector<1x2xi32>
    %741 = arith.select %738, %740, %736 : vector<1x2xi1>, vector<1x2xi32>
    %742 = vector.extract_strided_slice %715 {offsets = [6, 0], sizes = [1, 2], strides = [1, 1]} : vector<10x2xf32> to vector<1x2xf32>
    %743 = arith.cmpf ogt, %742, %739 : vector<1x2xf32>
    %744 = arith.select %743, %742, %739 : vector<1x2xi1>, vector<1x2xf32>
    %c6_i32_146 = arith.constant 6 : i32
    %745 = vector.broadcast %c6_i32_146 : i32 to vector<1x2xi32>
    %746 = arith.select %743, %745, %741 : vector<1x2xi1>, vector<1x2xi32>
    %747 = vector.extract_strided_slice %715 {offsets = [7, 0], sizes = [1, 2], strides = [1, 1]} : vector<10x2xf32> to vector<1x2xf32>
    %748 = arith.cmpf ogt, %747, %744 : vector<1x2xf32>
    %749 = arith.select %748, %747, %744 : vector<1x2xi1>, vector<1x2xf32>
    %c7_i32_147 = arith.constant 7 : i32
    %750 = vector.broadcast %c7_i32_147 : i32 to vector<1x2xi32>
    %751 = arith.select %748, %750, %746 : vector<1x2xi1>, vector<1x2xi32>
    %752 = vector.extract_strided_slice %715 {offsets = [8, 0], sizes = [1, 2], strides = [1, 1]} : vector<10x2xf32> to vector<1x2xf32>
    %753 = arith.cmpf ogt, %752, %749 : vector<1x2xf32>
    %754 = arith.select %753, %752, %749 : vector<1x2xi1>, vector<1x2xf32>
    %c8_i32_148 = arith.constant 8 : i32
    %755 = vector.broadcast %c8_i32_148 : i32 to vector<1x2xi32>
    %756 = arith.select %753, %755, %751 : vector<1x2xi1>, vector<1x2xi32>
    %757 = vector.extract_strided_slice %715 {offsets = [9, 0], sizes = [1, 2], strides = [1, 1]} : vector<10x2xf32> to vector<1x2xf32>
    %758 = arith.cmpf ogt, %757, %754 : vector<1x2xf32>
    %759 = arith.select %758, %757, %754 : vector<1x2xi1>, vector<1x2xf32>
    %c9_i32_149 = arith.constant 9 : i32
    %760 = vector.broadcast %c9_i32_149 : i32 to vector<1x2xi32>
    %761 = arith.select %758, %760, %756 : vector<1x2xi1>, vector<1x2xi32>
    %c0_150 = arith.constant 0 : index
    %c0_151 = arith.constant 0 : index
    %762 = vector.load %arg6[%c0_150, %c0_151] : memref<1x2xf32, #tpu.memory_space<vmem>>, vector<1x2xf32>
    tpu.vector_store %arg6[%c0_150, %c0_151], %759 {strides = array<i32>} : memref<1x2xf32, #tpu.memory_space<vmem>>, vector<1x2xf32>,
    %c0_152 = arith.constant 0 : index
    %c0_153 = arith.constant 0 : index
    %763 = vector.load %arg3[%c0_152, %c0_153] : memref<1x2xi32, #tpu.memory_space<vmem>>, vector<1x2xi32>
    %c7_154 = arith.constant 7 : index
    %c0_155 = arith.constant 0 : index
    %c0_156 = arith.constant 0 : index
    %764 = vector.load %arg2[%c7_154, %c0_155, %c0_156] : memref<8x1x2xi32, #tpu.memory_space<vmem>>, vector<1x1x2xi32>
    %765 = vector.shape_cast %764 : vector<1x1x2xi32> to vector<1x2xi32>
    %766 = arith.muli %761, %765 : vector<1x2xi32>
    %c7_157 = arith.constant 7 : index
    %c0_158 = arith.constant 0 : index
    %c0_159 = arith.constant 0 : index
    %767 = vector.load %arg7[%c7_157, %c0_158, %c0_159] : memref<8x1x2xi32, #tpu.memory_space<vmem>>, vector<1x1x2xi32>
    %768 = vector.shape_cast %767 : vector<1x1x2xi32> to vector<1x2xi32>
    %769 = vector.shape_cast %766 : vector<1x2xi32> to vector<1x1x2xi32>
    tpu.vector_store %arg7[%c7_157, %c0_158, %c0_159], %769 {strides = array<i32>} : memref<8x1x2xi32, #tpu.memory_space<vmem>>, vector<1x1x2xi32>,
    %c0_i32_160 = arith.constant 0 : i32
    %c6_i32_161 = arith.constant 6 : i32
    %770 = arith.subi %c6_i32_161, %c0_i32_160 : i32
    %771 = arith.index_cast %770 : i32 to index
    %c0_162 = arith.constant 0 : index
    %c0_163 = arith.constant 0 : index
    %772 = vector.load %arg8[%771, %c0_162, %c0_163] : memref<8x10x2xi32, #tpu.memory_space<vmem>>, vector<1x10x2xi32>
    %773 = vector.shape_cast %772 : vector<1x10x2xi32> to vector<10x2xi32>
    %c0_i32_164 = arith.constant 0 : i32
    %774 = vector.broadcast %c0_i32_164 : i32 to vector<1x2xi32>
    %775 = arith.cmpi eq, %761, %774 : vector<1x2xi32>
    %776 = vector.extract_strided_slice %773 {offsets = [0, 0], sizes = [1, 2], strides = [1, 1]} : vector<10x2xi32> to vector<1x2xi32>
    %777 = arith.select %775, %776, %12 : vector<1x2xi1>, vector<1x2xi32>
    %c1_i32_165 = arith.constant 1 : i32
    %778 = vector.broadcast %c1_i32_165 : i32 to vector<1x2xi32>
    %779 = arith.cmpi eq, %761, %778 : vector<1x2xi32>
    %780 = vector.extract_strided_slice %773 {offsets = [1, 0], sizes = [1, 2], strides = [1, 1]} : vector<10x2xi32> to vector<1x2xi32>
    %781 = arith.select %779, %780, %777 : vector<1x2xi1>, vector<1x2xi32>
    %c2_i32_166 = arith.constant 2 : i32
    %782 = vector.broadcast %c2_i32_166 : i32 to vector<1x2xi32>
    %783 = arith.cmpi eq, %761, %782 : vector<1x2xi32>
    %784 = vector.extract_strided_slice %773 {offsets = [2, 0], sizes = [1, 2], strides = [1, 1]} : vector<10x2xi32> to vector<1x2xi32>
    %785 = arith.select %783, %784, %781 : vector<1x2xi1>, vector<1x2xi32>
    %c3_i32_167 = arith.constant 3 : i32
    %786 = vector.broadcast %c3_i32_167 : i32 to vector<1x2xi32>
    %787 = arith.cmpi eq, %761, %786 : vector<1x2xi32>
    %788 = vector.extract_strided_slice %773 {offsets = [3, 0], sizes = [1, 2], strides = [1, 1]} : vector<10x2xi32> to vector<1x2xi32>
    %789 = arith.select %787, %788, %785 : vector<1x2xi1>, vector<1x2xi32>
    %c4_i32_168 = arith.constant 4 : i32
    %790 = vector.broadcast %c4_i32_168 : i32 to vector<1x2xi32>
    %791 = arith.cmpi eq, %761, %790 : vector<1x2xi32>
    %792 = vector.extract_strided_slice %773 {offsets = [4, 0], sizes = [1, 2], strides = [1, 1]} : vector<10x2xi32> to vector<1x2xi32>
    %793 = arith.select %791, %792, %789 : vector<1x2xi1>, vector<1x2xi32>
    %c5_i32_169 = arith.constant 5 : i32
    %794 = vector.broadcast %c5_i32_169 : i32 to vector<1x2xi32>
    %795 = arith.cmpi eq, %761, %794 : vector<1x2xi32>
    %796 = vector.extract_strided_slice %773 {offsets = [5, 0], sizes = [1, 2], strides = [1, 1]} : vector<10x2xi32> to vector<1x2xi32>
    %797 = arith.select %795, %796, %793 : vector<1x2xi1>, vector<1x2xi32>
    %c6_i32_170 = arith.constant 6 : i32
    %798 = vector.broadcast %c6_i32_170 : i32 to vector<1x2xi32>
    %799 = arith.cmpi eq, %761, %798 : vector<1x2xi32>
    %800 = vector.extract_strided_slice %773 {offsets = [6, 0], sizes = [1, 2], strides = [1, 1]} : vector<10x2xi32> to vector<1x2xi32>
    %801 = arith.select %799, %800, %797 : vector<1x2xi1>, vector<1x2xi32>
    %c7_i32_171 = arith.constant 7 : i32
    %802 = vector.broadcast %c7_i32_171 : i32 to vector<1x2xi32>
    %803 = arith.cmpi eq, %761, %802 : vector<1x2xi32>
    %804 = vector.extract_strided_slice %773 {offsets = [7, 0], sizes = [1, 2], strides = [1, 1]} : vector<10x2xi32> to vector<1x2xi32>
    %805 = arith.select %803, %804, %801 : vector<1x2xi1>, vector<1x2xi32>
    %c8_i32_172 = arith.constant 8 : i32
    %806 = vector.broadcast %c8_i32_172 : i32 to vector<1x2xi32>
    %807 = arith.cmpi eq, %761, %806 : vector<1x2xi32>
    %808 = vector.extract_strided_slice %773 {offsets = [8, 0], sizes = [1, 2], strides = [1, 1]} : vector<10x2xi32> to vector<1x2xi32>
    %809 = arith.select %807, %808, %805 : vector<1x2xi1>, vector<1x2xi32>
    %c9_i32_173 = arith.constant 9 : i32
    %810 = vector.broadcast %c9_i32_173 : i32 to vector<1x2xi32>
    %811 = arith.cmpi eq, %761, %810 : vector<1x2xi32>
    %812 = vector.extract_strided_slice %773 {offsets = [9, 0], sizes = [1, 2], strides = [1, 1]} : vector<10x2xi32> to vector<1x2xi32>
    %813 = arith.select %811, %812, %809 : vector<1x2xi1>, vector<1x2xi32>
    %814 = vector.broadcast %770 : i32 to vector<1x2xi32>
    %815 = arith.cmpi eq, %814, %763 : vector<1x2xi32>
    %816 = arith.select %815, %761, %813 : vector<1x2xi1>, vector<1x2xi32>
    %817 = arith.index_cast %770 : i32 to index
    %c0_174 = arith.constant 0 : index
    %c0_175 = arith.constant 0 : index
    %818 = vector.load %arg2[%817, %c0_174, %c0_175] : memref<8x1x2xi32, #tpu.memory_space<vmem>>, vector<1x1x2xi32>
    %819 = vector.shape_cast %818 : vector<1x1x2xi32> to vector<1x2xi32>
    %820 = arith.muli %816, %819 : vector<1x2xi32>
    %821 = arith.index_cast %770 : i32 to index
    %c0_176 = arith.constant 0 : index
    %c0_177 = arith.constant 0 : index
    %822 = vector.load %arg7[%821, %c0_176, %c0_177] : memref<8x1x2xi32, #tpu.memory_space<vmem>>, vector<1x1x2xi32>
    %823 = vector.shape_cast %822 : vector<1x1x2xi32> to vector<1x2xi32>
    %824 = vector.shape_cast %820 : vector<1x2xi32> to vector<1x1x2xi32>
    tpu.vector_store %arg7[%821, %c0_176, %c0_177], %824 {strides = array<i32>} : memref<8x1x2xi32, #tpu.memory_space<vmem>>, vector<1x1x2xi32>,
    %c1_i32_178 = arith.constant 1 : i32
    %c6_i32_179 = arith.constant 6 : i32
    %825 = arith.subi %c6_i32_179, %c1_i32_178 : i32
    %826 = arith.index_cast %825 : i32 to index
    %c0_180 = arith.constant 0 : index
    %c0_181 = arith.constant 0 : index
    %827 = vector.load %arg8[%826, %c0_180, %c0_181] : memref<8x10x2xi32, #tpu.memory_space<vmem>>, vector<1x10x2xi32>
    %828 = vector.shape_cast %827 : vector<1x10x2xi32> to vector<10x2xi32>
    %c0_i32_182 = arith.constant 0 : i32
    %829 = vector.broadcast %c0_i32_182 : i32 to vector<1x2xi32>
    %830 = arith.cmpi eq, %816, %829 : vector<1x2xi32>
    %831 = vector.extract_strided_slice %828 {offsets = [0, 0], sizes = [1, 2], strides = [1, 1]} : vector<10x2xi32> to vector<1x2xi32>
    %832 = arith.select %830, %831, %12 : vector<1x2xi1>, vector<1x2xi32>
    %c1_i32_183 = arith.constant 1 : i32
    %833 = vector.broadcast %c1_i32_183 : i32 to vector<1x2xi32>
    %834 = arith.cmpi eq, %816, %833 : vector<1x2xi32>
    %835 = vector.extract_strided_slice %828 {offsets = [1, 0], sizes = [1, 2], strides = [1, 1]} : vector<10x2xi32> to vector<1x2xi32>
    %836 = arith.select %834, %835, %832 : vector<1x2xi1>, vector<1x2xi32>
    %c2_i32_184 = arith.constant 2 : i32
    %837 = vector.broadcast %c2_i32_184 : i32 to vector<1x2xi32>
    %838 = arith.cmpi eq, %816, %837 : vector<1x2xi32>
    %839 = vector.extract_strided_slice %828 {offsets = [2, 0], sizes = [1, 2], strides = [1, 1]} : vector<10x2xi32> to vector<1x2xi32>
    %840 = arith.select %838, %839, %836 : vector<1x2xi1>, vector<1x2xi32>
    %c3_i32_185 = arith.constant 3 : i32
    %841 = vector.broadcast %c3_i32_185 : i32 to vector<1x2xi32>
    %842 = arith.cmpi eq, %816, %841 : vector<1x2xi32>
    %843 = vector.extract_strided_slice %828 {offsets = [3, 0], sizes = [1, 2], strides = [1, 1]} : vector<10x2xi32> to vector<1x2xi32>
    %844 = arith.select %842, %843, %840 : vector<1x2xi1>, vector<1x2xi32>
    %c4_i32_186 = arith.constant 4 : i32
    %845 = vector.broadcast %c4_i32_186 : i32 to vector<1x2xi32>
    %846 = arith.cmpi eq, %816, %845 : vector<1x2xi32>
    %847 = vector.extract_strided_slice %828 {offsets = [4, 0], sizes = [1, 2], strides = [1, 1]} : vector<10x2xi32> to vector<1x2xi32>
    %848 = arith.select %846, %847, %844 : vector<1x2xi1>, vector<1x2xi32>
    %c5_i32_187 = arith.constant 5 : i32
    %849 = vector.broadcast %c5_i32_187 : i32 to vector<1x2xi32>
    %850 = arith.cmpi eq, %816, %849 : vector<1x2xi32>
    %851 = vector.extract_strided_slice %828 {offsets = [5, 0], sizes = [1, 2], strides = [1, 1]} : vector<10x2xi32> to vector<1x2xi32>
    %852 = arith.select %850, %851, %848 : vector<1x2xi1>, vector<1x2xi32>
    %c6_i32_188 = arith.constant 6 : i32
    %853 = vector.broadcast %c6_i32_188 : i32 to vector<1x2xi32>
    %854 = arith.cmpi eq, %816, %853 : vector<1x2xi32>
    %855 = vector.extract_strided_slice %828 {offsets = [6, 0], sizes = [1, 2], strides = [1, 1]} : vector<10x2xi32> to vector<1x2xi32>
    %856 = arith.select %854, %855, %852 : vector<1x2xi1>, vector<1x2xi32>
    %c7_i32_189 = arith.constant 7 : i32
    %857 = vector.broadcast %c7_i32_189 : i32 to vector<1x2xi32>
    %858 = arith.cmpi eq, %816, %857 : vector<1x2xi32>
    %859 = vector.extract_strided_slice %828 {offsets = [7, 0], sizes = [1, 2], strides = [1, 1]} : vector<10x2xi32> to vector<1x2xi32>
    %860 = arith.select %858, %859, %856 : vector<1x2xi1>, vector<1x2xi32>
    %c8_i32_190 = arith.constant 8 : i32
    %861 = vector.broadcast %c8_i32_190 : i32 to vector<1x2xi32>
    %862 = arith.cmpi eq, %816, %861 : vector<1x2xi32>
    %863 = vector.extract_strided_slice %828 {offsets = [8, 0], sizes = [1, 2], strides = [1, 1]} : vector<10x2xi32> to vector<1x2xi32>
    %864 = arith.select %862, %863, %860 : vector<1x2xi1>, vector<1x2xi32>
    %c9_i32_191 = arith.constant 9 : i32
    %865 = vector.broadcast %c9_i32_191 : i32 to vector<1x2xi32>
    %866 = arith.cmpi eq, %816, %865 : vector<1x2xi32>
    %867 = vector.extract_strided_slice %828 {offsets = [9, 0], sizes = [1, 2], strides = [1, 1]} : vector<10x2xi32> to vector<1x2xi32>
    %868 = arith.select %866, %867, %864 : vector<1x2xi1>, vector<1x2xi32>
    %869 = vector.broadcast %825 : i32 to vector<1x2xi32>
    %870 = arith.cmpi eq, %869, %763 : vector<1x2xi32>
    %871 = arith.select %870, %761, %868 : vector<1x2xi1>, vector<1x2xi32>
    %872 = arith.index_cast %825 : i32 to index
    %c0_192 = arith.constant 0 : index
    %c0_193 = arith.constant 0 : index
    %873 = vector.load %arg2[%872, %c0_192, %c0_193] : memref<8x1x2xi32, #tpu.memory_space<vmem>>, vector<1x1x2xi32>
    %874 = vector.shape_cast %873 : vector<1x1x2xi32> to vector<1x2xi32>
    %875 = arith.muli %871, %874 : vector<1x2xi32>
    %876 = arith.index_cast %825 : i32 to index
    %c0_194 = arith.constant 0 : index
    %c0_195 = arith.constant 0 : index
    %877 = vector.load %arg7[%876, %c0_194, %c0_195] : memref<8x1x2xi32, #tpu.memory_space<vmem>>, vector<1x1x2xi32>
    %878 = vector.shape_cast %877 : vector<1x1x2xi32> to vector<1x2xi32>
    %879 = vector.shape_cast %875 : vector<1x2xi32> to vector<1x1x2xi32>
    tpu.vector_store %arg7[%876, %c0_194, %c0_195], %879 {strides = array<i32>} : memref<8x1x2xi32, #tpu.memory_space<vmem>>, vector<1x1x2xi32>,
    %c2_i32_196 = arith.constant 2 : i32
    %c6_i32_197 = arith.constant 6 : i32
    %880 = arith.subi %c6_i32_197, %c2_i32_196 : i32
    %881 = arith.index_cast %880 : i32 to index
    %c0_198 = arith.constant 0 : index
    %c0_199 = arith.constant 0 : index
    %882 = vector.load %arg8[%881, %c0_198, %c0_199] : memref<8x10x2xi32, #tpu.memory_space<vmem>>, vector<1x10x2xi32>
    %883 = vector.shape_cast %882 : vector<1x10x2xi32> to vector<10x2xi32>
    %c0_i32_200 = arith.constant 0 : i32
    %884 = vector.broadcast %c0_i32_200 : i32 to vector<1x2xi32>
    %885 = arith.cmpi eq, %871, %884 : vector<1x2xi32>
    %886 = vector.extract_strided_slice %883 {offsets = [0, 0], sizes = [1, 2], strides = [1, 1]} : vector<10x2xi32> to vector<1x2xi32>
    %887 = arith.select %885, %886, %12 : vector<1x2xi1>, vector<1x2xi32>
    %c1_i32_201 = arith.constant 1 : i32
    %888 = vector.broadcast %c1_i32_201 : i32 to vector<1x2xi32>
    %889 = arith.cmpi eq, %871, %888 : vector<1x2xi32>
    %890 = vector.extract_strided_slice %883 {offsets = [1, 0], sizes = [1, 2], strides = [1, 1]} : vector<10x2xi32> to vector<1x2xi32>
    %891 = arith.select %889, %890, %887 : vector<1x2xi1>, vector<1x2xi32>
    %c2_i32_202 = arith.constant 2 : i32
    %892 = vector.broadcast %c2_i32_202 : i32 to vector<1x2xi32>
    %893 = arith.cmpi eq, %871, %892 : vector<1x2xi32>
    %894 = vector.extract_strided_slice %883 {offsets = [2, 0], sizes = [1, 2], strides = [1, 1]} : vector<10x2xi32> to vector<1x2xi32>
    %895 = arith.select %893, %894, %891 : vector<1x2xi1>, vector<1x2xi32>
    %c3_i32_203 = arith.constant 3 : i32
    %896 = vector.broadcast %c3_i32_203 : i32 to vector<1x2xi32>
    %897 = arith.cmpi eq, %871, %896 : vector<1x2xi32>
    %898 = vector.extract_strided_slice %883 {offsets = [3, 0], sizes = [1, 2], strides = [1, 1]} : vector<10x2xi32> to vector<1x2xi32>
    %899 = arith.select %897, %898, %895 : vector<1x2xi1>, vector<1x2xi32>
    %c4_i32_204 = arith.constant 4 : i32
    %900 = vector.broadcast %c4_i32_204 : i32 to vector<1x2xi32>
    %901 = arith.cmpi eq, %871, %900 : vector<1x2xi32>
    %902 = vector.extract_strided_slice %883 {offsets = [4, 0], sizes = [1, 2], strides = [1, 1]} : vector<10x2xi32> to vector<1x2xi32>
    %903 = arith.select %901, %902, %899 : vector<1x2xi1>, vector<1x2xi32>
    %c5_i32_205 = arith.constant 5 : i32
    %904 = vector.broadcast %c5_i32_205 : i32 to vector<1x2xi32>
    %905 = arith.cmpi eq, %871, %904 : vector<1x2xi32>
    %906 = vector.extract_strided_slice %883 {offsets = [5, 0], sizes = [1, 2], strides = [1, 1]} : vector<10x2xi32> to vector<1x2xi32>
    %907 = arith.select %905, %906, %903 : vector<1x2xi1>, vector<1x2xi32>
    %c6_i32_206 = arith.constant 6 : i32
    %908 = vector.broadcast %c6_i32_206 : i32 to vector<1x2xi32>
    %909 = arith.cmpi eq, %871, %908 : vector<1x2xi32>
    %910 = vector.extract_strided_slice %883 {offsets = [6, 0], sizes = [1, 2], strides = [1, 1]} : vector<10x2xi32> to vector<1x2xi32>
    %911 = arith.select %909, %910, %907 : vector<1x2xi1>, vector<1x2xi32>
    %c7_i32_207 = arith.constant 7 : i32
    %912 = vector.broadcast %c7_i32_207 : i32 to vector<1x2xi32>
    %913 = arith.cmpi eq, %871, %912 : vector<1x2xi32>
    %914 = vector.extract_strided_slice %883 {offsets = [7, 0], sizes = [1, 2], strides = [1, 1]} : vector<10x2xi32> to vector<1x2xi32>
    %915 = arith.select %913, %914, %911 : vector<1x2xi1>, vector<1x2xi32>
    %c8_i32_208 = arith.constant 8 : i32
    %916 = vector.broadcast %c8_i32_208 : i32 to vector<1x2xi32>
    %917 = arith.cmpi eq, %871, %916 : vector<1x2xi32>
    %918 = vector.extract_strided_slice %883 {offsets = [8, 0], sizes = [1, 2], strides = [1, 1]} : vector<10x2xi32> to vector<1x2xi32>
    %919 = arith.select %917, %918, %915 : vector<1x2xi1>, vector<1x2xi32>
    %c9_i32_209 = arith.constant 9 : i32
    %920 = vector.broadcast %c9_i32_209 : i32 to vector<1x2xi32>
    %921 = arith.cmpi eq, %871, %920 : vector<1x2xi32>
    %922 = vector.extract_strided_slice %883 {offsets = [9, 0], sizes = [1, 2], strides = [1, 1]} : vector<10x2xi32> to vector<1x2xi32>
    %923 = arith.select %921, %922, %919 : vector<1x2xi1>, vector<1x2xi32>
    %924 = vector.broadcast %880 : i32 to vector<1x2xi32>
    %925 = arith.cmpi eq, %924, %763 : vector<1x2xi32>
    %926 = arith.select %925, %761, %923 : vector<1x2xi1>, vector<1x2xi32>
    %927 = arith.index_cast %880 : i32 to index
    %c0_210 = arith.constant 0 : index
    %c0_211 = arith.constant 0 : index
    %928 = vector.load %arg2[%927, %c0_210, %c0_211] : memref<8x1x2xi32, #tpu.memory_space<vmem>>, vector<1x1x2xi32>
    %929 = vector.shape_cast %928 : vector<1x1x2xi32> to vector<1x2xi32>
    %930 = arith.muli %926, %929 : vector<1x2xi32>
    %931 = arith.index_cast %880 : i32 to index
    %c0_212 = arith.constant 0 : index
    %c0_213 = arith.constant 0 : index
    %932 = vector.load %arg7[%931, %c0_212, %c0_213] : memref<8x1x2xi32, #tpu.memory_space<vmem>>, vector<1x1x2xi32>
    %933 = vector.shape_cast %932 : vector<1x1x2xi32> to vector<1x2xi32>
    %934 = vector.shape_cast %930 : vector<1x2xi32> to vector<1x1x2xi32>
    tpu.vector_store %arg7[%931, %c0_212, %c0_213], %934 {strides = array<i32>} : memref<8x1x2xi32, #tpu.memory_space<vmem>>, vector<1x1x2xi32>,
    %c3_i32_214 = arith.constant 3 : i32
    %c6_i32_215 = arith.constant 6 : i32
    %935 = arith.subi %c6_i32_215, %c3_i32_214 : i32
    %936 = arith.index_cast %935 : i32 to index
    %c0_216 = arith.constant 0 : index
    %c0_217 = arith.constant 0 : index
    %937 = vector.load %arg8[%936, %c0_216, %c0_217] : memref<8x10x2xi32, #tpu.memory_space<vmem>>, vector<1x10x2xi32>
    %938 = vector.shape_cast %937 : vector<1x10x2xi32> to vector<10x2xi32>
    %c0_i32_218 = arith.constant 0 : i32
    %939 = vector.broadcast %c0_i32_218 : i32 to vector<1x2xi32>
    %940 = arith.cmpi eq, %926, %939 : vector<1x2xi32>
    %941 = vector.extract_strided_slice %938 {offsets = [0, 0], sizes = [1, 2], strides = [1, 1]} : vector<10x2xi32> to vector<1x2xi32>
    %942 = arith.select %940, %941, %12 : vector<1x2xi1>, vector<1x2xi32>
    %c1_i32_219 = arith.constant 1 : i32
    %943 = vector.broadcast %c1_i32_219 : i32 to vector<1x2xi32>
    %944 = arith.cmpi eq, %926, %943 : vector<1x2xi32>
    %945 = vector.extract_strided_slice %938 {offsets = [1, 0], sizes = [1, 2], strides = [1, 1]} : vector<10x2xi32> to vector<1x2xi32>
    %946 = arith.select %944, %945, %942 : vector<1x2xi1>, vector<1x2xi32>
    %c2_i32_220 = arith.constant 2 : i32
    %947 = vector.broadcast %c2_i32_220 : i32 to vector<1x2xi32>
    %948 = arith.cmpi eq, %926, %947 : vector<1x2xi32>
    %949 = vector.extract_strided_slice %938 {offsets = [2, 0], sizes = [1, 2], strides = [1, 1]} : vector<10x2xi32> to vector<1x2xi32>
    %950 = arith.select %948, %949, %946 : vector<1x2xi1>, vector<1x2xi32>
    %c3_i32_221 = arith.constant 3 : i32
    %951 = vector.broadcast %c3_i32_221 : i32 to vector<1x2xi32>
    %952 = arith.cmpi eq, %926, %951 : vector<1x2xi32>
    %953 = vector.extract_strided_slice %938 {offsets = [3, 0], sizes = [1, 2], strides = [1, 1]} : vector<10x2xi32> to vector<1x2xi32>
    %954 = arith.select %952, %953, %950 : vector<1x2xi1>, vector<1x2xi32>
    %c4_i32_222 = arith.constant 4 : i32
    %955 = vector.broadcast %c4_i32_222 : i32 to vector<1x2xi32>
    %956 = arith.cmpi eq, %926, %955 : vector<1x2xi32>
    %957 = vector.extract_strided_slice %938 {offsets = [4, 0], sizes = [1, 2], strides = [1, 1]} : vector<10x2xi32> to vector<1x2xi32>
    %958 = arith.select %956, %957, %954 : vector<1x2xi1>, vector<1x2xi32>
    %c5_i32_223 = arith.constant 5 : i32
    %959 = vector.broadcast %c5_i32_223 : i32 to vector<1x2xi32>
    %960 = arith.cmpi eq, %926, %959 : vector<1x2xi32>
    %961 = vector.extract_strided_slice %938 {offsets = [5, 0], sizes = [1, 2], strides = [1, 1]} : vector<10x2xi32> to vector<1x2xi32>
    %962 = arith.select %960, %961, %958 : vector<1x2xi1>, vector<1x2xi32>
    %c6_i32_224 = arith.constant 6 : i32
    %963 = vector.broadcast %c6_i32_224 : i32 to vector<1x2xi32>
    %964 = arith.cmpi eq, %926, %963 : vector<1x2xi32>
    %965 = vector.extract_strided_slice %938 {offsets = [6, 0], sizes = [1, 2], strides = [1, 1]} : vector<10x2xi32> to vector<1x2xi32>
    %966 = arith.select %964, %965, %962 : vector<1x2xi1>, vector<1x2xi32>
    %c7_i32_225 = arith.constant 7 : i32
    %967 = vector.broadcast %c7_i32_225 : i32 to vector<1x2xi32>
    %968 = arith.cmpi eq, %926, %967 : vector<1x2xi32>
    %969 = vector.extract_strided_slice %938 {offsets = [7, 0], sizes = [1, 2], strides = [1, 1]} : vector<10x2xi32> to vector<1x2xi32>
    %970 = arith.select %968, %969, %966 : vector<1x2xi1>, vector<1x2xi32>
    %c8_i32_226 = arith.constant 8 : i32
    %971 = vector.broadcast %c8_i32_226 : i32 to vector<1x2xi32>
    %972 = arith.cmpi eq, %926, %971 : vector<1x2xi32>
    %973 = vector.extract_strided_slice %938 {offsets = [8, 0], sizes = [1, 2], strides = [1, 1]} : vector<10x2xi32> to vector<1x2xi32>
    %974 = arith.select %972, %973, %970 : vector<1x2xi1>, vector<1x2xi32>
    %c9_i32_227 = arith.constant 9 : i32
    %975 = vector.broadcast %c9_i32_227 : i32 to vector<1x2xi32>
    %976 = arith.cmpi eq, %926, %975 : vector<1x2xi32>
    %977 = vector.extract_strided_slice %938 {offsets = [9, 0], sizes = [1, 2], strides = [1, 1]} : vector<10x2xi32> to vector<1x2xi32>
    %978 = arith.select %976, %977, %974 : vector<1x2xi1>, vector<1x2xi32>
    %979 = vector.broadcast %935 : i32 to vector<1x2xi32>
    %980 = arith.cmpi eq, %979, %763 : vector<1x2xi32>
    %981 = arith.select %980, %761, %978 : vector<1x2xi1>, vector<1x2xi32>
    %982 = arith.index_cast %935 : i32 to index
    %c0_228 = arith.constant 0 : index
    %c0_229 = arith.constant 0 : index
    %983 = vector.load %arg2[%982, %c0_228, %c0_229] : memref<8x1x2xi32, #tpu.memory_space<vmem>>, vector<1x1x2xi32>
    %984 = vector.shape_cast %983 : vector<1x1x2xi32> to vector<1x2xi32>
    %985 = arith.muli %981, %984 : vector<1x2xi32>
    %986 = arith.index_cast %935 : i32 to index
    %c0_230 = arith.constant 0 : index
    %c0_231 = arith.constant 0 : index
    %987 = vector.load %arg7[%986, %c0_230, %c0_231] : memref<8x1x2xi32, #tpu.memory_space<vmem>>, vector<1x1x2xi32>
    %988 = vector.shape_cast %987 : vector<1x1x2xi32> to vector<1x2xi32>
    %989 = vector.shape_cast %985 : vector<1x2xi32> to vector<1x1x2xi32>
    tpu.vector_store %arg7[%986, %c0_230, %c0_231], %989 {strides = array<i32>} : memref<8x1x2xi32, #tpu.memory_space<vmem>>, vector<1x1x2xi32>,
    %c4_i32_232 = arith.constant 4 : i32
    %c6_i32_233 = arith.constant 6 : i32
    %990 = arith.subi %c6_i32_233, %c4_i32_232 : i32
    %991 = arith.index_cast %990 : i32 to index
    %c0_234 = arith.constant 0 : index
    %c0_235 = arith.constant 0 : index
    %992 = vector.load %arg8[%991, %c0_234, %c0_235] : memref<8x10x2xi32, #tpu.memory_space<vmem>>, vector<1x10x2xi32>
    %993 = vector.shape_cast %992 : vector<1x10x2xi32> to vector<10x2xi32>
    %c0_i32_236 = arith.constant 0 : i32
    %994 = vector.broadcast %c0_i32_236 : i32 to vector<1x2xi32>
    %995 = arith.cmpi eq, %981, %994 : vector<1x2xi32>
    %996 = vector.extract_strided_slice %993 {offsets = [0, 0], sizes = [1, 2], strides = [1, 1]} : vector<10x2xi32> to vector<1x2xi32>
    %997 = arith.select %995, %996, %12 : vector<1x2xi1>, vector<1x2xi32>
    %c1_i32_237 = arith.constant 1 : i32
    %998 = vector.broadcast %c1_i32_237 : i32 to vector<1x2xi32>
    %999 = arith.cmpi eq, %981, %998 : vector<1x2xi32>
    %1000 = vector.extract_strided_slice %993 {offsets = [1, 0], sizes = [1, 2], strides = [1, 1]} : vector<10x2xi32> to vector<1x2xi32>
    %1001 = arith.select %999, %1000, %997 : vector<1x2xi1>, vector<1x2xi32>
    %c2_i32_238 = arith.constant 2 : i32
    %1002 = vector.broadcast %c2_i32_238 : i32 to vector<1x2xi32>
    %1003 = arith.cmpi eq, %981, %1002 : vector<1x2xi32>
    %1004 = vector.extract_strided_slice %993 {offsets = [2, 0], sizes = [1, 2], strides = [1, 1]} : vector<10x2xi32> to vector<1x2xi32>
    %1005 = arith.select %1003, %1004, %1001 : vector<1x2xi1>, vector<1x2xi32>
    %c3_i32_239 = arith.constant 3 : i32
    %1006 = vector.broadcast %c3_i32_239 : i32 to vector<1x2xi32>
    %1007 = arith.cmpi eq, %981, %1006 : vector<1x2xi32>
    %1008 = vector.extract_strided_slice %993 {offsets = [3, 0], sizes = [1, 2], strides = [1, 1]} : vector<10x2xi32> to vector<1x2xi32>
    %1009 = arith.select %1007, %1008, %1005 : vector<1x2xi1>, vector<1x2xi32>
    %c4_i32_240 = arith.constant 4 : i32
    %1010 = vector.broadcast %c4_i32_240 : i32 to vector<1x2xi32>
    %1011 = arith.cmpi eq, %981, %1010 : vector<1x2xi32>
    %1012 = vector.extract_strided_slice %993 {offsets = [4, 0], sizes = [1, 2], strides = [1, 1]} : vector<10x2xi32> to vector<1x2xi32>
    %1013 = arith.select %1011, %1012, %1009 : vector<1x2xi1>, vector<1x2xi32>
    %c5_i32_241 = arith.constant 5 : i32
    %1014 = vector.broadcast %c5_i32_241 : i32 to vector<1x2xi32>
    %1015 = arith.cmpi eq, %981, %1014 : vector<1x2xi32>
    %1016 = vector.extract_strided_slice %993 {offsets = [5, 0], sizes = [1, 2], strides = [1, 1]} : vector<10x2xi32> to vector<1x2xi32>
    %1017 = arith.select %1015, %1016, %1013 : vector<1x2xi1>, vector<1x2xi32>
    %c6_i32_242 = arith.constant 6 : i32
    %1018 = vector.broadcast %c6_i32_242 : i32 to vector<1x2xi32>
    %1019 = arith.cmpi eq, %981, %1018 : vector<1x2xi32>
    %1020 = vector.extract_strided_slice %993 {offsets = [6, 0], sizes = [1, 2], strides = [1, 1]} : vector<10x2xi32> to vector<1x2xi32>
    %1021 = arith.select %1019, %1020, %1017 : vector<1x2xi1>, vector<1x2xi32>
    %c7_i32_243 = arith.constant 7 : i32
    %1022 = vector.broadcast %c7_i32_243 : i32 to vector<1x2xi32>
    %1023 = arith.cmpi eq, %981, %1022 : vector<1x2xi32>
    %1024 = vector.extract_strided_slice %993 {offsets = [7, 0], sizes = [1, 2], strides = [1, 1]} : vector<10x2xi32> to vector<1x2xi32>
    %1025 = arith.select %1023, %1024, %1021 : vector<1x2xi1>, vector<1x2xi32>
    %c8_i32_244 = arith.constant 8 : i32
    %1026 = vector.broadcast %c8_i32_244 : i32 to vector<1x2xi32>
    %1027 = arith.cmpi eq, %981, %1026 : vector<1x2xi32>
    %1028 = vector.extract_strided_slice %993 {offsets = [8, 0], sizes = [1, 2], strides = [1, 1]} : vector<10x2xi32> to vector<1x2xi32>
    %1029 = arith.select %1027, %1028, %1025 : vector<1x2xi1>, vector<1x2xi32>
    %c9_i32_245 = arith.constant 9 : i32
    %1030 = vector.broadcast %c9_i32_245 : i32 to vector<1x2xi32>
    %1031 = arith.cmpi eq, %981, %1030 : vector<1x2xi32>
    %1032 = vector.extract_strided_slice %993 {offsets = [9, 0], sizes = [1, 2], strides = [1, 1]} : vector<10x2xi32> to vector<1x2xi32>
    %1033 = arith.select %1031, %1032, %1029 : vector<1x2xi1>, vector<1x2xi32>
    %1034 = vector.broadcast %990 : i32 to vector<1x2xi32>
    %1035 = arith.cmpi eq, %1034, %763 : vector<1x2xi32>
    %1036 = arith.select %1035, %761, %1033 : vector<1x2xi1>, vector<1x2xi32>
    %1037 = arith.index_cast %990 : i32 to index
    %c0_246 = arith.constant 0 : index
    %c0_247 = arith.constant 0 : index
    %1038 = vector.load %arg2[%1037, %c0_246, %c0_247] : memref<8x1x2xi32, #tpu.memory_space<vmem>>, vector<1x1x2xi32>
    %1039 = vector.shape_cast %1038 : vector<1x1x2xi32> to vector<1x2xi32>
    %1040 = arith.muli %1036, %1039 : vector<1x2xi32>
    %1041 = arith.index_cast %990 : i32 to index
    %c0_248 = arith.constant 0 : index
    %c0_249 = arith.constant 0 : index
    %1042 = vector.load %arg7[%1041, %c0_248, %c0_249] : memref<8x1x2xi32, #tpu.memory_space<vmem>>, vector<1x1x2xi32>
    %1043 = vector.shape_cast %1042 : vector<1x1x2xi32> to vector<1x2xi32>
    %1044 = vector.shape_cast %1040 : vector<1x2xi32> to vector<1x1x2xi32>
    tpu.vector_store %arg7[%1041, %c0_248, %c0_249], %1044 {strides = array<i32>} : memref<8x1x2xi32, #tpu.memory_space<vmem>>, vector<1x1x2xi32>,
    %c5_i32_250 = arith.constant 5 : i32
    %c6_i32_251 = arith.constant 6 : i32
    %1045 = arith.subi %c6_i32_251, %c5_i32_250 : i32
    %1046 = arith.index_cast %1045 : i32 to index
    %c0_252 = arith.constant 0 : index
    %c0_253 = arith.constant 0 : index
    %1047 = vector.load %arg8[%1046, %c0_252, %c0_253] : memref<8x10x2xi32, #tpu.memory_space<vmem>>, vector<1x10x2xi32>
    %1048 = vector.shape_cast %1047 : vector<1x10x2xi32> to vector<10x2xi32>
    %c0_i32_254 = arith.constant 0 : i32
    %1049 = vector.broadcast %c0_i32_254 : i32 to vector<1x2xi32>
    %1050 = arith.cmpi eq, %1036, %1049 : vector<1x2xi32>
    %1051 = vector.extract_strided_slice %1048 {offsets = [0, 0], sizes = [1, 2], strides = [1, 1]} : vector<10x2xi32> to vector<1x2xi32>
    %1052 = arith.select %1050, %1051, %12 : vector<1x2xi1>, vector<1x2xi32>
    %c1_i32_255 = arith.constant 1 : i32
    %1053 = vector.broadcast %c1_i32_255 : i32 to vector<1x2xi32>
    %1054 = arith.cmpi eq, %1036, %1053 : vector<1x2xi32>
    %1055 = vector.extract_strided_slice %1048 {offsets = [1, 0], sizes = [1, 2], strides = [1, 1]} : vector<10x2xi32> to vector<1x2xi32>
    %1056 = arith.select %1054, %1055, %1052 : vector<1x2xi1>, vector<1x2xi32>
    %c2_i32_256 = arith.constant 2 : i32
    %1057 = vector.broadcast %c2_i32_256 : i32 to vector<1x2xi32>
    %1058 = arith.cmpi eq, %1036, %1057 : vector<1x2xi32>
    %1059 = vector.extract_strided_slice %1048 {offsets = [2, 0], sizes = [1, 2], strides = [1, 1]} : vector<10x2xi32> to vector<1x2xi32>
    %1060 = arith.select %1058, %1059, %1056 : vector<1x2xi1>, vector<1x2xi32>
    %c3_i32_257 = arith.constant 3 : i32
    %1061 = vector.broadcast %c3_i32_257 : i32 to vector<1x2xi32>
    %1062 = arith.cmpi eq, %1036, %1061 : vector<1x2xi32>
    %1063 = vector.extract_strided_slice %1048 {offsets = [3, 0], sizes = [1, 2], strides = [1, 1]} : vector<10x2xi32> to vector<1x2xi32>
    %1064 = arith.select %1062, %1063, %1060 : vector<1x2xi1>, vector<1x2xi32>
    %c4_i32_258 = arith.constant 4 : i32
    %1065 = vector.broadcast %c4_i32_258 : i32 to vector<1x2xi32>
    %1066 = arith.cmpi eq, %1036, %1065 : vector<1x2xi32>
    %1067 = vector.extract_strided_slice %1048 {offsets = [4, 0], sizes = [1, 2], strides = [1, 1]} : vector<10x2xi32> to vector<1x2xi32>
    %1068 = arith.select %1066, %1067, %1064 : vector<1x2xi1>, vector<1x2xi32>
    %c5_i32_259 = arith.constant 5 : i32
    %1069 = vector.broadcast %c5_i32_259 : i32 to vector<1x2xi32>
    %1070 = arith.cmpi eq, %1036, %1069 : vector<1x2xi32>
    %1071 = vector.extract_strided_slice %1048 {offsets = [5, 0], sizes = [1, 2], strides = [1, 1]} : vector<10x2xi32> to vector<1x2xi32>
    %1072 = arith.select %1070, %1071, %1068 : vector<1x2xi1>, vector<1x2xi32>
    %c6_i32_260 = arith.constant 6 : i32
    %1073 = vector.broadcast %c6_i32_260 : i32 to vector<1x2xi32>
    %1074 = arith.cmpi eq, %1036, %1073 : vector<1x2xi32>
    %1075 = vector.extract_strided_slice %1048 {offsets = [6, 0], sizes = [1, 2], strides = [1, 1]} : vector<10x2xi32> to vector<1x2xi32>
    %1076 = arith.select %1074, %1075, %1072 : vector<1x2xi1>, vector<1x2xi32>
    %c7_i32_261 = arith.constant 7 : i32
    %1077 = vector.broadcast %c7_i32_261 : i32 to vector<1x2xi32>
    %1078 = arith.cmpi eq, %1036, %1077 : vector<1x2xi32>
    %1079 = vector.extract_strided_slice %1048 {offsets = [7, 0], sizes = [1, 2], strides = [1, 1]} : vector<10x2xi32> to vector<1x2xi32>
    %1080 = arith.select %1078, %1079, %1076 : vector<1x2xi1>, vector<1x2xi32>
    %c8_i32_262 = arith.constant 8 : i32
    %1081 = vector.broadcast %c8_i32_262 : i32 to vector<1x2xi32>
    %1082 = arith.cmpi eq, %1036, %1081 : vector<1x2xi32>
    %1083 = vector.extract_strided_slice %1048 {offsets = [8, 0], sizes = [1, 2], strides = [1, 1]} : vector<10x2xi32> to vector<1x2xi32>
    %1084 = arith.select %1082, %1083, %1080 : vector<1x2xi1>, vector<1x2xi32>
    %c9_i32_263 = arith.constant 9 : i32
    %1085 = vector.broadcast %c9_i32_263 : i32 to vector<1x2xi32>
    %1086 = arith.cmpi eq, %1036, %1085 : vector<1x2xi32>
    %1087 = vector.extract_strided_slice %1048 {offsets = [9, 0], sizes = [1, 2], strides = [1, 1]} : vector<10x2xi32> to vector<1x2xi32>
    %1088 = arith.select %1086, %1087, %1084 : vector<1x2xi1>, vector<1x2xi32>
    %1089 = vector.broadcast %1045 : i32 to vector<1x2xi32>
    %1090 = arith.cmpi eq, %1089, %763 : vector<1x2xi32>
    %1091 = arith.select %1090, %761, %1088 : vector<1x2xi1>, vector<1x2xi32>
    %1092 = arith.index_cast %1045 : i32 to index
    %c0_264 = arith.constant 0 : index
    %c0_265 = arith.constant 0 : index
    %1093 = vector.load %arg2[%1092, %c0_264, %c0_265] : memref<8x1x2xi32, #tpu.memory_space<vmem>>, vector<1x1x2xi32>
    %1094 = vector.shape_cast %1093 : vector<1x1x2xi32> to vector<1x2xi32>
    %1095 = arith.muli %1091, %1094 : vector<1x2xi32>
    %1096 = arith.index_cast %1045 : i32 to index
    %c0_266 = arith.constant 0 : index
    %c0_267 = arith.constant 0 : index
    %1097 = vector.load %arg7[%1096, %c0_266, %c0_267] : memref<8x1x2xi32, #tpu.memory_space<vmem>>, vector<1x1x2xi32>
    %1098 = vector.shape_cast %1097 : vector<1x1x2xi32> to vector<1x2xi32>
    %1099 = vector.shape_cast %1095 : vector<1x2xi32> to vector<1x1x2xi32>
    tpu.vector_store %arg7[%1096, %c0_266, %c0_267], %1099 {strides = array<i32>} : memref<8x1x2xi32, #tpu.memory_space<vmem>>, vector<1x1x2xi32>,
    %c6_i32_268 = arith.constant 6 : i32
    %c6_i32_269 = arith.constant 6 : i32
    %1100 = arith.subi %c6_i32_269, %c6_i32_268 : i32
    %1101 = arith.index_cast %1100 : i32 to index
    %c0_270 = arith.constant 0 : index
    %c0_271 = arith.constant 0 : index
    %1102 = vector.load %arg8[%1101, %c0_270, %c0_271] : memref<8x10x2xi32, #tpu.memory_space<vmem>>, vector<1x10x2xi32>
    %1103 = vector.shape_cast %1102 : vector<1x10x2xi32> to vector<10x2xi32>
    %c0_i32_272 = arith.constant 0 : i32
    %1104 = vector.broadcast %c0_i32_272 : i32 to vector<1x2xi32>
    %1105 = arith.cmpi eq, %1091, %1104 : vector<1x2xi32>
    %1106 = vector.extract_strided_slice %1103 {offsets = [0, 0], sizes = [1, 2], strides = [1, 1]} : vector<10x2xi32> to vector<1x2xi32>
    %1107 = arith.select %1105, %1106, %12 : vector<1x2xi1>, vector<1x2xi32>
    %c1_i32_273 = arith.constant 1 : i32
    %1108 = vector.broadcast %c1_i32_273 : i32 to vector<1x2xi32>
    %1109 = arith.cmpi eq, %1091, %1108 : vector<1x2xi32>
    %1110 = vector.extract_strided_slice %1103 {offsets = [1, 0], sizes = [1, 2], strides = [1, 1]} : vector<10x2xi32> to vector<1x2xi32>
    %1111 = arith.select %1109, %1110, %1107 : vector<1x2xi1>, vector<1x2xi32>
    %c2_i32_274 = arith.constant 2 : i32
    %1112 = vector.broadcast %c2_i32_274 : i32 to vector<1x2xi32>
    %1113 = arith.cmpi eq, %1091, %1112 : vector<1x2xi32>
    %1114 = vector.extract_strided_slice %1103 {offsets = [2, 0], sizes = [1, 2], strides = [1, 1]} : vector<10x2xi32> to vector<1x2xi32>
    %1115 = arith.select %1113, %1114, %1111 : vector<1x2xi1>, vector<1x2xi32>
    %c3_i32_275 = arith.constant 3 : i32
    %1116 = vector.broadcast %c3_i32_275 : i32 to vector<1x2xi32>
    %1117 = arith.cmpi eq, %1091, %1116 : vector<1x2xi32>
    %1118 = vector.extract_strided_slice %1103 {offsets = [3, 0], sizes = [1, 2], strides = [1, 1]} : vector<10x2xi32> to vector<1x2xi32>
    %1119 = arith.select %1117, %1118, %1115 : vector<1x2xi1>, vector<1x2xi32>
    %c4_i32_276 = arith.constant 4 : i32
    %1120 = vector.broadcast %c4_i32_276 : i32 to vector<1x2xi32>
    %1121 = arith.cmpi eq, %1091, %1120 : vector<1x2xi32>
    %1122 = vector.extract_strided_slice %1103 {offsets = [4, 0], sizes = [1, 2], strides = [1, 1]} : vector<10x2xi32> to vector<1x2xi32>
    %1123 = arith.select %1121, %1122, %1119 : vector<1x2xi1>, vector<1x2xi32>
    %c5_i32_277 = arith.constant 5 : i32
    %1124 = vector.broadcast %c5_i32_277 : i32 to vector<1x2xi32>
    %1125 = arith.cmpi eq, %1091, %1124 : vector<1x2xi32>
    %1126 = vector.extract_strided_slice %1103 {offsets = [5, 0], sizes = [1, 2], strides = [1, 1]} : vector<10x2xi32> to vector<1x2xi32>
    %1127 = arith.select %1125, %1126, %1123 : vector<1x2xi1>, vector<1x2xi32>
    %c6_i32_278 = arith.constant 6 : i32
    %1128 = vector.broadcast %c6_i32_278 : i32 to vector<1x2xi32>
    %1129 = arith.cmpi eq, %1091, %1128 : vector<1x2xi32>
    %1130 = vector.extract_strided_slice %1103 {offsets = [6, 0], sizes = [1, 2], strides = [1, 1]} : vector<10x2xi32> to vector<1x2xi32>
    %1131 = arith.select %1129, %1130, %1127 : vector<1x2xi1>, vector<1x2xi32>
    %c7_i32_279 = arith.constant 7 : i32
    %1132 = vector.broadcast %c7_i32_279 : i32 to vector<1x2xi32>
    %1133 = arith.cmpi eq, %1091, %1132 : vector<1x2xi32>
    %1134 = vector.extract_strided_slice %1103 {offsets = [7, 0], sizes = [1, 2], strides = [1, 1]} : vector<10x2xi32> to vector<1x2xi32>
    %1135 = arith.select %1133, %1134, %1131 : vector<1x2xi1>, vector<1x2xi32>
    %c8_i32_280 = arith.constant 8 : i32
    %1136 = vector.broadcast %c8_i32_280 : i32 to vector<1x2xi32>
    %1137 = arith.cmpi eq, %1091, %1136 : vector<1x2xi32>
    %1138 = vector.extract_strided_slice %1103 {offsets = [8, 0], sizes = [1, 2], strides = [1, 1]} : vector<10x2xi32> to vector<1x2xi32>
    %1139 = arith.select %1137, %1138, %1135 : vector<1x2xi1>, vector<1x2xi32>
    %c9_i32_281 = arith.constant 9 : i32
    %1140 = vector.broadcast %c9_i32_281 : i32 to vector<1x2xi32>
    %1141 = arith.cmpi eq, %1091, %1140 : vector<1x2xi32>
    %1142 = vector.extract_strided_slice %1103 {offsets = [9, 0], sizes = [1, 2], strides = [1, 1]} : vector<10x2xi32> to vector<1x2xi32>
    %1143 = arith.select %1141, %1142, %1139 : vector<1x2xi1>, vector<1x2xi32>
    %1144 = vector.broadcast %1100 : i32 to vector<1x2xi32>
    %1145 = arith.cmpi eq, %1144, %763 : vector<1x2xi32>
    %1146 = arith.select %1145, %761, %1143 : vector<1x2xi1>, vector<1x2xi32>
    %1147 = arith.index_cast %1100 : i32 to index
    %c0_282 = arith.constant 0 : index
    %c0_283 = arith.constant 0 : index
    %1148 = vector.load %arg2[%1147, %c0_282, %c0_283] : memref<8x1x2xi32, #tpu.memory_space<vmem>>, vector<1x1x2xi32>
    %1149 = vector.shape_cast %1148 : vector<1x1x2xi32> to vector<1x2xi32>
    %1150 = arith.muli %1146, %1149 : vector<1x2xi32>
    %1151 = arith.index_cast %1100 : i32 to index
    %c0_284 = arith.constant 0 : index
    %c0_285 = arith.constant 0 : index
    %1152 = vector.load %arg7[%1151, %c0_284, %c0_285] : memref<8x1x2xi32, #tpu.memory_space<vmem>>, vector<1x1x2xi32>
    %1153 = vector.shape_cast %1152 : vector<1x1x2xi32> to vector<1x2xi32>
    %1154 = vector.shape_cast %1150 : vector<1x2xi32> to vector<1x1x2xi32>
    tpu.vector_store %arg7[%1151, %c0_284, %c0_285], %1154 {strides = array<i32>} : memref<8x1x2xi32, #tpu.memory_space<vmem>>, vector<1x1x2xi32>,
    %c7_i32_286 = arith.constant 7 : i32
    return
  }
  func.func @transform_0(%arg0: i32) -> (i32, i32, i32) {
    %c0_i32 = arith.constant 0 : i32
    %c0_i32_0 = arith.constant 0 : i32
    %c0_i32_1 = arith.constant 0 : i32
    return %c0_i32, %c0_i32_0, %arg0 : i32, i32, i32
  }
  func.func @transform_1(%arg0: i32) -> (i32, i32, i32) {
    %c0_i32 = arith.constant 0 : i32
    %c0_i32_0 = arith.constant 0 : i32
    %c0_i32_1 = arith.constant 0 : i32
    return %c0_i32, %c0_i32_0, %arg0 : i32, i32, i32
  }
  func.func @transform_2(%arg0: i32) -> (i32, i32) {
    %c0_i32 = arith.constant 0 : i32
    %c0_i32_0 = arith.constant 0 : i32
    return %c0_i32, %arg0 : i32, i32
  }
  func.func @transform_3(%arg0: i32) -> (i32, i32) {
    %c0_i32 = arith.constant 0 : i32
    %c0_i32_0 = arith.constant 0 : i32
    %c0_i32_1 = arith.constant 0 : i32
    return %c0_i32, %c0_i32_0 : i32, i32
  }
  func.func @transform_4(%arg0: i32) -> (i32, i32) {
    %c0_i32 = arith.constant 0 : i32
    %c0_i32_0 = arith.constant 0 : i32
    %c0_i32_1 = arith.constant 0 : i32
    return %c0_i32, %c0_i32_0 : i32, i32
  }
  func.func @transform_5(%arg0: i32) -> (i32, i32) {
    %c0_i32 = arith.constant 0 : i32
    %c0_i32_0 = arith.constant 0 : i32
    return %c0_i32, %arg0 : i32, i32
  }
  func.func @transform_6(%arg0: i32) -> (i32, i32, i32) {
    %c0_i32 = arith.constant 0 : i32
    %c0_i32_0 = arith.constant 0 : i32
    %c0_i32_1 = arith.constant 0 : i32
    return %c0_i32, %c0_i32_0, %arg0 : i32, i32, i32
  }
}

</mosaic_0001>

<bundles_post_ra>
// kernel: tpu_custom_call.1
= control target key start
LH: loop header
LB: loop body
LE: loop exit
PB: predicated region body
PF: predicated region fallthrough
CT: control target
= control target key end

     0   :  { %v1429_v1 = vmov 3   ;;  %v1430_v2 = vmov 1   ;;  %v1431_v3 = vmov 8   ;;  %s2245_s0 = inlined_call_operand.vmem [shape: f32[8,10,2], index: 0, kind: input, shape index: {}]   ;;  %s2246_s1 = inlined_call_operand.vmem [shape: s32[8,1,2], index: 1, kind: input, shape index: {}]   ;;  %s2247_s2 = inlined_call_operand.vmem [shape: s32[1,2], index: 2, kind: input, shape index: {}]   ;;  %s2248_s3 = inlined_call_operand.vmem [shape: f32[10,10], index: 3, kind: input, shape index: {}]   ;;  %s2249_s4 = inlined_call_operand.vmem [shape: f32[10,1], index: 4, kind: input, shape index: {}]   ;;  %s2250_s5 = inlined_call_operand.hbm [shape: f32[1,2], index: 5, kind: output, shape index: {0}]   ;;  %s2251_s6 = inlined_call_operand.vmem [shape: s32[8,1,2], index: 6, kind: output, shape index: {1}]  }
   0x1   :  { %v23_v0 = vld [vmem:[%s2248_s3] sm:$0xff]  ;;  %1383 = vset.pattern.permute.xlu2 %v1429_v1  ;;  %1381 = vset.pattern.permute.xlu1 %v1430_v2 }
   0x2   :  { %1379 = vset.pattern.permute.xlu0 %v1431_v3  ;;  %85 = vperm.xlu2 %1383, %v23_v0  }
   0x3   :  { %12 = vsyncpa [#allocation4], 0  ;;  %51 = vperm.xlu1 %1381, %v23_v0   ;;  %29 = vperm.xlu0 %1379, %v23_v0   ;;  %v1432_v4 = vmov 4   ;;  %v1433_v5 = vmov 2   ;;  %v1434_v6 = vmov 0   ;;  %v1435_v8 = vmov 5  }
   0x4   :  { %v24_v7 = vld [vmem:[%s2248_s3 + $0x8] sm:$0x3]  ;;  %v1436_v9 = vmov 6   ;;  %v1437_v10 = vmov 7   ;;  %v1438_v11 = vmov 9   ;;  %v25_v14 = vld [vmem:[%s2245_s0] sm:$0xff] }
   0x5   :  { %vm203_vm0 = vcmask 15360   ;;  %v26_v38 = vld [vmem:[%s2245_s0 + $0x8] sm:$0x3]  ;;  %v1333_v43 = vld [vmem:[%s2246_s1 + $0x1] sm:$0x1]  ;;  %vm205_vm9 = vcmask 9216  }
   0x6   :  { %vm197_vm6 = vcmp.eq.s32.totalorder %v1333_v43, 0  ;;  %vm212_vm7 = vcmp.ne.s32.totalorder %v1333_v43, 0  ;;  %s1439_s23 = smov [#allocation3]  }
   0x7   :  { %v198_v52 = vsel %vm197_vm6, 1, %v1434_v6  ;;  %v213_v56 = vsel %vm212_vm7, 1, %v1434_v6  ;;  %s1318_s24 = sshll.u32 %s1439_s23, 4  ;;  %s1319_s24 = int_to_ptr.vmem [resolvable:$true] %s1318_s24 }
   0x8   :  { %v199_v59 = vperm.slane %v198_v52, 0 }
   0xa   :  { %1384 = vset.pattern.permute.xlu2 %v1432_v4  ;;  %vm1572_vm12 = vcmp.eq.s32.totalorder %v199_v59, 1 }
   0xb   :  { %1382 = vset.pattern.permute.xlu1 %v1433_v5  ;;  %1380 = vset.pattern.permute.xlu0 %v1434_v6 }
   0xc   :  { %102 = vperm.xlu2 %1384, %v23_v0   ;;  %68 = vperm.xlu1 %1382, %v23_v0  }
   0xd   :  { %40 = vperm.xlu0 %1380, %v23_v0  }
  0x14   :  { %1386 = vset.pattern.permute.xlu2 %v1431_v3  ;;  %1385 = vset.pattern.permute.xlu1 %v1435_v8 }
  0x15   :  { %1387 = vset.pattern.permute.xlu0 %v1436_v9  ;;  %34 = vperm.xlu2 %1386, %v24_v7  }
  0x16   :  { %119 = vperm.xlu1 %1385, %v23_v0   ;;  %136 = vperm.xlu0 %1387, %v23_v0  }
  0x1d   :  { %1389 = vset.pattern.permute.xlu2 %v1434_v6 }
  0x1e   :  { %1388 = vset.pattern.permute.xlu1 %v1437_v10  ;;  %1392 = vset.pattern.permute.xlu0 %v1438_v11 }
  0x1f   :  { %44 = vperm.xlu2 %1389, %v24_v7   ;;  %153 = vperm.xlu1 %1388, %v23_v0  }
  0x20   :  { %179 = vperm.xlu0 %1392, %v23_v0  }
  0x27   :  { %1391 = vset.pattern.permute.xlu2 %v1433_v5  ;;  %1390 = vset.pattern.permute.xlu1 %v1430_v2 }
  0x28   :  { %1397 = vset.pattern.permute.xlu0 %v1437_v10  ;;  %72 = vperm.xlu2 %1391, %v24_v7  }
  0x29   :  { %55 = vperm.xlu1 %1390, %v24_v7   ;;  %157 = vperm.xlu0 %1397, %v24_v7  }
  0x30   :  { %1394 = vset.pattern.permute.xlu2 %v1432_v4 }
  0x31   :  { %1393 = vset.pattern.permute.xlu1 %v1429_v1  ;;  %106 = vperm.xlu2 %1394, %v24_v7   ;;  %v214_v1 = vperm.slane %v213_v56, 0 }
  0x32   :  { %89 = vperm.xlu1 %1393, %v24_v7   ;;  %1401 = vset.pattern.permute.xlu0 %v1434_v6 }
  0x33   :  { %vm1581_vm14 = vcmp.eq.s32.totalorder %v214_v1, 1 }
  0x39   :  { %1396 = vset.pattern.permute.xlu2 %v1436_v9 }
  0x3a   :  { %1395 = vset.pattern.permute.xlu1 %v1435_v8  ;;  %140 = vperm.xlu2 %1396, %v24_v7  }
  0x3b   :  { %123 = vperm.xlu1 %1395, %v24_v7  }
  0x42   :  { %1399 = vset.pattern.permute.xlu2 %v1434_v6 }
  0x43   :  { %1398 = vset.pattern.permute.xlu1 %v1438_v11 }
  0x44   :  { %183 = vperm.xlu1 %1398, %v24_v7   ;;  %v1334_v7 = vld [vmem:[%s2245_s0 + $0x10] sm:$0xff] }
  0x4c   :  { %1400 = vset.pattern.permute.xlu1 %v1434_v6 }
  0x5c   :  { %v1486_v12 = vpop.permute.xlu2 %85 }
  0x66   :  { %v1498_v17 = vpop.permute.xlu2 %102 }
  0x6f   :  { %v1518_v29 = vpop.permute.xlu2 %34 }
  0x70   :  { %v1545_v44 = vadd.f32 %v1518_v29, %v26_v38 }
  0x72   :  { %v169_v50 = vperm.slane %v1545_v44, 0  ;;  %v186_v62 = vperm.slane %v1545_v44, 1 }
  0x75   :  { %v1488_v13 = vpop.permute.xlu1 %51  ;;  %v1493_v15 = vpop.permute.xlu0 %29 }
  0x76   :  { %v1496_v16 = vadd.f32 %v1493_v15, %v25_v14  ;;  %v170_v60 = vadd.f32 %v169_v50, %v1493_v15 }
  0x78   :  { %v47_v18 = vperm.slane %v1496_v16, 0  ;;  %v58_v19 = vperm.slane %v1496_v16, 1  ;;  %v75_v21 = vperm.slane %v1496_v16, 2  ;;  %v92_v25 = vperm.slane %v1496_v16, 3 }
  0x79   :  { %v109_v27 = vperm.slane %v1496_v16, 4  ;;  %v126_v32 = vperm.slane %v1496_v16, 5  ;;  %v143_v37 = vperm.slane %v1496_v16, 6  ;;  %v1551_v48 = vpop.permute.xlu2 %44  ;;  %v160_v49 = vperm.slane %v1496_v16, 7 }
  0x7a   :  { %v59_v23 = vadd.f32 %v58_v19, %v1488_v13  ;;  %v93_v30 = vadd.f32 %v92_v25, %v1486_v12 }
  0x7b   :  { %v110_v33 = vadd.f32 %v109_v27, %v1498_v17 }
  0x7e   :  { %v1502_v20 = vpop.permute.xlu1 %68 }
  0x7f   :  { %v1505_v22 = vpop.permute.xlu0 %40  ;;  %v76_v26 = vadd.f32 %v75_v21, %v1502_v20 }
  0x80   :  { %v48_v24 = vadd.f32 %v47_v18, %v1505_v22 }
  0x82   :  { %vm61_vm1 = vcmp.gt.f32.partialorder %v59_v23, %v48_v24  ;;  %v1579_v8 = vpop.permute.xlu2 %72 }
  0x83   :  { %v63_v28 = vsel %vm61_vm1, %v59_v23, %v48_v24  ;;  %v65_v34 = vsel %vm61_vm1, 1, %v1434_v6 }
  0x84   :  { %vm78_vm2 = vcmp.gt.f32.partialorder %v76_v26, %v63_v28 }
  0x85   :  { %v80_v31 = vsel %vm78_vm2, %v76_v26, %v63_v28  ;;  %v82_v42 = vsel %vm78_vm2, 2, %v65_v34  ;;  %v49_v26 = vadd.f32 %v47_v18, %v1551_v48 }
  0x86   :  { %vm95_vm3 = vcmp.gt.f32.partialorder %v93_v30, %v80_v31 }
  0x87   :  { %v97_v35 = vsel %vm95_vm3, %v93_v30, %v80_v31  ;;  %v99_v46 = vsel %vm95_vm3, 3, %v82_v42 }
  0x88   :  { %v1529_v36 = vpop.permute.xlu1 %119  ;;  %vm112_vm4 = vcmp.gt.f32.partialorder %v110_v33, %v97_v35  ;;  %v1539_v41 = vpop.permute.xlu0 %136 }
  0x89   :  { %v114_v39 = vsel %vm112_vm4, %v110_v33, %v97_v35  ;;  %v127_v40 = vadd.f32 %v126_v32, %v1529_v36  ;;  %v144_v45 = vadd.f32 %v143_v37, %v1539_v41  ;;  %v116_v51 = vsel %vm112_vm4, 4, %v99_v46 }
  0x8b   :  { %vm129_vm5 = vcmp.gt.f32.partialorder %v127_v40, %v114_v39 }
  0x8c   :  { %v131_v47 = vsel %vm129_vm5, %v127_v40, %v114_v39  ;;  %v133_v53 = vsel %vm129_vm5, 5, %v116_v51  ;;  %v77_v39 = vadd.f32 %v75_v21, %v1579_v8  ;;  %v1611_v40 = vpop.permute.xlu2 %106 }
  0x8d   :  { %vm146_vm8 = vcmp.gt.f32.partialorder %v144_v45, %v131_v47  ;;  %v111_v59 = vadd.f32 %v109_v27, %v1611_v40 }
  0x8e   :  { %v148_v58 = vsel %vm146_vm8, %v144_v45, %v131_v47  ;;  %v150_v61 = vsel %vm146_vm8, 6, %v133_v53  ;;  %v858_v53 = vld [vmem:[%s2249_s4 + $0x8] sm:$0x3] }
  0x8f   :  { %866 = vperm.xlu1 %1400, %v858_v53  }
  0x91   :  { %v1557_v54 = vpop.permute.xlu1 %153 }
  0x92   :  { %v161_v55 = vadd.f32 %v160_v49, %v1557_v54  ;;  %v1563_v57 = vpop.permute.xlu0 %179 }
  0x93   :  { %v187_v2 = vadd.f32 %v186_v62, %v1563_v57 }
  0x94   :  { %vm163_vm10 = vcmp.gt.f32.partialorder %v161_v55, %v148_v58 }
  0x95   :  { %v165_v63 = vsel %vm163_vm10, %v161_v55, %v148_v58  ;;  %v167_v0 = vsel %vm163_vm10, 7, %v150_v61  ;;  %v857_v55 = vld [vmem:[%s2249_s4] sm:$0xff]  ;;  %v1643_v61 = vpop.permute.xlu2 %140 }
  0x96   :  { %vm172_vm11 = vcmp.gt.f32.partialorder %v170_v60, %v165_v63  ;;  %861 = vperm.xlu2 %1399, %v857_v55   ;;  %v145_v27 = vadd.f32 %v143_v37, %v1643_v61 }
  0x97   :  { %v174_v3 = vsel %vm172_vm11, %v170_v60, %v165_v63  ;;  %v176_v4 = vsel %vm172_vm11, 8, %v167_v0 }
  0x98   :  { %vm189_vm13 = vcmp.gt.f32.partialorder %v187_v2, %v174_v3 }
  0x99   :  { %v191_v9 = vsel %vm189_vm13, %v187_v2, %v174_v3  ;;  %v193_v10 = vsel %vm189_vm13, 9, %v176_v4 }
  0x9a   :  { %v201_v14 = vsel %vm1572_vm12, 0, %v193_v10  ;;  %v210_v23 = vadd.f32 %v1334_v7, %v191_v9 }
  0x9b   :  { %v1587_v24 = vpop.permute.xlu1 %55  ;;  %204 = vst.msk [vmem:[#allocation2] sm:$0xff] %vm203_vm0, %v201_v14  ;;  %v1655_v4 = vpop.permute.xlu0 %157 }
  0x9c   :  { %v60_v28 = vadd.f32 %v58_v19, %v1587_v24  ;;  %v1599_v30 = vsel %vm1581_vm14, %v210_v23, %v1496_v16  ;;  %v162_v37 = vadd.f32 %v160_v49, %v1655_v4 }
  0x9d   :  { %v218_v31 = vperm.slane %v1599_v30, 0  ;;  %v221_v33 = vperm.slane %v1599_v30, 1  ;;  %v230_v34 = vperm.slane %v1599_v30, 2  ;;  %v239_v19 = vperm.slane %v1599_v30, 3 }
  0x9e   :  { %vm62_vm15 = vcmp.gt.f32.partialorder %v60_v28, %v49_v26  ;;  %v248_v52 = vperm.slane %v1599_v30, 4  ;;  %v257_v0 = vperm.slane %v1599_v30, 5 }
  0x9f   :  { %v64_v35 = vsel %vm62_vm15, %v60_v28, %v49_v26  ;;  %v219_v18 = vadd.f32 %v218_v31, %v1505_v22  ;;  %v222_v38 = vadd.f32 %v221_v33, %v1488_v13  ;;  %v231_v42 = vadd.f32 %v230_v34, %v1502_v20 }
  0xa0   :  { %vm79_vm2 = vcmp.gt.f32.partialorder %v77_v39, %v64_v35  ;;  %v240_v46 = vadd.f32 %v239_v19, %v1486_v12  ;;  %v249_v60 = vadd.f32 %v248_v52, %v1498_v17  ;;  %v258_v23 = vadd.f32 %v257_v0, %v1529_v36 }
  0xa1   :  { %vm224_vm1 = vcmp.gt.f32.partialorder %v222_v38, %v219_v18  ;;  %v81_v51 = vsel %vm79_vm2, %v77_v39, %v64_v35  ;;  %v266_v28 = vperm.slane %v1599_v30, 6  ;;  %v1336_v35 = vld [vmem:[%s2246_s1 + $0x2] sm:$0x1]  ;;  %v220_v16 = vadd.f32 %v218_v31, %v1551_v48 }
  0xa2   :  { %v226_v43 = vsel %vm224_vm1, %v222_v38, %v219_v18  ;;  %v228_v10 = vsel %vm224_vm1, 1, %v1434_v6  ;;  %v275_v18 = vperm.slane %v1599_v30, 7  ;;  %v223_v49 = vadd.f32 %v221_v33, %v1587_v24 }
  0xa3   :  { %vm233_vm3 = vcmp.gt.f32.partialorder %v231_v42, %v226_v43 }
  0xa4   :  { %v1617_v45 = vpop.permute.xlu1 %89  ;;  %v235_v47 = vsel %vm233_vm3, %v231_v42, %v226_v43  ;;  %v237_v38 = vsel %vm233_vm3, 2, %v228_v10  ;;  %v267_v42 = vadd.f32 %v266_v28, %v1539_v41  ;;  %vm225_vm3 = vcmp.gt.f32.partialorder %v223_v49, %v220_v16  ;;  %v1339_v10 = vld [vmem:[%s2246_s1 + $0x3] sm:$0x1] }
  0xa5   :  { %v94_v21 = vadd.f32 %v92_v25, %v1617_v45  ;;  %vm242_vm4 = vcmp.gt.f32.partialorder %v240_v46, %v235_v47  ;;  %v66_v25 = vsel %vm62_vm15, 1, %v1434_v6  ;;  %vm304_vm15 = vcmp.eq.s32.totalorder %v1336_v35, 0 }
  0xa6   :  { %v244_v58 = vsel %vm242_vm4, %v240_v46, %v235_v47  ;;  %v83_v63 = vsel %vm79_vm2, 2, %v66_v25  ;;  %v246_v25 = vsel %vm242_vm4, 3, %v237_v38  ;;  %v232_v46 = vadd.f32 %v230_v34, %v1579_v8  ;;  %v1335_v47 = vld [vmem:[%s2245_s0 + $0x18] sm:$0x3] }
  0xa7   :  { %vm96_vm5 = vcmp.gt.f32.partialorder %v94_v21, %v81_v51  ;;  %vm251_vm7 = vcmp.gt.f32.partialorder %v249_v60, %v244_v58  ;;  %v250_v34 = vadd.f32 %v248_v52, %v1611_v40  ;;  %v227_v52 = vsel %vm225_vm3, %v223_v49, %v220_v16 }
  0xa8   :  { %v98_v56 = vsel %vm96_vm5, %v94_v21, %v81_v51  ;;  %v100_v1 = vsel %vm96_vm5, 3, %v83_v63  ;;  %v253_v9 = vsel %vm251_vm7, %v249_v60, %v244_v58  ;;  %v171_v51 = vadd.f32 %v169_v50, %v1518_v29 }
  0xa9   :  { %vm113_vm6 = vcmp.gt.f32.partialorder %v111_v59, %v98_v56  ;;  %vm260_vm11 = vcmp.gt.f32.partialorder %v258_v23, %v253_v9  ;;  %v1684_v50 = vadd.f32 %v275_v18, %v1655_v4  ;;  %v305_v63 = vsel %vm304_vm15, 1, %v1434_v6 }
  0xaa   :  { %v115_v7 = vsel %vm113_vm6, %v111_v59, %v98_v56  ;;  %v117_v14 = vsel %vm113_vm6, 4, %v100_v1  ;;  %v262_v53 = vsel %vm260_vm11, %v258_v23, %v253_v9  ;;  %v276_v59 = vadd.f32 %v275_v18, %v1557_v54 }
  0xab   :  { %vm269_vm2 = vcmp.gt.f32.partialorder %v267_v42, %v262_v53  ;;  %v255_v1 = vsel %vm251_vm7, 4, %v246_v25  ;;  %vm318_vm5 = vcmp.ne.s32.totalorder %v1336_v35, 0  ;;  %vm410_vm6 = vcmp.eq.s32.totalorder %v1339_v10, 0 }
  0xac   :  { %v271_v58 = vsel %vm269_vm2, %v267_v42, %v262_v53  ;;  %v229_v5 = vsel %vm225_vm3, 1, %v1434_v6  ;;  %v1735_v16 = vsel %vm410_vm6, 1, %v1434_v6 }
  0xad   :  { %v1647_v2 = vpop.permute.xlu1 %123  ;;  %vm278_vm7 = vcmp.gt.f32.partialorder %v276_v59, %v271_v58 }
  0xae   :  { %v128_v3 = vadd.f32 %v126_v32, %v1647_v2 }
  0xb0   :  { %vm130_vm8 = vcmp.gt.f32.partialorder %v128_v3, %v115_v7 }
  0xb1   :  { %v132_v26 = vsel %vm130_vm8, %v128_v3, %v115_v7  ;;  %v134_v32 = vsel %vm130_vm8, 5, %v117_v14 }
  0xb2   :  { %vm147_vm10 = vcmp.gt.f32.partialorder %v145_v27, %v132_v26 }
  0xb3   :  { %v149_v39 = vsel %vm147_vm10, %v145_v27, %v132_v26  ;;  %v151_v21 = vsel %vm147_vm10, 6, %v134_v32  ;;  %v306_v26 = vperm.slane %v305_v63, 0  ;;  %v264_v32 = vsel %vm260_vm11, 5, %v255_v1 }
  0xb4   :  { %vm164_vm13 = vcmp.gt.f32.partialorder %v162_v37, %v149_v39  ;;  %v273_v38 = vsel %vm269_vm2, 6, %v264_v32  ;;  %vm424_vm10 = vcmp.ne.s32.totalorder %v1339_v10, 0 }
  0xb5   :  { %v166_v55 = vsel %vm164_vm13, %v162_v37, %v149_v39  ;;  %v168_v56 = vsel %vm164_vm13, 7, %v151_v21  ;;  %v268_v37 = vadd.f32 %v266_v28, %v1643_v61  ;;  %vm1724_vm8 = vcmp.eq.s32.totalorder %v306_v26, 1 }
  0xb6   :  { %v1680_v43 = vpop.permute.xlu1 %183  ;;  %vm173_vm1 = vcmp.gt.f32.partialorder %v171_v51, %v166_v55 }
  0xb7   :  { %v175_v31 = vsel %vm173_vm1, %v171_v51, %v166_v55  ;;  %v188_v33 = vadd.f32 %v186_v62, %v1680_v43  ;;  %v177_v3 = vsel %vm173_vm1, 8, %v168_v56  ;;  %v241_v62 = vadd.f32 %v239_v19, %v1617_v45 }
  0xb8   :  { %v319_v19 = vsel %vm318_vm5, 1, %v1434_v6  ;;  %v280_v51 = vsel %vm278_vm7, %v276_v59, %v271_v58  ;;  %v282_v55 = vsel %vm278_vm7, 7, %v273_v38  ;;  %v412_v58 = vperm.slane %v1735_v16, 0 }
  0xb9   :  { %vm190_vm4 = vcmp.gt.f32.partialorder %v188_v33, %v175_v31  ;;  %v320_v11 = vperm.slane %v319_v19, 0 }
  0xba   :  { %v192_v27 = vsel %vm190_vm4, %v188_v33, %v175_v31  ;;  %v194_v7 = vsel %vm190_vm4, 9, %v177_v3  ;;  %v1743_v31 = vsel %vm424_vm10, 1, %v1434_v6 }
  0xbb   :  { %v202_v60 = vsel %vm1572_vm12, 0, %v194_v7  ;;  %v211_v14 = vadd.f32 %v1335_v47, %v192_v27  ;;  %vm234_vm12 = vcmp.gt.f32.partialorder %v232_v46, %v227_v52  ;;  %vm1745_vm1 = vcmp.eq.s32.totalorder %v320_v11, 1 }
  0xbc   :  { %206 = vst.msk [vmem:[#allocation2 + $0x8] sm:$0x3] %vm205_vm9, %v202_v60  ;;  %v236_v18 = vsel %vm234_vm12, %v232_v46, %v227_v52  ;;  %v238_v21 = vsel %vm234_vm12, 2, %v229_v5  ;;  %v426_v60 = vperm.slane %v1743_v31, 0 }
  0xbd   :  { %v1717_v35 = vsel %vm1581_vm14, %v211_v14, %v1545_v44  ;;  %vm243_vm14 = vcmp.gt.f32.partialorder %v241_v62, %v236_v18  ;;  %v259_v44 = vadd.f32 %v257_v0, %v1647_v2  ;;  %v1337_v0 = vld [vmem:[%s2245_s0 + $0x20] sm:$0xff] }
  0xbe   :  { %v284_v9 = vperm.slane %v1717_v35, 0  ;;  %v293_v23 = vperm.slane %v1717_v35, 1  ;;  %v245_v49 = vsel %vm243_vm14, %v241_v62, %v236_v18  ;;  %v247_v53 = vsel %vm243_vm14, 3, %v238_v21 }
  0xbf   :  { %vm252_vm13 = vcmp.gt.f32.partialorder %v250_v34, %v245_v49 }
  0xc0   :  { %v285_v39 = vadd.f32 %v284_v9, %v1493_v15  ;;  %v294_v25 = vadd.f32 %v293_v23, %v1563_v57  ;;  %v254_v33 = vsel %vm252_vm13, %v250_v34, %v245_v49  ;;  %v256_v59 = vsel %vm252_vm13, 4, %v247_v53 }
  0xc1   :  { %vm261_vm2 = vcmp.gt.f32.partialorder %v259_v44, %v254_v33  ;;  %v286_v62 = vadd.f32 %v284_v9, %v1518_v29  ;;  %v295_v26 = vadd.f32 %v293_v23, %v1680_v43 }
  0xc2   :  { %vm287_vm11 = vcmp.gt.f32.partialorder %v285_v39, %v280_v51  ;;  %v263_v1 = vsel %vm261_vm2, %v259_v44, %v254_v33  ;;  %v265_v3 = vsel %vm261_vm2, 5, %v256_v59 }
  0xc3   :  { %v289_v42 = vsel %vm287_vm11, %v285_v39, %v280_v51  ;;  %v291_v56 = vsel %vm287_vm11, 8, %v282_v55  ;;  %vm270_vm3 = vcmp.gt.f32.partialorder %v268_v37, %v263_v1  ;;  %v1338_v39 = vld [vmem:[%s2245_s0 + $0x28] sm:$0x3] }
  0xc4   :  { %vm296_vm15 = vcmp.gt.f32.partialorder %v294_v25, %v289_v42  ;;  %v272_v10 = vsel %vm270_vm3, %v268_v37, %v263_v1  ;;  %v274_v34 = vsel %vm270_vm3, 6, %v265_v3  ;;  %vm1808_vm3 = vcmp.eq.s32.totalorder %v412_v58, 1 }
  0xc5   :  { %v298_v47 = vsel %vm296_vm15, %v294_v25, %v289_v42  ;;  %v300_v63 = vsel %vm296_vm15, 9, %v291_v56  ;;  %vm279_vm4 = vcmp.gt.f32.partialorder %v1684_v50, %v272_v10 }
  0xc6   :  { %v316_v27 = vadd.f32 %v1337_v0, %v298_v47  ;;  %v308_v7 = vsel %vm1724_vm8, 0, %v300_v63  ;;  %v281_v32 = vsel %vm279_vm4, %v1684_v50, %v272_v10  ;;  %v283_v37 = vsel %vm279_vm4, 7, %v274_v34 }
  0xc7   :  { %311 = vst.msk [vmem:[#allocation2 + $0x10] sm:$0xff] %vm203_vm0, %v308_v7  ;;  %vm288_vm5 = vcmp.gt.f32.partialorder %v286_v62, %v281_v32 }
  0xc8   :  { %v1759_v14 = vsel %vm1745_vm1, %v316_v27, %v1599_v30  ;;  %v290_v18 = vsel %vm288_vm5, %v286_v62, %v281_v32  ;;  %v292_v38 = vsel %vm288_vm5, 8, %v283_v37  ;;  %v1787_v62 = vld [vmem:[%s2246_s1 + $0x4] sm:$0x1] }
  0xc9   :  { %v324_v19 = vperm.slane %v1759_v14, 0  ;;  %v327_v52 = vperm.slane %v1759_v14, 1  ;;  %v336_v5 = vperm.slane %v1759_v14, 2  ;;  %v345_v9 = vperm.slane %v1759_v14, 3 }
  0xca   :  { %vm297_vm6 = vcmp.gt.f32.partialorder %v295_v26, %v290_v18  ;;  %v354_v44 = vperm.slane %v1759_v14, 4  ;;  %vm516_vm2 = vcmp.eq.s32.totalorder %v1787_v62, 0 }
  0xcb   :  { %v325_v11 = vadd.f32 %v324_v19, %v1505_v22  ;;  %v326_v30 = vadd.f32 %v324_v19, %v1551_v48  ;;  %v328_v23 = vadd.f32 %v327_v52, %v1488_v13  ;;  %v329_v50 = vadd.f32 %v327_v52, %v1587_v24 }
  0xcc   :  { %v299_v21 = vsel %vm297_vm6, %v295_v26, %v290_v18  ;;  %v301_v51 = vsel %vm297_vm6, 9, %v292_v38  ;;  %v337_v49 = vadd.f32 %v336_v5, %v1502_v20  ;;  %v338_v53 = vadd.f32 %v336_v5, %v1579_v8  ;;  %v1802_v18 = vld [vmem:[%s2246_s1 + $0x5] sm:$0x1] }
  0xcd   :  { %v309_v55 = vsel %vm1724_vm8, 0, %v301_v51  ;;  %vm330_vm12 = vcmp.gt.f32.partialorder %v328_v23, %v325_v11  ;;  %vm331_vm7 = vcmp.gt.f32.partialorder %v329_v50, %v326_v30  ;;  %v346_v25 = vadd.f32 %v345_v9, %v1486_v12 }
  0xce   :  { %312 = vst.msk [vmem:[#allocation2 + $0x18] sm:$0x3] %vm205_vm9, %v309_v55  ;;  %v332_v0 = vsel %vm330_vm12, %v328_v23, %v325_v11  ;;  %v333_v42 = vsel %vm331_vm7, %v329_v50, %v326_v30  ;;  %v334_v56 = vsel %vm330_vm12, 1, %v1434_v6  ;;  %v335_v33 = vsel %vm331_vm7, 1, %v1434_v6 }
  0xcf   :  { %v317_v59 = vadd.f32 %v1338_v39, %v299_v21  ;;  %vm339_vm14 = vcmp.gt.f32.partialorder %v337_v49, %v332_v0  ;;  %vm340_vm10 = vcmp.gt.f32.partialorder %v338_v53, %v333_v42  ;;  %v347_v47 = vadd.f32 %v345_v9, %v1617_v45 }
  0xd0   :  { %v341_v63 = vsel %vm339_vm14, %v337_v49, %v332_v0  ;;  %v342_v28 = vsel %vm340_vm10, %v338_v53, %v333_v42  ;;  %v343_v1 = vsel %vm339_vm14, 2, %v334_v56  ;;  %v344_v3 = vsel %vm340_vm10, 2, %v335_v33 }
  0xd1   :  { %vm348_vm8 = vcmp.gt.f32.partialorder %v346_v25, %v341_v63  ;;  %vm349_vm11 = vcmp.gt.f32.partialorder %v347_v47, %v342_v28  ;;  %v355_v27 = vadd.f32 %v354_v44, %v1498_v17  ;;  %v356_v7 = vadd.f32 %v354_v44, %v1611_v40 }
  0xd2   :  { %v350_v10 = vsel %vm348_vm8, %v346_v25, %v341_v63  ;;  %v351_v34 = vsel %vm349_vm11, %v347_v47, %v342_v28  ;;  %v352_v26 = vsel %vm348_vm8, 3, %v343_v1  ;;  %v353_v32 = vsel %vm349_vm11, 3, %v344_v3 }
  0xd3   :  { %vm357_vm13 = vcmp.gt.f32.partialorder %v355_v27, %v350_v10  ;;  %vm358_vm15 = vcmp.gt.f32.partialorder %v356_v7, %v351_v34  ;;  %v363_v19 = vperm.slane %v1759_v14, 5  ;;  %v372_v52 = vperm.slane %v1759_v14, 6 }
  0xd4   :  { %v1797_v37 = vsel %vm1745_vm1, %v317_v59, %v1717_v35  ;;  %v359_v5 = vsel %vm357_vm13, %v355_v27, %v350_v10  ;;  %v360_v9 = vsel %vm358_vm15, %v356_v7, %v351_v34  ;;  %v361_v38 = vsel %vm357_vm13, 4, %v352_v26  ;;  %v1340_v7 = vld [vmem:[%s2245_s0 + $0x30] sm:$0xff]  ;;  %v1341_v10 = vld [vmem:[%s2245_s0 + $0x38] sm:$0x3] }
  0xd5   :  { %v362_v11 = vsel %vm358_vm15, 4, %v353_v32  ;;  %v364_v30 = vadd.f32 %v363_v19, %v1529_v36  ;;  %v365_v23 = vadd.f32 %v363_v19, %v1647_v2  ;;  %v373_v35 = vadd.f32 %v372_v52, %v1539_v41 }
  0xd6   :  { %v374_v46 = vadd.f32 %v372_v52, %v1643_v61  ;;  %v381_v44 = vperm.slane %v1759_v14, 7  ;;  %vm530_vm1 = vcmp.ne.s32.totalorder %v1787_v62, 0  ;;  %v390_v39 = vperm.slane %v1797_v37, 0 }
  0xd7   :  { %vm366_vm4 = vcmp.gt.f32.partialorder %v364_v30, %v359_v5  ;;  %vm367_vm5 = vcmp.gt.f32.partialorder %v365_v23, %v360_v9  ;;  %v399_v21 = vperm.slane %v1797_v37, 1  ;;  %vm622_vm6 = vcmp.eq.s32.totalorder %v1802_v18, 0 }
  0xd8   :  { %v368_v16 = vsel %vm366_vm4, %v364_v30, %v359_v5  ;;  %v369_v58 = vsel %vm367_vm5, %v365_v23, %v360_v9  ;;  %v370_v51 = vsel %vm366_vm4, 5, %v361_v38  ;;  %v371_v49 = vsel %vm367_vm5, 5, %v362_v11 }
  0xd9   :  { %vm375_vm12 = vcmp.gt.f32.partialorder %v373_v35, %v368_v16  ;;  %vm376_vm7 = vcmp.gt.f32.partialorder %v374_v46, %v369_v58  ;;  %v382_v53 = vadd.f32 %v381_v44, %v1557_v54  ;;  %v383_v55 = vadd.f32 %v381_v44, %v1655_v4 }
  0xda   :  { %v377_v25 = vsel %vm375_vm12, %v373_v35, %v368_v16  ;;  %v378_v0 = vsel %vm376_vm7, %v374_v46, %v369_v58  ;;  %v379_v42 = vsel %vm375_vm12, 6, %v370_v51  ;;  %v380_v56 = vsel %vm376_vm7, 6, %v371_v49 }
  0xdb   :  { %vm384_vm14 = vcmp.gt.f32.partialorder %v382_v53, %v377_v25  ;;  %vm385_vm10 = vcmp.gt.f32.partialorder %v383_v55, %v378_v0  ;;  %v391_v33 = vadd.f32 %v390_v39, %v1493_v15  ;;  %v392_v59 = vadd.f32 %v390_v39, %v1518_v29 }
  0xdc   :  { %v386_v47 = vsel %vm384_vm14, %v382_v53, %v377_v25  ;;  %v387_v63 = vsel %vm385_vm10, %v383_v55, %v378_v0  ;;  %v388_v28 = vsel %vm384_vm14, 7, %v379_v42  ;;  %v389_v1 = vsel %vm385_vm10, 7, %v380_v56 }
  0xdd   :  { %vm393_vm8 = vcmp.gt.f32.partialorder %v391_v33, %v386_v47  ;;  %vm394_vm11 = vcmp.gt.f32.partialorder %v392_v59, %v387_v63  ;;  %v400_v3 = vadd.f32 %v399_v21, %v1563_v57  ;;  %v401_v27 = vadd.f32 %v399_v21, %v1680_v43 }
  0xde   :  { %v395_v34 = vsel %vm393_vm8, %v391_v33, %v386_v47  ;;  %v396_v26 = vsel %vm394_vm11, %v392_v59, %v387_v63  ;;  %v397_v32 = vsel %vm393_vm8, 8, %v388_v28  ;;  %v398_v19 = vsel %vm394_vm11, 8, %v389_v1 }
  0xdf   :  { %vm1833_vm13 = vcmp.eq.s32.totalorder %v426_v60, 1  ;;  %v517_v5 = vsel %vm516_vm2, 1, %v1434_v6  ;;  %vm402_vm15 = vcmp.gt.f32.partialorder %v400_v3, %v395_v34  ;;  %vm403_vm4 = vcmp.gt.f32.partialorder %v401_v27, %v396_v26 }
  0xe0   :  { %v404_v9 = vsel %vm402_vm15, %v400_v3, %v395_v34  ;;  %v405_v38 = vsel %vm403_vm4, %v401_v27, %v396_v26  ;;  %v406_v11 = vsel %vm402_vm15, 9, %v397_v32  ;;  %v407_v30 = vsel %vm403_vm4, 9, %v398_v19 }
  0xe1   :  { %v414_v23 = vsel %vm1808_vm3, 0, %v406_v11  ;;  %v415_v31 = vsel %vm1808_vm3, 0, %v407_v30  ;;  %v422_v60 = vadd.f32 %v1340_v7, %v404_v9  ;;  %v423_v35 = vadd.f32 %v1341_v10, %v405_v38 }
  0xe2   :  { %v1847_v46 = vsel %vm530_vm1, 1, %v1434_v6  ;;  %417 = vst.msk [vmem:[#allocation2 + $0x20] sm:$0xff] %vm203_vm0, %v414_v23  ;;  %v518_v44 = vperm.slane %v517_v5, 0  ;;  %v1853_v39 = vsel %vm622_vm6, 1, %v1434_v6  ;;  %vm636_vm8 = vcmp.ne.s32.totalorder %v1802_v18, 0 }
  0xe3   :  { %418 = vst.msk [vmem:[#allocation2 + $0x28] sm:$0x3] %vm205_vm9, %v415_v31  ;;  %v1859_v50 = vsel %vm1833_vm13, %v422_v60, %v1759_v14  ;;  %v532_v51 = vperm.slane %v1847_v46, 0  ;;  %v1869_v49 = vsel %vm1833_vm13, %v423_v35, %v1797_v37 }
  0xe4   :  { %v430_v21 = vperm.slane %v1859_v50, 0  ;;  %v433_v62 = vperm.slane %v1859_v50, 1  ;;  %v442_v16 = vperm.slane %v1859_v50, 2  ;;  %v451_v58 = vperm.slane %v1859_v50, 3 }
  0xe5   :  { %v460_v53 = vperm.slane %v1859_v50, 4  ;;  %v469_v14 = vperm.slane %v1859_v50, 5  ;;  %v478_v59 = vperm.slane %v1859_v50, 6  ;;  %v487_v37 = vperm.slane %v1859_v50, 7 }
  0xe6   :  { %v431_v55 = vadd.f32 %v430_v21, %v1505_v22  ;;  %v432_v25 = vadd.f32 %v430_v21, %v1551_v48  ;;  %v434_v0 = vadd.f32 %v433_v62, %v1488_v13  ;;  %v435_v42 = vadd.f32 %v433_v62, %v1587_v24 }
  0xe7   :  { %v443_v56 = vadd.f32 %v442_v16, %v1502_v20  ;;  %v444_v33 = vadd.f32 %v442_v16, %v1579_v8  ;;  %v452_v47 = vadd.f32 %v451_v58, %v1486_v12  ;;  %v453_v63 = vadd.f32 %v451_v58, %v1617_v45 }
  0xe8   :  { %vm436_vm2 = vcmp.gt.f32.partialorder %v434_v0, %v431_v55  ;;  %vm437_vm3 = vcmp.gt.f32.partialorder %v435_v42, %v432_v25  ;;  %v461_v7 = vadd.f32 %v460_v53, %v1498_v17  ;;  %v462_v10 = vadd.f32 %v460_v53, %v1611_v40 }
  0xe9   :  { %v438_v28 = vsel %vm436_vm2, %v434_v0, %v431_v55  ;;  %v439_v1 = vsel %vm437_vm3, %v435_v42, %v432_v25  ;;  %v440_v3 = vsel %vm436_vm2, 1, %v1434_v6  ;;  %v441_v27 = vsel %vm437_vm3, 1, %v1434_v6 }
  0xea   :  { %vm445_vm1 = vcmp.gt.f32.partialorder %v443_v56, %v438_v28  ;;  %vm446_vm5 = vcmp.gt.f32.partialorder %v444_v33, %v439_v1  ;;  %v470_v52 = vadd.f32 %v469_v14, %v1529_v36  ;;  %v471_v5 = vadd.f32 %v469_v14, %v1647_v2 }
  0xeb   :  { %v447_v34 = vsel %vm445_vm1, %v443_v56, %v438_v28  ;;  %v448_v26 = vsel %vm446_vm5, %v444_v33, %v439_v1  ;;  %v449_v32 = vsel %vm445_vm1, 2, %v440_v3  ;;  %v450_v19 = vsel %vm446_vm5, 2, %v441_v27  ;;  %v1905_v1 = vld [vmem:[%s2246_s1 + $0x6] sm:$0x1] }
  0xec   :  { %vm454_vm6 = vcmp.gt.f32.partialorder %v452_v47, %v447_v34  ;;  %vm455_vm12 = vcmp.gt.f32.partialorder %v453_v63, %v448_v26  ;;  %v479_v23 = vadd.f32 %v478_v59, %v1539_v41  ;;  %v480_v31 = vadd.f32 %v478_v59, %v1643_v61 }
  0xed   :  { %v456_v9 = vsel %vm454_vm6, %v452_v47, %v447_v34  ;;  %v457_v38 = vsel %vm455_vm12, %v453_v63, %v448_v26  ;;  %v458_v11 = vsel %vm454_vm6, 3, %v449_v32  ;;  %v459_v30 = vsel %vm455_vm12, 3, %v450_v19  ;;  %v1343_v26 = vld [vmem:[%s2245_s0 + $0x40] sm:$0xff]  ;;  %v1344_v32 = vld [vmem:[%s2245_s0 + $0x48] sm:$0x3] }
  0xee   :  { %vm463_vm7 = vcmp.gt.f32.partialorder %v461_v7, %v456_v9  ;;  %vm464_vm14 = vcmp.gt.f32.partialorder %v462_v10, %v457_v38  ;;  %vm1891_vm10 = vcmp.eq.s32.totalorder %v518_v44, 1  ;;  %v488_v58 = vadd.f32 %v487_v37, %v1557_v54 }
  0xef   :  { %v465_v35 = vsel %vm463_vm7, %v461_v7, %v456_v9  ;;  %v466_v21 = vsel %vm464_vm14, %v462_v10, %v457_v38  ;;  %v467_v62 = vsel %vm463_vm7, 4, %v458_v11  ;;  %v468_v16 = vsel %vm464_vm14, 4, %v459_v30 }
  0xf0   :  { %vm472_vm11 = vcmp.gt.f32.partialorder %v470_v52, %v465_v35  ;;  %vm473_vm13 = vcmp.gt.f32.partialorder %v471_v5, %v466_v21  ;;  %v496_v53 = vperm.slane %v1869_v49, 0  ;;  %v489_v44 = vadd.f32 %v487_v37, %v1655_v4 }
  0xf1   :  { %v474_v14 = vsel %vm472_vm11, %v470_v52, %v465_v35  ;;  %v475_v55 = vsel %vm473_vm13, %v471_v5, %v466_v21  ;;  %v476_v25 = vsel %vm472_vm11, 5, %v467_v62  ;;  %v477_v0 = vsel %vm473_vm13, 5, %v468_v16 }
  0xf2   :  { %vm481_vm15 = vcmp.gt.f32.partialorder %v479_v23, %v474_v14  ;;  %vm482_vm4 = vcmp.gt.f32.partialorder %v480_v31, %v475_v55  ;;  %v505_v42 = vperm.slane %v1869_v49, 1  ;;  %v497_v63 = vadd.f32 %v496_v53, %v1493_v15 }
  0xf3   :  { %v483_v56 = vsel %vm481_vm15, %v479_v23, %v474_v14  ;;  %v484_v33 = vsel %vm482_vm4, %v480_v31, %v475_v55  ;;  %v485_v59 = vsel %vm481_vm15, 6, %v476_v25  ;;  %v486_v47 = vsel %vm482_vm4, 6, %v477_v0 }
  0xf4   :  { %vm490_vm2 = vcmp.gt.f32.partialorder %v488_v58, %v483_v56  ;;  %vm491_vm3 = vcmp.gt.f32.partialorder %v489_v44, %v484_v33  ;;  %v498_v28 = vadd.f32 %v496_v53, %v1518_v29  ;;  %v506_v10 = vadd.f32 %v505_v42, %v1563_v57 }
  0xf5   :  { %v492_v3 = vsel %vm490_vm2, %v488_v58, %v483_v56  ;;  %v493_v27 = vsel %vm491_vm3, %v489_v44, %v484_v33  ;;  %v494_v37 = vsel %vm490_vm2, 7, %v485_v59  ;;  %v495_v7 = vsel %vm491_vm3, 7, %v486_v47 }
  0xf6   :  { %vm499_vm1 = vcmp.gt.f32.partialorder %v497_v63, %v492_v3  ;;  %vm500_vm5 = vcmp.gt.f32.partialorder %v498_v28, %v493_v27  ;;  %v507_v34 = vadd.f32 %v505_v42, %v1680_v43  ;;  %vm1917_vm6 = vcmp.eq.s32.totalorder %v532_v51, 1 }
  0xf7   :  { %v501_v19 = vsel %vm499_vm1, %v497_v63, %v492_v3  ;;  %v502_v52 = vsel %vm500_vm5, %v498_v28, %v493_v27  ;;  %v503_v5 = vsel %vm499_vm1, 8, %v494_v37  ;;  %v504_v9 = vsel %vm500_vm5, 8, %v495_v7 }
  0xf8   :  { %vm728_vm12 = vcmp.eq.s32.totalorder %v1905_v1, 0  ;;  %vm508_vm7 = vcmp.gt.f32.partialorder %v506_v10, %v501_v19  ;;  %vm509_vm14 = vcmp.gt.f32.partialorder %v507_v34, %v502_v52  ;;  %v1929_v51 = vsel %vm636_vm8, 1, %v1434_v6 }
  0xf9   :  { %v510_v11 = vsel %vm508_vm7, %v506_v10, %v501_v19  ;;  %v511_v30 = vsel %vm509_vm14, %v507_v34, %v502_v52  ;;  %v512_v23 = vsel %vm508_vm7, 9, %v503_v5  ;;  %v513_v31 = vsel %vm509_vm14, 9, %v504_v9 }
  0xfa   :  { %v520_v35 = vsel %vm1891_vm10, 0, %v512_v23  ;;  %v521_v21 = vsel %vm1891_vm10, 0, %v513_v31  ;;  %v528_v62 = vadd.f32 %v1343_v26, %v510_v11  ;;  %v529_v46 = vadd.f32 %v1344_v32, %v511_v30 }
  0xfb   :  { %523 = vst.msk [vmem:[#allocation2 + $0x30] sm:$0xff] %vm203_vm0, %v520_v35  ;;  %v624_v16 = vperm.slane %v1853_v39, 0  ;;  %v1934_v58 = vsel %vm728_vm12, 1, %v1434_v6  ;;  %v638_v39 = vperm.slane %v1929_v51, 0 }
  0xfc   :  { %524 = vst.msk [vmem:[#allocation2 + $0x38] sm:$0x3] %vm205_vm9, %v521_v21  ;;  %v1940_v60 = vsel %vm1917_vm6, %v528_v62, %v1859_v50  ;;  %v1950_v25 = vsel %vm1917_vm6, %v529_v46, %v1869_v49 }
  0xfd   :  { %v536_v53 = vperm.slane %v1940_v60, 0  ;;  %v539_v18 = vperm.slane %v1940_v60, 1  ;;  %v548_v14 = vperm.slane %v1940_v60, 2  ;;  %v557_v55 = vperm.slane %v1940_v60, 3 }
  0xfe   :  { %v566_v0 = vperm.slane %v1940_v60, 4  ;;  %v575_v50 = vperm.slane %v1940_v60, 5  ;;  %v584_v63 = vperm.slane %v1940_v60, 6  ;;  %v593_v49 = vperm.slane %v1940_v60, 7 }
  0xff   :  { %v537_v44 = vadd.f32 %v536_v53, %v1505_v22  ;;  %v538_v42 = vadd.f32 %v536_v53, %v1551_v48  ;;  %v540_v56 = vadd.f32 %v539_v18, %v1488_v13  ;;  %v541_v33 = vadd.f32 %v539_v18, %v1587_v24 }
 0x100   :  { %v549_v59 = vadd.f32 %v548_v14, %v1502_v20  ;;  %v550_v47 = vadd.f32 %v548_v14, %v1579_v8  ;;  %v558_v28 = vadd.f32 %v557_v55, %v1486_v12  ;;  %v559_v3 = vadd.f32 %v557_v55, %v1617_v45 }
 0x101   :  { %vm542_vm10 = vcmp.gt.f32.partialorder %v540_v56, %v537_v44  ;;  %vm543_vm8 = vcmp.gt.f32.partialorder %v541_v33, %v538_v42  ;;  %v567_v34 = vadd.f32 %v566_v0, %v1498_v17  ;;  %v568_v26 = vadd.f32 %v566_v0, %v1611_v40 }
 0x102   :  { %v544_v27 = vsel %vm542_vm10, %v540_v56, %v537_v44  ;;  %v545_v37 = vsel %vm543_vm8, %v541_v33, %v538_v42  ;;  %v546_v7 = vsel %vm542_vm10, 1, %v1434_v6  ;;  %v547_v10 = vsel %vm543_vm8, 1, %v1434_v6 }
 0x103   :  { %vm551_vm11 = vcmp.gt.f32.partialorder %v549_v59, %v544_v27  ;;  %vm552_vm13 = vcmp.gt.f32.partialorder %v550_v47, %v545_v37  ;;  %v576_v9 = vadd.f32 %v575_v50, %v1529_v36  ;;  %v577_v38 = vadd.f32 %v575_v50, %v1647_v2 }
 0x104   :  { %v553_v32 = vsel %vm551_vm11, %v549_v59, %v544_v27  ;;  %v554_v19 = vsel %vm552_vm13, %v550_v47, %v545_v37  ;;  %v555_v52 = vsel %vm551_vm11, 2, %v546_v7  ;;  %v556_v5 = vsel %vm552_vm13, 2, %v547_v10 }
 0x105   :  { %vm560_vm15 = vcmp.gt.f32.partialorder %v558_v28, %v553_v32  ;;  %vm561_vm4 = vcmp.gt.f32.partialorder %v559_v3, %v554_v19  ;;  %v585_v35 = vadd.f32 %v584_v63, %v1539_v41  ;;  %v586_v21 = vadd.f32 %v584_v63, %v1643_v61 }
 0x106   :  { %v562_v11 = vsel %vm560_vm15, %v558_v28, %v553_v32  ;;  %v563_v30 = vsel %vm561_vm4, %v559_v3, %v554_v19  ;;  %v564_v23 = vsel %vm560_vm15, 3, %v555_v52  ;;  %v565_v31 = vsel %vm561_vm4, 3, %v556_v5  ;;  %v1346_v32 = vld [vmem:[%s2245_s0 + $0x50] sm:$0xff]  ;;  %v1347_v19 = vld [vmem:[%s2245_s0 + $0x58] sm:$0x3] }
 0x107   :  { %vm569_vm2 = vcmp.gt.f32.partialorder %v567_v34, %v562_v11  ;;  %vm570_vm3 = vcmp.gt.f32.partialorder %v568_v26, %v563_v30  ;;  %vm1972_vm1 = vcmp.eq.s32.totalorder %v624_v16, 1  ;;  %v594_v55 = vadd.f32 %v593_v49, %v1557_v54 }
 0x108   :  { %v571_v46 = vsel %vm569_vm2, %v567_v34, %v562_v11  ;;  %v572_v53 = vsel %vm570_vm3, %v568_v26, %v563_v30  ;;  %v573_v18 = vsel %vm569_vm2, 4, %v564_v23  ;;  %v574_v14 = vsel %vm570_vm3, 4, %v565_v31 }
 0x109   :  { %vm578_vm5 = vcmp.gt.f32.partialorder %v576_v9, %v571_v46  ;;  %vm579_vm6 = vcmp.gt.f32.partialorder %v577_v38, %v572_v53  ;;  %v602_v0 = vperm.slane %v1950_v25, 0  ;;  %v595_v16 = vadd.f32 %v593_v49, %v1655_v4 }
 0x10a   :  { %v580_v50 = vsel %vm578_vm5, %v576_v9, %v571_v46  ;;  %v581_v44 = vsel %vm579_vm6, %v577_v38, %v572_v53  ;;  %v582_v42 = vsel %vm578_vm5, 5, %v573_v18  ;;  %v583_v56 = vsel %vm579_vm6, 5, %v574_v14 }
 0x10b   :  { %vm587_vm12 = vcmp.gt.f32.partialorder %v585_v35, %v580_v50  ;;  %vm588_vm7 = vcmp.gt.f32.partialorder %v586_v21, %v581_v44  ;;  %v611_v33 = vperm.slane %v1950_v25, 1  ;;  %v603_v3 = vadd.f32 %v602_v0, %v1493_v15 }
 0x10c   :  { %v589_v59 = vsel %vm587_vm12, %v585_v35, %v580_v50  ;;  %v590_v47 = vsel %vm588_vm7, %v586_v21, %v581_v44  ;;  %v591_v63 = vsel %vm587_vm12, 6, %v582_v42  ;;  %v592_v28 = vsel %vm588_vm7, 6, %v583_v56 }
 0x10d   :  { %vm596_vm14 = vcmp.gt.f32.partialorder %v594_v55, %v589_v59  ;;  %vm597_vm10 = vcmp.gt.f32.partialorder %v595_v16, %v590_v47  ;;  %v604_v27 = vadd.f32 %v602_v0, %v1518_v29  ;;  %v612_v49 = vadd.f32 %v611_v33, %v1563_v57 }
 0x10e   :  { %v598_v37 = vsel %vm596_vm14, %v594_v55, %v589_v59  ;;  %v599_v7 = vsel %vm597_vm10, %v595_v16, %v590_v47  ;;  %v600_v10 = vsel %vm596_vm14, 7, %v591_v63  ;;  %v601_v34 = vsel %vm597_vm10, 7, %v592_v28 }
 0x10f   :  { %vm605_vm8 = vcmp.gt.f32.partialorder %v603_v3, %v598_v37  ;;  %vm606_vm11 = vcmp.gt.f32.partialorder %v604_v27, %v599_v7  ;;  %v613_v26 = vadd.f32 %v611_v33, %v1680_v43  ;;  %vm1992_vm13 = vcmp.eq.s32.totalorder %v638_v39, 1 }
 0x110   :  { %v607_v52 = vsel %vm605_vm8, %v603_v3, %v598_v37  ;;  %v608_v5 = vsel %vm606_vm11, %v604_v27, %v599_v7  ;;  %v609_v9 = vsel %vm605_vm8, 8, %v600_v10  ;;  %v610_v38 = vsel %vm606_vm11, 8, %v601_v34 }
 0x111   :  { %vm742_vm15 = vcmp.ne.s32.totalorder %v1905_v1, 0  ;;  %vm614_vm4 = vcmp.gt.f32.partialorder %v612_v49, %v607_v52  ;;  %vm615_vm2 = vcmp.gt.f32.partialorder %v613_v26, %v608_v5  ;;  %v730_v1 = vperm.slane %v1934_v58, 0 }
 0x112   :  { %v616_v30 = vsel %vm614_vm4, %v612_v49, %v607_v52  ;;  %v617_v23 = vsel %vm615_vm2, %v613_v26, %v608_v5  ;;  %v618_v31 = vsel %vm614_vm4, 9, %v609_v9  ;;  %v619_v35 = vsel %vm615_vm2, 9, %v610_v38 }
 0x113   :  { %v626_v21 = vsel %vm1972_vm1, 0, %v618_v31  ;;  %v627_v46 = vsel %vm1972_vm1, 0, %v619_v35  ;;  %v634_v53 = vadd.f32 %v1346_v32, %v616_v30  ;;  %v635_v51 = vadd.f32 %v1347_v19, %v617_v23 }
 0x114   :  { %v2002_v39 = vsel %vm742_vm15, 1, %v1434_v6  ;;  %629 = vst.msk [vmem:[#allocation2 + $0x40] sm:$0xff] %vm203_vm0, %v626_v21  ;;  %vm2042_vm8 = vcmp.eq.s32.totalorder %v730_v1, 1 }
 0x115   :  { %630 = vst.msk [vmem:[#allocation2 + $0x48] sm:$0x3] %vm205_vm9, %v627_v46  ;;  %v2010_v18 = vsel %vm1992_vm13, %v634_v53, %v1940_v60  ;;  %v744_v50 = vperm.slane %v2002_v39, 0  ;;  %v2020_v58 = vsel %vm1992_vm13, %v635_v51, %v1950_v25 }
 0x116   :  { %v642_v14 = vperm.slane %v2010_v18, 0  ;;  %v645_v62 = vperm.slane %v2010_v18, 1  ;;  %v654_v55 = vperm.slane %v2010_v18, 2  ;;  %v663_v0 = vperm.slane %v2010_v18, 3 }
 0x117   :  { %v672_v44 = vperm.slane %v2010_v18, 4  ;;  %v681_v60 = vperm.slane %v2010_v18, 5  ;;  %v690_v63 = vperm.slane %v2010_v18, 6  ;;  %v699_v25 = vperm.slane %v2010_v18, 7 }
 0x118   :  { %v643_v42 = vadd.f32 %v642_v14, %v1505_v22  ;;  %v644_v56 = vadd.f32 %v642_v14, %v1551_v48  ;;  %v646_v16 = vadd.f32 %v645_v62, %v1488_v13  ;;  %v647_v33 = vadd.f32 %v645_v62, %v1587_v24 }
 0x119   :  { %v655_v59 = vadd.f32 %v654_v55, %v1502_v20  ;;  %v656_v47 = vadd.f32 %v654_v55, %v1579_v8  ;;  %v664_v28 = vadd.f32 %v663_v0, %v1486_v12  ;;  %v665_v3 = vadd.f32 %v663_v0, %v1617_v45 }
 0x11a   :  { %vm648_vm3 = vcmp.gt.f32.partialorder %v646_v16, %v643_v42  ;;  %vm649_vm1 = vcmp.gt.f32.partialorder %v647_v33, %v644_v56  ;;  %v673_v34 = vadd.f32 %v672_v44, %v1498_v17  ;;  %v674_v49 = vadd.f32 %v672_v44, %v1611_v40 }
 0x11b   :  { %v650_v27 = vsel %vm648_vm3, %v646_v16, %v643_v42  ;;  %v651_v37 = vsel %vm649_vm1, %v647_v33, %v644_v56  ;;  %v652_v7 = vsel %vm648_vm3, 1, %v1434_v6  ;;  %v653_v10 = vsel %vm649_vm1, 1, %v1434_v6 }
 0x11c   :  { %vm657_vm5 = vcmp.gt.f32.partialorder %v655_v59, %v650_v27  ;;  %vm658_vm6 = vcmp.gt.f32.partialorder %v656_v47, %v651_v37  ;;  %v682_v5 = vadd.f32 %v681_v60, %v1529_v36  ;;  %v683_v9 = vadd.f32 %v681_v60, %v1647_v2 }
 0x11d   :  { %v659_v26 = vsel %vm657_vm5, %v655_v59, %v650_v27  ;;  %v660_v32 = vsel %vm658_vm6, %v656_v47, %v651_v37  ;;  %v661_v19 = vsel %vm657_vm5, 2, %v652_v7  ;;  %v662_v52 = vsel %vm658_vm6, 2, %v653_v10 }
 0x11e   :  { %vm666_vm12 = vcmp.gt.f32.partialorder %v664_v28, %v659_v26  ;;  %vm667_vm7 = vcmp.gt.f32.partialorder %v665_v3, %v660_v32  ;;  %v691_v31 = vadd.f32 %v690_v63, %v1539_v41  ;;  %v692_v35 = vadd.f32 %v690_v63, %v1643_v61 }
 0x11f   :  { %v668_v38 = vsel %vm666_vm12, %v664_v28, %v659_v26  ;;  %v669_v11 = vsel %vm667_vm7, %v665_v3, %v660_v32  ;;  %v670_v30 = vsel %vm666_vm12, 3, %v661_v19  ;;  %v671_v23 = vsel %vm667_vm7, 3, %v662_v52  ;;  %v1351_v3 = vld [vmem:[%s2246_s1 + $0x7] sm:$0x1] }
 0x120   :  { %vm675_vm14 = vcmp.gt.f32.partialorder %v673_v34, %v668_v38  ;;  %vm676_vm10 = vcmp.gt.f32.partialorder %v674_v49, %v669_v11  ;;  %v700_v62 = vadd.f32 %v699_v25, %v1557_v54  ;;  %v708_v55 = vperm.slane %v2020_v58, 0 }
 0x121   :  { %v677_v46 = vsel %vm675_vm14, %v673_v34, %v668_v38  ;;  %v678_v53 = vsel %vm676_vm10, %v674_v49, %v669_v11  ;;  %v679_v51 = vsel %vm675_vm14, 4, %v670_v30  ;;  %v680_v14 = vsel %vm676_vm10, 4, %v671_v23  ;;  %v1349_v49 = vld [vmem:[%s2245_s0 + $0x60] sm:$0xff] }
 0x122   :  { %vm684_vm11 = vcmp.gt.f32.partialorder %v682_v5, %v677_v46  ;;  %vm685_vm13 = vcmp.gt.f32.partialorder %v683_v9, %v678_v53  ;;  %v701_v1 = vadd.f32 %v699_v25, %v1655_v4  ;;  %v717_v56 = vperm.slane %v2020_v58, 1 }
 0x123   :  { %v686_v0 = vsel %vm684_vm11, %v682_v5, %v677_v46  ;;  %v687_v44 = vsel %vm685_vm13, %v683_v9, %v678_v53  ;;  %v688_v60 = vsel %vm684_vm11, 5, %v679_v51  ;;  %v689_v42 = vsel %vm685_vm13, 5, %v680_v14  ;;  %v1350_v9 = vld [vmem:[%s2245_s0 + $0x68] sm:$0x3] }
 0x124   :  { %vm693_vm15 = vcmp.gt.f32.partialorder %v691_v31, %v686_v0  ;;  %vm694_vm4 = vcmp.gt.f32.partialorder %v692_v35, %v687_v44  ;;  %v709_v63 = vadd.f32 %v708_v55, %v1493_v15  ;;  %v710_v28 = vadd.f32 %v708_v55, %v1518_v29 }
 0x125   :  { %v695_v16 = vsel %vm693_vm15, %v691_v31, %v686_v0  ;;  %v696_v33 = vsel %vm694_vm4, %v692_v35, %v687_v44  ;;  %v697_v59 = vsel %vm693_vm15, 6, %v688_v60  ;;  %v698_v47 = vsel %vm694_vm4, 6, %v689_v42 }
 0x126   :  { %vm702_vm2 = vcmp.gt.f32.partialorder %v700_v62, %v695_v16  ;;  %vm703_vm3 = vcmp.gt.f32.partialorder %v701_v1, %v696_v33  ;;  %v718_v10 = vadd.f32 %v717_v56, %v1563_v57  ;;  %v719_v34 = vadd.f32 %v717_v56, %v1680_v43 }
 0x127   :  { %v704_v27 = vsel %vm702_vm2, %v700_v62, %v695_v16  ;;  %v705_v37 = vsel %vm703_vm3, %v701_v1, %v696_v33  ;;  %v706_v7 = vsel %vm702_vm2, 7, %v697_v59  ;;  %v707_v25 = vsel %vm703_vm3, 7, %v698_v47 }
 0x128   :  { %vm711_vm1 = vcmp.gt.f32.partialorder %v709_v63, %v704_v27  ;;  %vm712_vm5 = vcmp.gt.f32.partialorder %v710_v28, %v705_v37  ;;  %vm2062_vm6 = vcmp.eq.s32.totalorder %v744_v50, 1  ;;  %vm834_vm12 = vcmp.eq.s32.totalorder %v1351_v3, 0 }
 0x129   :  { %v713_v26 = vsel %vm711_vm1, %v709_v63, %v704_v27  ;;  %v714_v32 = vsel %vm712_vm5, %v710_v28, %v705_v37  ;;  %v715_v19 = vsel %vm711_vm1, 8, %v706_v7  ;;  %v716_v52 = vsel %vm712_vm5, 8, %v707_v25 }
 0x12a   :  { %vm720_vm7 = vcmp.gt.f32.partialorder %v718_v10, %v713_v26  ;;  %vm721_vm14 = vcmp.gt.f32.partialorder %v719_v34, %v714_v32  ;;  %vm848_vm10 = vcmp.ne.s32.totalorder %v1351_v3, 0  ;;  %v835_v35 = vsel %vm834_vm12, 1, %v1434_v6 }
 0x12b   :  { %v722_v38 = vsel %vm720_vm7, %v718_v10, %v713_v26  ;;  %v723_v11 = vsel %vm721_vm14, %v719_v34, %v714_v32  ;;  %v724_v30 = vsel %vm720_vm7, 9, %v715_v19  ;;  %v725_v23 = vsel %vm721_vm14, 9, %v716_v52 }
 0x12c   :  { %v732_v31 = vsel %vm2042_vm8, 0, %v724_v30  ;;  %v733_v39 = vsel %vm2042_vm8, 0, %v725_v23  ;;  %v740_v50 = vadd.f32 %v1349_v49, %v722_v38  ;;  %v741_v46 = vadd.f32 %v1350_v9, %v723_v11 }
 0x12d   :  { %735 = vst.msk [vmem:[#allocation2 + $0x50] sm:$0xff] %vm203_vm0, %v732_v31  ;;  %v2082_v51 = vsel %vm848_vm10, 1, %v1434_v6  ;;  %v836_v42 = vperm.slane %v835_v35, 0 }
 0x12e   :  { %736 = vst.msk [vmem:[#allocation2 + $0x58] sm:$0x3] %vm205_vm9, %v733_v39  ;;  %v2079_v53 = vsel %vm2062_vm6, %v740_v50, %v2010_v18  ;;  %v850_v1 = vperm.slane %v2082_v51, 0  ;;  %v2096_v56 = vsel %vm2062_vm6, %v741_v46, %v2020_v58 }
 0x12f   :  { %v748_v14 = vperm.slane %v2079_v53, 0  ;;  %v751_v21 = vperm.slane %v2079_v53, 1  ;;  %v760_v62 = vperm.slane %v2079_v53, 2  ;;  %v769_v55 = vperm.slane %v2079_v53, 3 }
 0x130   :  { %v778_v60 = vperm.slane %v2079_v53, 4  ;;  %v787_v18 = vperm.slane %v2079_v53, 5  ;;  %v796_v33 = vperm.slane %v2079_v53, 6  ;;  %v805_v47 = vperm.slane %v2079_v53, 7 }
 0x131   :  { %v749_v0 = vadd.f32 %v748_v14, %v1505_v22  ;;  %v752_v44 = vadd.f32 %v751_v21, %v1488_v13  ;;  %v761_v16 = vadd.f32 %v760_v62, %v1502_v20  ;;  %v750_v22 = vadd.f32 %v748_v14, %v1551_v48 }
 0x132   :  { %v753_v63 = vadd.f32 %v751_v21, %v1587_v24  ;;  %v770_v28 = vadd.f32 %v769_v55, %v1486_v12  ;;  %v779_v58 = vadd.f32 %v778_v60, %v1498_v17  ;;  %v788_v3 = vadd.f32 %v787_v18, %v1529_v36 }
 0x133   :  { %vm754_vm8 = vcmp.gt.f32.partialorder %v752_v44, %v749_v0  ;;  %v762_v37 = vadd.f32 %v760_v62, %v1579_v8  ;;  %v797_v48 = vadd.f32 %v796_v33, %v1539_v41  ;;  %v771_v12 = vadd.f32 %v769_v55, %v1617_v45  ;;  %v1352_v55 = vld [vmem:[%s2245_s0 + $0x70] sm:$0xff] }
 0x134   :  { %v756_v13 = vsel %vm754_vm8, %v752_v44, %v749_v0  ;;  %v758_v59 = vsel %vm754_vm8, 1, %v1434_v6  ;;  %vm755_vm13 = vcmp.gt.f32.partialorder %v753_v63, %v750_v22  ;;  %v806_v17 = vadd.f32 %v805_v47, %v1557_v54 }
 0x135   :  { %vm763_vm11 = vcmp.gt.f32.partialorder %v761_v16, %v756_v13  ;;  %v757_v7 = vsel %vm755_vm13, %v753_v63, %v750_v22  ;;  %v759_v25 = vsel %vm755_vm13, 1, %v1434_v6  ;;  %vm2112_vm3 = vcmp.eq.s32.totalorder %v836_v42, 1 }
 0x136   :  { %v765_v27 = vsel %vm763_vm11, %v761_v16, %v756_v13  ;;  %v767_v20 = vsel %vm763_vm11, 2, %v758_v59  ;;  %vm764_vm4 = vcmp.gt.f32.partialorder %v762_v37, %v757_v7  ;;  %v780_v41 = vadd.f32 %v778_v60, %v1611_v40  ;;  %v862_v16 = vpop.permute.xlu2 %861 }
 0x137   :  { %vm772_vm15 = vcmp.gt.f32.partialorder %v770_v28, %v765_v27  ;;  %v766_v36 = vsel %vm764_vm4, %v762_v37, %v757_v7  ;;  %v768_v34 = vsel %vm764_vm4, 2, %v759_v25  ;;  %v814_v32 = vperm.slane %v2096_v56, 0 }
 0x138   :  { %v774_v10 = vsel %vm772_vm15, %v770_v28, %v765_v27  ;;  %v776_v24 = vsel %vm772_vm15, 3, %v767_v20  ;;  %vm773_vm1 = vcmp.gt.f32.partialorder %v771_v12, %v766_v36  ;;  %v789_v54 = vadd.f32 %v787_v18, %v1647_v2 }
 0x139   :  { %vm781_vm2 = vcmp.gt.f32.partialorder %v779_v58, %v774_v10  ;;  %v775_v19 = vsel %vm773_vm1, %v771_v12, %v766_v36  ;;  %v777_v52 = vsel %vm773_vm1, 3, %v768_v34  ;;  %v823_v9 = vperm.slane %v2096_v56, 1 }
 0x13a   :  { %v783_v8 = vsel %vm781_vm2, %v779_v58, %v774_v10  ;;  %v785_v26 = vsel %vm781_vm2, 4, %v776_v24  ;;  %vm782_vm6 = vcmp.gt.f32.partialorder %v780_v41, %v775_v19  ;;  %v798_v40 = vadd.f32 %v796_v33, %v1643_v61 }
 0x13b   :  { %vm790_vm5 = vcmp.gt.f32.partialorder %v788_v3, %v783_v8  ;;  %v784_v38 = vsel %vm782_vm6, %v780_v41, %v775_v19  ;;  %v786_v11 = vsel %vm782_vm6, 4, %v777_v52  ;;  %v815_v31 = vadd.f32 %v814_v32, %v1493_v15 }
 0x13c   :  { %v792_v45 = vsel %vm790_vm5, %v788_v3, %v783_v8  ;;  %v794_v5 = vsel %vm790_vm5, 5, %v785_v26  ;;  %vm791_vm7 = vcmp.gt.f32.partialorder %v789_v54, %v784_v38  ;;  %v807_v2 = vadd.f32 %v805_v47, %v1655_v4 }
 0x13d   :  { %vm799_vm12 = vcmp.gt.f32.partialorder %v797_v48, %v792_v45  ;;  %v793_v39 = vsel %vm791_vm7, %v789_v54, %v784_v38  ;;  %v795_v50 = vsel %vm791_vm7, 5, %v786_v11  ;;  %v824_v14 = vadd.f32 %v823_v9, %v1563_v57  ;;  %v867_v54 = vpop.permute.xlu1 %866 }
 0x13e   :  { %v801_v30 = vsel %vm799_vm12, %v797_v48, %v792_v45  ;;  %v803_v23 = vsel %vm799_vm12, 6, %v794_v5  ;;  %vm800_vm10 = vcmp.gt.f32.partialorder %v798_v40, %v793_v39  ;;  %v816_v15 = vadd.f32 %v814_v32, %v1518_v29 }
 0x13f   :  { %vm808_vm14 = vcmp.gt.f32.partialorder %v806_v17, %v801_v30  ;;  %v802_v21 = vsel %vm800_vm10, %v798_v40, %v793_v39  ;;  %v804_v62 = vsel %vm800_vm10, 6, %v795_v50  ;;  %vm2130_vm13 = vcmp.eq.s32.totalorder %v850_v1, 1 }
 0x140   :  { %v810_v35 = vsel %vm808_vm14, %v806_v17, %v801_v30  ;;  %v812_v46 = vsel %vm808_vm14, 7, %v803_v23  ;;  %vm809_vm11 = vcmp.gt.f32.partialorder %v807_v2, %v802_v21  ;;  %v825_v42 = vadd.f32 %v823_v9, %v1680_v43 }
 0x141   :  { %vm817_vm8 = vcmp.gt.f32.partialorder %v815_v31, %v810_v35  ;;  %v811_v4 = vsel %vm809_vm11, %v807_v2, %v802_v21  ;;  %v813_v57 = vsel %vm809_vm11, 7, %v804_v62  ;;  %vm933_vm10 = vcmask 9217  }
 0x142   :  { %v819_v61 = vsel %vm817_vm8, %v815_v31, %v810_v35  ;;  %v821_v0 = vsel %vm817_vm8, 8, %v812_v46  ;;  %vm818_vm4 = vcmp.gt.f32.partialorder %v816_v15, %v811_v4 }
 0x143   :  { %vm826_vm15 = vcmp.gt.f32.partialorder %v824_v14, %v819_v61  ;;  %v820_v29 = vsel %vm818_vm4, %v816_v15, %v811_v4  ;;  %v822_v13 = vsel %vm818_vm4, 8, %v813_v57 }
 0x144   :  { %v828_v60 = vsel %vm826_vm15, %v824_v14, %v819_v61  ;;  %v830_v18 = vsel %vm826_vm15, 9, %v821_v0  ;;  %vm827_vm2 = vcmp.gt.f32.partialorder %v825_v42, %v820_v29 }
 0x145   :  { %v838_v33 = vsel %vm2112_vm3, 0, %v830_v18  ;;  %v846_v22 = vadd.f32 %v1352_v55, %v828_v60  ;;  %v831_v1 = vsel %vm827_vm2, 9, %v822_v13  ;;  %v829_v34 = vsel %vm827_vm2, %v825_v42, %v820_v29 }
 0x146   :  { %841 = vst.msk [vmem:[#allocation2 + $0x60] sm:$0xff] %vm203_vm0, %v838_v33  ;;  %v839_v43 = vsel %vm2112_vm3, 0, %v831_v1 }
 0x147   :  { %v852_v51 = vsel %vm2130_vm13, %v846_v22, %v2079_v53  ;;  %842 = vst.msk [vmem:[#allocation2 + $0x68] sm:$0x3] %vm205_vm9, %v839_v43 }
 0x148   :  { %v869_v59 = vadd.f32 %v862_v16, %v852_v51 }
 0x14a   :  { %v872_v47 = vrot.slane %v869_v59, 7 }
 0x14c   :  { %vm874_vm1 = vcmp.gt.f32.partialorder %v869_v59, %v872_v47 }
 0x14d   :  { %v875_v63 = vsel %vm874_vm1, %v869_v59, %v872_v47  ;;  %v876_v28 = vsel %vm874_vm1, 1, %v1434_v6  ;;  %v1353_v6 = vld [vmem:[%s2245_s0 + $0x78] sm:$0x3]  ;;  %v941_v50 = vld [vmem:[#allocation2 + $0x60] sm:$0xff]  ;;  %v2178_v47 = vld [vmem:[%s2247_s2] sm:$0x1] }
 0x14e   :  { %v878_v58 = vrot.slane %v875_v63, 7  ;;  %v882_v3 = vrot.slane %v876_v28, 7  ;;  %v847_v32 = vadd.f32 %v1353_v6, %v829_v34  ;;  %v944_v2 = vrot.slane %v941_v50, 7  ;;  %v942_v60 = vld [vmem:[#allocation2 + $0x68] sm:$0x3]  ;;  %v984_v28 = vld [vmem:[#allocation2 + $0x50] sm:$0xff] }
 0x14f   :  { %v949_v62 = vrot.slane %v941_v50, 1  ;;  %v952_v61 = vrot.slane %v941_v50, 2  ;;  %v955_v15 = vrot.slane %v941_v50, 3  ;;  %v958_v57 = vrot.slane %v941_v50, 4  ;;  %v1356_v63 = vld [vmem:[%s2246_s1 + $0x6] sm:$0x1] }
 0x150   :  { %vm880_vm0 = vcmp.gt.f32.partialorder %v869_v59, %v878_v58  ;;  %v853_v9 = vsel %vm2130_vm13, %v847_v32, %v2096_v56  ;;  %v1402_v56 = vld [vmem:[%s2246_s1 + $0x7] ss:$0 sm:$0xff]  ;;  %v961_v42 = vrot.slane %v941_v50, 5  ;;  %v964_v33 = vrot.slane %v941_v50, 6  ;;  %s1320_s0 = sshll.u32 %s2250_s5, 4  ;;  %s1321_s0 = int_to_ptr.hbm [resolvable:$true] %s1320_s0 }
 0x151   :  { %v881_v27 = vsel %vm880_vm0, %v869_v59, %v878_v58  ;;  %v883_v20 = vsel %vm880_vm0, 2, %v882_v3  ;;  %v870_v30 = vadd.f32 %v867_v54, %v853_v9  ;;  %v967_v13 = vrot.slane %v942_v60, 7 }
 0x152   :  { %v885_v37 = vrot.slane %v881_v27, 7  ;;  %v889_v53 = vrot.slane %v883_v20, 7 }
 0x154   :  { %vm887_vm5 = vcmp.gt.f32.partialorder %v869_v59, %v885_v37 }
 0x155   :  { %v888_v48 = vsel %vm887_vm5, %v869_v59, %v885_v37  ;;  %v890_v7 = vsel %vm887_vm5, 3, %v889_v53 }
 0x156   :  { %v892_v25 = vrot.slane %v888_v48, 7  ;;  %v896_v10 = vrot.slane %v890_v7, 7 }
 0x158   :  { %vm894_vm3 = vcmp.gt.f32.partialorder %v869_v59, %v892_v25 }
 0x159   :  { %v895_v24 = vsel %vm894_vm3, %v869_v59, %v892_v25  ;;  %v897_v12 = vsel %vm894_vm3, 4, %v896_v10  ;;  %v985_v10 = vld [vmem:[#allocation2 + $0x58] sm:$0x3] }
 0x15a   :  { %v899_v17 = vrot.slane %v895_v24, 7  ;;  %v903_v36 = vrot.slane %v897_v12, 7 }
 0x15c   :  { %vm901_vm9 = vcmp.gt.f32.partialorder %v869_v59, %v899_v17 }
 0x15d   :  { %v902_v49 = vsel %vm901_vm9, %v869_v59, %v899_v17  ;;  %v904_v8 = vsel %vm901_vm9, 5, %v903_v36  ;;  %vm971_vm9 = vcmp.eq.s32.totalorder %v2178_v47, 6 }
 0x15e   :  { %v906_v26 = vrot.slane %v902_v49, 7  ;;  %v910_v41 = vrot.slane %v904_v8, 7 }
 0x160   :  { %vm908_vm6 = vcmp.gt.f32.partialorder %v869_v59, %v906_v26 }
 0x161   :  { %v909_v19 = vsel %vm908_vm6, %v869_v59, %v906_v26  ;;  %v911_v52 = vsel %vm908_vm6, 6, %v910_v41  ;;  %vm982_vm6 = vcmask 8192  }
 0x162   :  { %v913_v45 = vrot.slane %v909_v19, 7  ;;  %v917_v5 = vrot.slane %v911_v52, 7  ;;  %v1358_v19 = vld [vmem:[%s2246_s1 + $0x5] sm:$0x1]  ;;  %v1039_v52 = vld [vmem:[#allocation2 + $0x40] sm:$0xff] }
 0x164   :  { %vm915_vm12 = vcmp.gt.f32.partialorder %v869_v59, %v913_v45 }
 0x165   :  { %v916_v38 = vsel %vm915_vm12, %v869_v59, %v913_v45  ;;  %v918_v11 = vsel %vm915_vm12, 7, %v917_v5 }
 0x166   :  { %v920_v23 = vrot.slane %v916_v38, 7  ;;  %v924_v40 = vrot.slane %v918_v11, 7 }
 0x168   :  { %vm922_vm7 = vcmp.gt.f32.partialorder %v870_v30, %v920_v23 }
 0x169   :  { %v923_v31 = vsel %vm922_vm7, %v870_v30, %v920_v23  ;;  %v925_v39 = vsel %vm922_vm7, 8, %v924_v40 }
 0x16a   :  { %v927_v35 = vrot.slane %v923_v31, 7  ;;  %v931_v46 = vrot.slane %v925_v39, 7 }
 0x16c   :  { %vm929_vm14 = vcmp.gt.f32.partialorder %v870_v30, %v927_v35 }
 0x16d   :  { %v2153_v14 = vsel %vm929_vm14, 9, %v931_v46  ;;  %v930_v21 = vsel %vm929_vm14, %v870_v30, %v927_v35 }
 0x16e   :  { %vm943_vm8 = vcmp.eq.s32.totalorder %v2153_v14, 0  ;;  %vm946_vm11 = vcmp.eq.s32.totalorder %v2153_v14, 1  ;;  %972 = vst [vmem:[#allocation1] sm:$0xff] %v2153_v14  ;;  %vm948_vm13 = vcmp.eq.s32.totalorder %v2153_v14, 2  ;;  %vm951_vm15 = vcmp.eq.s32.totalorder %v2153_v14, 3 }
 0x16f   :  { %v945_v55 = vsel %vm943_vm8, %v944_v2, 0  ;;  %934 = vst.msk [vmem:[#allocation3 - $0x1] sm:$0x2] %vm933_vm10, %v930_v21  ;;  %v938_v4 = vmul.u32 %v1402_v56, %v2153_v14  ;;  %vm954_vm4 = vcmp.eq.s32.totalorder %v2153_v14, 4  ;;  %vm957_vm2 = vcmp.eq.s32.totalorder %v2153_v14, 5 }
 0x170   :  { %v947_v0 = vsel %vm946_vm11, %v941_v50, %v945_v55  ;;  %vm960_vm1 = vcmp.eq.s32.totalorder %v2153_v14, 6  ;;  %vm963_vm0 = vcmp.eq.s32.totalorder %v2153_v14, 7  ;;  %vm966_vm5 = vcmp.eq.s32.totalorder %v2153_v14, 8  ;;  %1323 = dma.vmem_to_hbm [thread:$0]  %s1319_s24, 16, %s1321_s0, [#allocation4]  }
 0x171   :  { %v950_v44 = vsel %vm948_vm13, %v949_v62, %v947_v0  ;;  %1355 = vst.msk [vmem:[%s2251_s6 + $0x6] sm:$0x2] %vm933_vm10, %v938_v4  ;;  %vm969_vm3 = vcmp.eq.s32.totalorder %v2153_v14, 9  ;;  %v1040_v62 = vld [vmem:[#allocation2 + $0x48] sm:$0x3] }
 0x172   :  { %v953_v18 = vsel %vm951_vm15, %v952_v61, %v950_v44  ;;  %v1360_v4 = vld [vmem:[%s2246_s1 + $0x4] sm:$0x1] }
 0x173   :  { %v956_v16 = vsel %vm954_vm4, %v955_v15, %v953_v18 }
 0x174   :  { %v959_v22 = vsel %vm957_vm2, %v958_v57, %v956_v16  ;;  %vm1030_vm2 = vcmp.eq.s32.totalorder %v2178_v47, 5  ;;  %v1094_v57 = vld [vmem:[#allocation2 + $0x30] sm:$0xff] }
 0x175   :  { %v962_v29 = vsel %vm960_vm1, %v961_v42, %v959_v22  ;;  %v974_v43 = vld [vmem:[#allocation1 + $0x1] ss:$9 sm:$0xff] }
 0x176   :  { %v965_v51 = vsel %vm963_vm0, %v964_v33, %v962_v29 }
 0x177   :  { %v968_v1 = vsel %vm966_vm5, %v967_v13, %v965_v51 }
 0x178   :  { %v970_v59 = vsel %vm969_vm3, %v942_v60, %v968_v1 }
 0x179   :  { %975 = vst [vmem:[#allocation1] sm:$0xff] %v970_v59 }
 0x180   :  { %v977_v58 = vld [vmem:[#allocation1 + $0x1] ss:$9 sm:$0xff] }
 0x181   :  { %989 = vst [vmem:[#allocation1] sm:$0xff] %v984_v28  ;;  %v978_v3 = vsel %vm971_vm9, %v974_v43, %v977_v58 }
 0x182   :  { %v980_v27 = vmul.u32 %v1356_v63, %v978_v3  ;;  %vm986_vm12 = vcmp.eq.s32.totalorder %v978_v3, 0  ;;  %vm988_vm7 = vcmp.eq.s32.totalorder %v978_v3, 1  ;;  %vm993_vm14 = vcmp.eq.s32.totalorder %v978_v3, 2 }
 0x183   :  { %v987_v12 = vsel %vm986_vm12, %v984_v28, 0  ;;  %vm998_vm10 = vcmp.eq.s32.totalorder %v978_v3, 3  ;;  %vm1003_vm8 = vcmp.eq.s32.totalorder %v978_v3, 4  ;;  %vm1008_vm11 = vcmp.eq.s32.totalorder %v978_v3, 5 }
 0x184   :  { %1357 = vst.msk [vmem:[%s2251_s6 + $0x6] sm:$0x1] %vm982_vm6, %v980_v27  ;;  %vm1013_vm13 = vcmp.eq.s32.totalorder %v978_v3, 6  ;;  %vm1018_vm15 = vcmp.eq.s32.totalorder %v978_v3, 7  ;;  %vm1023_vm4 = vcmp.eq.s32.totalorder %v978_v3, 8  ;;  %vm1025_vm1 = vcmp.eq.s32.totalorder %v978_v3, 9 }
 0x185   :  { %v1095_v27 = vld [vmem:[#allocation2 + $0x38] sm:$0x3] }
 0x188   :  { %v991_v20 = vld [vmem:[#allocation1 + $0x1] ss:$9 sm:$0xff] }
 0x189   :  { %994 = vst [vmem:[#allocation1] sm:$0xff] %v984_v28  ;;  %v992_v17 = vsel %vm988_vm7, %v991_v20, %v987_v12 }
 0x190   :  { %v996_v37 = vld [vmem:[#allocation1 + $0x2] ss:$9 sm:$0xff] }
 0x191   :  { %999 = vst [vmem:[#allocation1] sm:$0xff] %v984_v28  ;;  %v997_v36 = vsel %vm993_vm14, %v996_v37, %v992_v17 }
 0x198   :  { %v1001_v53 = vld [vmem:[#allocation1 + $0x3] ss:$9 sm:$0xff] }
 0x199   :  { %1004 = vst [vmem:[#allocation1] sm:$0xff] %v984_v28  ;;  %v1002_v34 = vsel %vm998_vm10, %v1001_v53, %v997_v36 }
 0x1a0   :  { %v1006_v48 = vld [vmem:[#allocation1 + $0x4] ss:$9 sm:$0xff] }
 0x1a1   :  { %1009 = vst [vmem:[#allocation1] sm:$0xff] %v984_v28  ;;  %v1007_v49 = vsel %vm1003_vm8, %v1006_v48, %v1002_v34 }
 0x1a8   :  { %v1011_v7 = vld [vmem:[#allocation1 + $0x5] ss:$9 sm:$0xff] }
 0x1a9   :  { %1014 = vst [vmem:[#allocation1] sm:$0xff] %v984_v28  ;;  %v1012_v8 = vsel %vm1008_vm11, %v1011_v7, %v1007_v49 }
 0x1b0   :  { %v1016_v25 = vld [vmem:[#allocation1 + $0x6] ss:$9 sm:$0xff] }
 0x1b1   :  { %1019 = vst [vmem:[#allocation1] sm:$0xff] %v984_v28  ;;  %v1017_v26 = vsel %vm1013_vm13, %v1016_v25, %v1012_v8  ;;  %vm1085_vm13 = vcmp.eq.s32.totalorder %v2178_v47, 4  ;;  %v1362_v25 = vld [vmem:[%s2246_s1 + $0x3] sm:$0x1] }
 0x1b8   :  { %v1021_v24 = vld [vmem:[#allocation1 + $0x7] ss:$9 sm:$0xff] }
 0x1b9   :  { %1026 = vst [vmem:[#allocation1] sm:$0xff] %v985_v10  ;;  %v1022_v41 = vsel %vm1018_vm15, %v1021_v24, %v1017_v26 }
 0x1ba   :  { %v1024_v32 = vsel %vm1023_vm4, %v985_v10, %v1022_v41  ;;  %v1149_v10 = vld [vmem:[#allocation2 + $0x20] sm:$0xff] }
 0x1c0   :  { %v1028_v6 = vld [vmem:[#allocation1 + $0x1] ss:$9 sm:$0xff] }
 0x1c1   :  { %1031 = vst [vmem:[#allocation1] sm:$0xff] %v2153_v14  ;;  %v1029_v5 = vsel %vm1025_vm1, %v1028_v6, %v1024_v32 }
 0x1c8   :  { %v1033_v45 = vld [vmem:[#allocation1 + $0x1] ss:$9 sm:$0xff] }
 0x1c9   :  { %1044 = vst [vmem:[#allocation1] sm:$0xff] %v1039_v52  ;;  %v1034_v54 = vsel %vm1030_vm2, %v1033_v45, %v1029_v5 }
 0x1ca   :  { %v1036_v9 = vmul.u32 %v1358_v19, %v1034_v54  ;;  %vm1041_vm0 = vcmp.eq.s32.totalorder %v1034_v54, 0  ;;  %vm1043_vm5 = vcmp.eq.s32.totalorder %v1034_v54, 1  ;;  %vm1048_vm3 = vcmp.eq.s32.totalorder %v1034_v54, 2 }
 0x1cb   :  { %v1042_v23 = vsel %vm1041_vm0, %v1039_v52, 0  ;;  %vm1053_vm9 = vcmp.eq.s32.totalorder %v1034_v54, 3  ;;  %vm1058_vm12 = vcmp.eq.s32.totalorder %v1034_v54, 4  ;;  %vm1063_vm7 = vcmp.eq.s32.totalorder %v1034_v54, 5 }
 0x1cc   :  { %1359 = vst.msk [vmem:[%s2251_s6 + $0x5] sm:$0x1] %vm982_vm6, %v1036_v9  ;;  %vm1068_vm14 = vcmp.eq.s32.totalorder %v1034_v54, 6  ;;  %vm1073_vm10 = vcmp.eq.s32.totalorder %v1034_v54, 7  ;;  %vm1078_vm8 = vcmp.eq.s32.totalorder %v1034_v54, 8  ;;  %vm1080_vm11 = vcmp.eq.s32.totalorder %v1034_v54, 9 }
 0x1cd   :  { %v1150_v9 = vld [vmem:[#allocation2 + $0x28] sm:$0x3] }
 0x1d0   :  { %v1046_v38 = vld [vmem:[#allocation1 + $0x1] ss:$9 sm:$0xff] }
 0x1d1   :  { %1049 = vst [vmem:[#allocation1] sm:$0xff] %v1039_v52  ;;  %v1047_v40 = vsel %vm1043_vm5, %v1046_v38, %v1042_v23 }
 0x1d8   :  { %v1051_v11 = vld [vmem:[#allocation1 + $0x2] ss:$9 sm:$0xff] }
 0x1d9   :  { %1054 = vst [vmem:[#allocation1] sm:$0xff] %v1039_v52  ;;  %v1052_v31 = vsel %vm1048_vm3, %v1051_v11, %v1047_v40 }
 0x1e0   :  { %v1056_v30 = vld [vmem:[#allocation1 + $0x3] ss:$9 sm:$0xff] }
 0x1e1   :  { %1059 = vst [vmem:[#allocation1] sm:$0xff] %v1039_v52  ;;  %v1057_v50 = vsel %vm1053_vm9, %v1056_v30, %v1052_v31  ;;  %v1364_v31 = vld [vmem:[%s2246_s1 + $0x2] sm:$0x1] }
 0x1e8   :  { %v1061_v39 = vld [vmem:[#allocation1 + $0x4] ss:$9 sm:$0xff] }
 0x1e9   :  { %1064 = vst [vmem:[#allocation1] sm:$0xff] %v1039_v52  ;;  %v1062_v35 = vsel %vm1058_vm12, %v1061_v39, %v1057_v50  ;;  %v1204_v39 = vld [vmem:[#allocation2 + $0x10] sm:$0xff] }
 0x1f0   :  { %v1066_v46 = vld [vmem:[#allocation1 + $0x5] ss:$9 sm:$0xff] }
 0x1f1   :  { %1069 = vst [vmem:[#allocation1] sm:$0xff] %v1039_v52  ;;  %v1067_v2 = vsel %vm1063_vm7, %v1066_v46, %v1062_v35 }
 0x1f8   :  { %v1071_v21 = vld [vmem:[#allocation1 + $0x6] ss:$9 sm:$0xff] }
 0x1f9   :  { %1074 = vst [vmem:[#allocation1] sm:$0xff] %v1039_v52  ;;  %v1072_v56 = vsel %vm1068_vm14, %v1071_v21, %v1067_v2  ;;  %vm1140_vm14 = vcmp.eq.s32.totalorder %v2178_v47, 3 }
 0x200   :  { %v1076_v55 = vld [vmem:[#allocation1 + $0x7] ss:$9 sm:$0xff] }
 0x201   :  { %1081 = vst [vmem:[#allocation1] sm:$0xff] %v1040_v62  ;;  %v1077_v61 = vsel %vm1073_vm10, %v1076_v55, %v1072_v56 }
 0x202   :  { %v1079_v0 = vsel %vm1078_vm8, %v1040_v62, %v1077_v61 }
 0x208   :  { %v1083_v15 = vld [vmem:[#allocation1 + $0x1] ss:$9 sm:$0xff] }
 0x209   :  { %1086 = vst [vmem:[#allocation1] sm:$0xff] %v2153_v14  ;;  %v1084_v44 = vsel %vm1080_vm11, %v1083_v15, %v1079_v0 }
 0x210   :  { %v1088_v60 = vld [vmem:[#allocation1 + $0x1] ss:$9 sm:$0xff] }
 0x211   :  { %1099 = vst [vmem:[#allocation1] sm:$0xff] %v1094_v57  ;;  %v1089_v18 = vsel %vm1085_vm13, %v1088_v60, %v1084_v44 }
 0x212   :  { %v1091_v42 = vmul.u32 %v1360_v4, %v1089_v18  ;;  %vm1096_vm15 = vcmp.eq.s32.totalorder %v1089_v18, 0  ;;  %vm1098_vm4 = vcmp.eq.s32.totalorder %v1089_v18, 1  ;;  %vm1103_vm2 = vcmp.eq.s32.totalorder %v1089_v18, 2 }
 0x213   :  { %v1097_v29 = vsel %vm1096_vm15, %v1094_v57, 0  ;;  %vm1108_vm1 = vcmp.eq.s32.totalorder %v1089_v18, 3  ;;  %vm1113_vm0 = vcmp.eq.s32.totalorder %v1089_v18, 4  ;;  %vm1118_vm5 = vcmp.eq.s32.totalorder %v1089_v18, 5 }
 0x214   :  { %1361 = vst.msk [vmem:[%s2251_s6 + $0x4] sm:$0x1] %vm982_vm6, %v1091_v42  ;;  %vm1123_vm3 = vcmp.eq.s32.totalorder %v1089_v18, 6  ;;  %vm1128_vm9 = vcmp.eq.s32.totalorder %v1089_v18, 7  ;;  %vm1133_vm12 = vcmp.eq.s32.totalorder %v1089_v18, 8  ;;  %vm1135_vm7 = vcmp.eq.s32.totalorder %v1089_v18, 9 }
 0x215   :  { %v1205_v42 = vld [vmem:[#allocation2 + $0x18] sm:$0x3] }
 0x218   :  { %v1101_v16 = vld [vmem:[#allocation1 + $0x1] ss:$9 sm:$0xff] }
 0x219   :  { %1104 = vst [vmem:[#allocation1] sm:$0xff] %v1094_v57  ;;  %v1102_v13 = vsel %vm1098_vm4, %v1101_v16, %v1097_v29 }
 0x220   :  { %v1106_v33 = vld [vmem:[#allocation1 + $0x2] ss:$9 sm:$0xff] }
 0x221   :  { %1109 = vst [vmem:[#allocation1] sm:$0xff] %v1094_v57  ;;  %v1107_v51 = vsel %vm1103_vm2, %v1106_v33, %v1102_v13 }
 0x228   :  { %v1111_v22 = vld [vmem:[#allocation1 + $0x3] ss:$9 sm:$0xff] }
 0x229   :  { %1114 = vst [vmem:[#allocation1] sm:$0xff] %v1094_v57  ;;  %v1112_v59 = vsel %vm1108_vm1, %v1111_v22, %v1107_v51  ;;  %v1366_v51 = vld [vmem:[%s2246_s1 + $0x1] sm:$0x1] }
 0x230   :  { %v1116_v1 = vld [vmem:[#allocation1 + $0x4] ss:$9 sm:$0xff] }
 0x231   :  { %1119 = vst [vmem:[#allocation1] sm:$0xff] %v1094_v57  ;;  %v1117_v43 = vsel %vm1113_vm0, %v1116_v1, %v1112_v59  ;;  %v1259_v1 = vld [vmem:[#allocation2] sm:$0xff] }
 0x238   :  { %v1121_v63 = vld [vmem:[#allocation1 + $0x5] ss:$9 sm:$0xff] }
 0x239   :  { %1124 = vst [vmem:[#allocation1] sm:$0xff] %v1094_v57  ;;  %v1122_v28 = vsel %vm1118_vm5, %v1121_v63, %v1117_v43 }
 0x240   :  { %v1126_v58 = vld [vmem:[#allocation1 + $0x6] ss:$9 sm:$0xff] }
 0x241   :  { %1129 = vst [vmem:[#allocation1] sm:$0xff] %v1094_v57  ;;  %v1127_v3 = vsel %vm1123_vm3, %v1126_v58, %v1122_v28  ;;  %vm1195_vm3 = vcmp.eq.s32.totalorder %v2178_v47, 2 }
 0x248   :  { %v1131_v20 = vld [vmem:[#allocation1 + $0x7] ss:$9 sm:$0xff] }
 0x249   :  { %1136 = vst [vmem:[#allocation1] sm:$0xff] %v1095_v27  ;;  %v1132_v37 = vsel %vm1128_vm9, %v1131_v20, %v1127_v3 }
 0x24a   :  { %v1134_v53 = vsel %vm1133_vm12, %v1095_v27, %v1132_v37 }
 0x250   :  { %v1138_v48 = vld [vmem:[#allocation1 + $0x1] ss:$9 sm:$0xff] }
 0x251   :  { %1141 = vst [vmem:[#allocation1] sm:$0xff] %v2153_v14  ;;  %v1139_v7 = vsel %vm1135_vm7, %v1138_v48, %v1134_v53 }
 0x258   :  { %v1143_v24 = vld [vmem:[#allocation1 + $0x1] ss:$9 sm:$0xff] }
 0x259   :  { %1154 = vst [vmem:[#allocation1] sm:$0xff] %v1149_v10  ;;  %v1144_v12 = vsel %vm1140_vm14, %v1143_v24, %v1139_v7 }
 0x25a   :  { %v1146_v17 = vmul.u32 %v1362_v25, %v1144_v12  ;;  %vm1151_vm10 = vcmp.eq.s32.totalorder %v1144_v12, 0  ;;  %vm1153_vm8 = vcmp.eq.s32.totalorder %v1144_v12, 1  ;;  %vm1158_vm11 = vcmp.eq.s32.totalorder %v1144_v12, 2 }
 0x25b   :  { %v1152_v49 = vsel %vm1151_vm10, %v1149_v10, 0  ;;  %vm1163_vm13 = vcmp.eq.s32.totalorder %v1144_v12, 3  ;;  %vm1168_vm15 = vcmp.eq.s32.totalorder %v1144_v12, 4  ;;  %vm1173_vm4 = vcmp.eq.s32.totalorder %v1144_v12, 5 }
 0x25c   :  { %1363 = vst.msk [vmem:[%s2251_s6 + $0x3] sm:$0x1] %vm982_vm6, %v1146_v17  ;;  %vm1178_vm2 = vcmp.eq.s32.totalorder %v1144_v12, 6  ;;  %vm1183_vm1 = vcmp.eq.s32.totalorder %v1144_v12, 7  ;;  %vm1188_vm0 = vcmp.eq.s32.totalorder %v1144_v12, 8  ;;  %vm1190_vm5 = vcmp.eq.s32.totalorder %v1144_v12, 9 }
 0x25d   :  { %v1260_v17 = vld [vmem:[#allocation2 + $0x8] sm:$0x3] }
 0x260   :  { %v1156_v36 = vld [vmem:[#allocation1 + $0x1] ss:$9 sm:$0xff] }
 0x261   :  { %1159 = vst [vmem:[#allocation1] sm:$0xff] %v1149_v10  ;;  %v1157_v8 = vsel %vm1153_vm8, %v1156_v36, %v1152_v49 }
 0x268   :  { %v1161_v6 = vld [vmem:[#allocation1 + $0x2] ss:$9 sm:$0xff] }
 0x269   :  { %1164 = vst [vmem:[#allocation1] sm:$0xff] %v1149_v10  ;;  %v1162_v26 = vsel %vm1158_vm11, %v1161_v6, %v1157_v8 }
 0x270   :  { %v1166_v34 = vld [vmem:[#allocation1 + $0x3] ss:$9 sm:$0xff] }
 0x271   :  { %1169 = vst [vmem:[#allocation1] sm:$0xff] %v1149_v10  ;;  %v1167_v32 = vsel %vm1163_vm13, %v1166_v34, %v1162_v26  ;;  %v1310_v26 = vld [vmem:[%s2246_s1] sm:$0x1] }
 0x278   :  { %v1171_v41 = vld [vmem:[#allocation1 + $0x4] ss:$9 sm:$0xff] }
 0x279   :  { %1174 = vst [vmem:[#allocation1] sm:$0xff] %v1149_v10  ;;  %v1172_v19 = vsel %vm1168_vm15, %v1171_v41, %v1167_v32 }
 0x280   :  { %v1176_v52 = vld [vmem:[#allocation1 + $0x5] ss:$9 sm:$0xff] }
 0x281   :  { %1179 = vst [vmem:[#allocation1] sm:$0xff] %v1149_v10  ;;  %v1177_v45 = vsel %vm1173_vm4, %v1176_v52, %v1172_v19 }
 0x288   :  { %v1181_v5 = vld [vmem:[#allocation1 + $0x6] ss:$9 sm:$0xff] }
 0x289   :  { %1184 = vst [vmem:[#allocation1] sm:$0xff] %v1149_v10  ;;  %v1182_v54 = vsel %vm1178_vm2, %v1181_v5, %v1177_v45  ;;  %vm1250_vm2 = vcmp.eq.s32.totalorder %v2178_v47, 1 }
 0x290   :  { %v1186_v38 = vld [vmem:[#allocation1 + $0x7] ss:$9 sm:$0xff] }
 0x291   :  { %1191 = vst [vmem:[#allocation1] sm:$0xff] %v1150_v9  ;;  %v1187_v11 = vsel %vm1183_vm1, %v1186_v38, %v1182_v54 }
 0x292   :  { %v1189_v30 = vsel %vm1188_vm0, %v1150_v9, %v1187_v11 }
 0x298   :  { %v1193_v23 = vld [vmem:[#allocation1 + $0x1] ss:$9 sm:$0xff] }
 0x299   :  { %1196 = vst [vmem:[#allocation1] sm:$0xff] %v2153_v14  ;;  %v1194_v40 = vsel %vm1190_vm5, %v1193_v23, %v1189_v30 }
 0x2a0   :  { %v1198_v50 = vld [vmem:[#allocation1 + $0x1] ss:$9 sm:$0xff] }
 0x2a1   :  { %1209 = vst [vmem:[#allocation1] sm:$0xff] %v1204_v39  ;;  %v1199_v35 = vsel %vm1195_vm3, %v1198_v50, %v1194_v40 }
 0x2a2   :  { %v1201_v46 = vmul.u32 %v1364_v31, %v1199_v35  ;;  %vm1206_vm9 = vcmp.eq.s32.totalorder %v1199_v35, 0  ;;  %vm1208_vm12 = vcmp.eq.s32.totalorder %v1199_v35, 1  ;;  %vm1213_vm7 = vcmp.eq.s32.totalorder %v1199_v35, 2 }
 0x2a3   :  { %v1207_v62 = vsel %vm1206_vm9, %v1204_v39, 0  ;;  %vm1218_vm14 = vcmp.eq.s32.totalorder %v1199_v35, 3  ;;  %vm1223_vm10 = vcmp.eq.s32.totalorder %v1199_v35, 4  ;;  %vm1228_vm8 = vcmp.eq.s32.totalorder %v1199_v35, 5 }
 0x2a4   :  { %1365 = vst.msk [vmem:[%s2251_s6 + $0x2] sm:$0x1] %vm982_vm6, %v1201_v46  ;;  %vm1233_vm11 = vcmp.eq.s32.totalorder %v1199_v35, 6  ;;  %vm1238_vm13 = vcmp.eq.s32.totalorder %v1199_v35, 7  ;;  %vm1243_vm15 = vcmp.eq.s32.totalorder %v1199_v35, 8  ;;  %vm1245_vm4 = vcmp.eq.s32.totalorder %v1199_v35, 9 }
 0x2a8   :  { %v1211_v2 = vld [vmem:[#allocation1 + $0x1] ss:$9 sm:$0xff] }
 0x2a9   :  { %1214 = vst [vmem:[#allocation1] sm:$0xff] %v1204_v39  ;;  %v1212_v55 = vsel %vm1208_vm12, %v1211_v2, %v1207_v62 }
 0x2b0   :  { %v1216_v21 = vld [vmem:[#allocation1 + $0x2] ss:$9 sm:$0xff] }
 0x2b1   :  { %1219 = vst [vmem:[#allocation1] sm:$0xff] %v1204_v39  ;;  %v1217_v61 = vsel %vm1213_vm7, %v1216_v21, %v1212_v55 }
 0x2b8   :  { %v1221_v56 = vld [vmem:[#allocation1 + $0x3] ss:$9 sm:$0xff] }
 0x2b9   :  { %1224 = vst [vmem:[#allocation1] sm:$0xff] %v1204_v39  ;;  %v1222_v0 = vsel %vm1218_vm14, %v1221_v56, %v1217_v61 }
 0x2c0   :  { %v1226_v15 = vld [vmem:[#allocation1 + $0x4] ss:$9 sm:$0xff] }
 0x2c1   :  { %v1227_v44 = vsel %vm1223_vm10, %v1226_v15, %v1222_v0  ;;  %1229 = vst [vmem:[#allocation1] sm:$0xff] %v1204_v39 }
 0x2c8   :  { %v1231_v4 = vld [vmem:[#allocation1 + $0x5] ss:$9 sm:$0xff] }
 0x2c9   :  { %v1232_v57 = vsel %vm1228_vm8, %v1231_v4, %v1227_v44  ;;  %1234 = vst [vmem:[#allocation1] sm:$0xff] %v1204_v39 }
 0x2d0   :  { %v1236_v60 = vld [vmem:[#allocation1 + $0x6] ss:$9 sm:$0xff] }
 0x2d1   :  { %v1237_v18 = vsel %vm1233_vm11, %v1236_v60, %v1232_v57  ;;  %1239 = vst [vmem:[#allocation1] sm:$0xff] %v1204_v39  ;;  %vm1305_vm11 = vcmp.eq.s32.totalorder %v2178_v47, 0 }
 0x2d8   :  { %v1241_v16 = vld [vmem:[#allocation1 + $0x7] ss:$9 sm:$0xff] }
 0x2d9   :  { %v1242_v33 = vsel %vm1238_vm13, %v1241_v16, %v1237_v18  ;;  %1246 = vst [vmem:[#allocation1] sm:$0xff] %v1205_v42 }
 0x2da   :  { %v1244_v22 = vsel %vm1243_vm15, %v1205_v42, %v1242_v33 }
 0x2e0   :  { %v1248_v29 = vld [vmem:[#allocation1 + $0x1] ss:$9 sm:$0xff] }
 0x2e1   :  { %v1249_v13 = vsel %vm1245_vm4, %v1248_v29, %v1244_v22  ;;  %1251 = vst [vmem:[#allocation1] sm:$0xff] %v2153_v14 }
 0x2e8   :  { %v1253_v59 = vld [vmem:[#allocation1 + $0x1] ss:$9 sm:$0xff] }
 0x2e9   :  { %v1254_v43 = vsel %vm1250_vm2, %v1253_v59, %v1249_v13  ;;  %1264 = vst [vmem:[#allocation1] sm:$0xff] %v1259_v1 }
 0x2ea   :  { %v1256_v63 = vmul.u32 %v1366_v51, %v1254_v43  ;;  %vm1261_vm1 = vcmp.eq.s32.totalorder %v1254_v43, 0  ;;  %vm1263_vm0 = vcmp.eq.s32.totalorder %v1254_v43, 1  ;;  %vm1268_vm5 = vcmp.eq.s32.totalorder %v1254_v43, 2 }
 0x2eb   :  { %v1262_v27 = vsel %vm1261_vm1, %v1259_v1, 0  ;;  %vm1273_vm3 = vcmp.eq.s32.totalorder %v1254_v43, 3  ;;  %vm1278_vm9 = vcmp.eq.s32.totalorder %v1254_v43, 4  ;;  %vm1283_vm12 = vcmp.eq.s32.totalorder %v1254_v43, 5 }
 0x2ec   :  { %1367 = vst.msk [vmem:[%s2251_s6 + $0x1] sm:$0x1] %vm982_vm6, %v1256_v63  ;;  %vm1288_vm7 = vcmp.eq.s32.totalorder %v1254_v43, 6  ;;  %vm1293_vm14 = vcmp.eq.s32.totalorder %v1254_v43, 7  ;;  %vm1298_vm10 = vcmp.eq.s32.totalorder %v1254_v43, 8  ;;  %vm1300_vm8 = vcmp.eq.s32.totalorder %v1254_v43, 9 }
 0x2f0   :  { %v1266_v28 = vld [vmem:[#allocation1 + $0x1] ss:$9 sm:$0xff] }
 0x2f1   :  { %1269 = vst [vmem:[#allocation1] sm:$0xff] %v1259_v1  ;;  %v1267_v20 = vsel %vm1263_vm0, %v1266_v28, %v1262_v27 }
 0x2f8   :  { %v1271_v58 = vld [vmem:[#allocation1 + $0x2] ss:$9 sm:$0xff] }
 0x2f9   :  { %1274 = vst [vmem:[#allocation1] sm:$0xff] %v1259_v1  ;;  %v1272_v37 = vsel %vm1268_vm5, %v1271_v58, %v1267_v20 }
 0x300   :  { %v1276_v3 = vld [vmem:[#allocation1 + $0x3] ss:$9 sm:$0xff] }
 0x301   :  { %1279 = vst [vmem:[#allocation1] sm:$0xff] %v1259_v1  ;;  %v1277_v53 = vsel %vm1273_vm3, %v1276_v3, %v1272_v37 }
 0x308   :  { %v1281_v48 = vld [vmem:[#allocation1 + $0x4] ss:$9 sm:$0xff] }
 0x309   :  { %v1282_v7 = vsel %vm1278_vm9, %v1281_v48, %v1277_v53  ;;  %1284 = vst [vmem:[#allocation1] sm:$0xff] %v1259_v1 }
 0x310   :  { %v1286_v25 = vld [vmem:[#allocation1 + $0x5] ss:$9 sm:$0xff] }
 0x311   :  { %v1287_v10 = vsel %vm1283_vm12, %v1286_v25, %v1282_v7  ;;  %1289 = vst [vmem:[#allocation1] sm:$0xff] %v1259_v1 }
 0x318   :  { %v1291_v24 = vld [vmem:[#allocation1 + $0x6] ss:$9 sm:$0xff] }
 0x319   :  { %v1292_v12 = vsel %vm1288_vm7, %v1291_v24, %v1287_v10  ;;  %1294 = vst [vmem:[#allocation1] sm:$0xff] %v1259_v1 }
 0x320   :  { %v1296_v36 = vld [vmem:[#allocation1 + $0x7] ss:$9 sm:$0xff] }
 0x321   :  { %v1297_v6 = vsel %vm1293_vm14, %v1296_v36, %v1292_v12  ;;  %1301 = vst [vmem:[#allocation1] sm:$0xff] %v1260_v17 }
 0x322   :  { %v1299_v34 = vsel %vm1298_vm10, %v1260_v17, %v1297_v6 }
 0x328   :  { %v1303_v49 = vld [vmem:[#allocation1 + $0x1] ss:$9 sm:$0xff] }
 0x329   :  { %v1304_v8 = vsel %vm1300_vm8, %v1303_v49, %v1299_v34  ;;  %1306 = vst [vmem:[#allocation1] sm:$0xff] %v2153_v14 }
 0x330   :  { %v1308_v41 = vld [vmem:[#allocation1 + $0x1] ss:$9 sm:$0xff] }
 0x331   :  { %v1309_v32 = vsel %vm1305_vm11, %v1308_v41, %v1304_v8 }
 0x332   :  { %v1311_v19 = vmul.u32 %v1310_v26, %v1309_v32 }
 0x334   :  { %1312 = vst.msk [vmem:[%s2251_s6] sm:$0x1] %vm982_vm6, %v1311_v19 }
 0x335   :  { %1427 = dma.done.wait [#allocation4], 16  }
 0x336   :  { %1428 = vsyncadd [#allocation4], 4294967280 }
 0x337   :  { %1332 = vsyncpa [#allocation4], 1 }

</bundles_post_ra>
